<compile_context>
chip_gen: v7x
topology: tpu7x:2x2x1
jax: 0.10.0
libtpu: 0.0.40
codegen_flags: <defaults>
</compile_context>

<pallas_src>
from functools import reduce

import numpy as np
import jax
import jax.numpy as jnp
from jax.experimental import pallas as pl
from jax.experimental.pallas import tpu as pltpu

# ----------------------------- static config --------------------------------
B = 2                # demo batch (number of images fed in __main__)
BT = 2               # images per kernel grid tile (grid scales as batch / BT)
H0 = 16              # input spatial (square)
C0 = 4               # input channels (img_size[2])
K = 3                # conv kernel size
C1 = 8               # conv1 out channels
C2 = 16              # conv2 out channels
HID = 32             # hidden linear width
NOUT = 10            # output classes
V_TH = 0.5           # LIF firing threshold

H1 = H0 - K + 1                    # 14  (conv1, valid)
HP1 = (H1 - 2) // 2 + 1            # 7   (AvgPool2d(2,2), floor)
H2 = HP1 - K + 1                   # 5   (conv2, valid)
HP2 = (H2 - 2) // 2 + 1            # 2   (AvgPool2d(2,2), floor)
FEAT_S = HP2 * HP2                 # 4 spatial positions at flatten
FLAT_FEATS = C2 * FEAT_S           # 64 = Linear in_features (sanity)
assert FLAT_FEATS == C2 * reduce(lambda a, b: a * b, [HP2, HP2])

# per-grid-tile row counts (rows ordered (b, h, w) unless noted otherwise)
R1 = BT * H1 * H1                  # 392 rows entering conv1 (im2col rows)
RP1 = BT * HP1 * HP1               # 98  rows after pool1
R2 = BT * H2 * H2                  # 50  rows after conv2


# ------------------------------- Pallas kernel -------------------------------
def spkconvnet_kernel(a1_ref, w1_ref, p1_ref, g2_ref, w2c_ref, lred_ref,
                      rred_ref, p2_ref, wlc_ref, lb_ref, rr_ref, wo_ref,
                      out_ref):
    f32 = jnp.float32
    bf16 = jnp.bfloat16

    def spike(v):
        # single-step LIF (zero initial membrane): Heaviside(v - V_th)
        return jnp.where(v >= V_TH, 1.0, 0.0).astype(bf16)

    def block_diag_mask(x, row_block, lane_block):
        # keep x[(i, r), (j, o)] only where row block i == lane block j.
        # lane_block must be a power of two so the f32 scaling is exact.
        ri = jax.lax.broadcasted_iota(jnp.int32, x.shape, 0).astype(f32)
        ci = jax.lax.broadcasted_iota(jnp.int32, x.shape, 1).astype(f32)
        blk = jnp.floor(ci * (1.0 / lane_block))
        lo = blk * row_block
        keep = (ri >= lo) & (ri < lo + row_block)
        return jnp.where(keep, x, 0.0)

    # conv2d(4->8, k3, s1, p0) realized as im2col matmul, then LIF
    h1 = jnp.dot(a1_ref[...], w1_ref[...], preferred_element_type=f32)       # [R1, 8]
    s1 = spike(h1)

    # AvgPool2d(2, 2) as a pooling matmul over flattened spatial rows
    x2 = jnp.dot(p1_ref[...], s1, preferred_element_type=f32).astype(bf16)   # [RP1, 8]

    # conv2d(8->16, k3, s1, p0): all 9 taps fused.
    #   pstk : tap-stacked patch rows (t, r)                         [9*R2, 8]
    #   pw   : x all taps' weights side by side (lane blocks t')     [9*R2, 9*16]
    #   mask keeps only t == t'; 0/1 reductions over row blocks (lred) and
    #   lane blocks (rred) produce the conv output.
    pstk = jnp.dot(g2_ref[...], x2, preferred_element_type=f32).astype(bf16)
    pw = jnp.dot(pstk, w2c_ref[...], preferred_element_type=f32)
    pw = block_diag_mask(pw, R2, C2).astype(bf16)
    q = jnp.dot(lred_ref[...], pw, preferred_element_type=f32).astype(bf16)  # [R2, 144]
    h2 = jnp.dot(q, rred_ref[...], preferred_element_type=f32)               # [R2, 16]
    s2 = spike(h2)

    # AvgPool2d(2, 2); rows ordered (spatial position s, batch b)
    x3 = jnp.dot(p2_ref[...], s2, preferred_element_type=f32).astype(bf16)   # [4*BT, 16]

    # flatten + Linear(64 -> 32): all 4 spatial positions fused with the same
    # block-diagonal mask + reduction trick (replaces v1's sel/wl loop).
    xw = jnp.dot(x3, wlc_ref[...], preferred_element_type=f32)               # [4*BT, 128]
    xw = block_diag_mask(xw, BT, HID).astype(bf16)
    accp = jnp.dot(lb_ref[...], xw, preferred_element_type=f32).astype(bf16) # [BT, 128]
    acc = jnp.dot(accp, rr_ref[...], preferred_element_type=f32)             # [BT, 32]
    s3 = spike(acc)

    # output Linear(32 -> 10); loss_fun == 'ce' => stop here (no trailing LIF)
    out_ref[...] = jnp.dot(s3, wo_ref[...], preferred_element_type=f32)      # [BT, 10]


# --------------------------- glue: structure matrices ------------------------
def _im2col_nhwc(x, k):
    """[B,H,W,C] -> [B*Ho*Wo, k*k*C], column order (kh, kw, c). Plain JAX glue."""
    b, h, w, c = x.shape
    ho, wo = h - k + 1, w - k + 1
    cols = []
    for kh in range(k):
        for kw in range(k):
            cols.append(x[:, kh:kh + ho, kw:kw + wo, :].reshape(b * ho * wo, c))
    return jnp.concatenate(cols, axis=1)


def _pool_mat(batch, hin, k, s):
    """AvgPool2d(k, s, floor) as [batch*Ho*Ho, batch*Hin*Hin]; rows (b, oh, ow)."""
    hout = (hin - k) // s + 1
    m = np.zeros((batch * hout * hout, batch * hin * hin), np.float32)
    for b in range(batch):
        for oh in range(hout):
            for ow in range(hout):
                ro = b * hout * hout + oh * hout + ow
                for dh in range(k):
                    for dw in range(k):
                        ri = b * hin * hin + (oh * s + dh) * hin + (ow * s + dw)
                        m[ro, ri] = 1.0 / (k * k)
    return m


def _pool_mat_posmajor(batch, hin, k, s):
    """AvgPool2d(k, s, floor) as [Ho*Ho*batch, batch*Hin*Hin]; rows (pos, b)."""
    hout = (hin - k) // s + 1
    m = np.zeros((hout * hout * batch, batch * hin * hin), np.float32)
    for oh in range(hout):
        for ow in range(hout):
            sp = oh * hout + ow
            for b in range(batch):
                ro = sp * batch + b
                for dh in range(k):
                    for dw in range(k):
                        ri = b * hin * hin + (oh * s + dh) * hin + (ow * s + dw)
                        m[ro, ri] = 1.0 / (k * k)
    return m


def _conv_gather_stacked(batch, hin, k):
    """0/1 gather [k*k*batch*Ho*Ho, batch*Hin*Hin]; rows ordered (tap, b, oh, ow)."""
    hout = hin - k + 1
    rows_per_tap = batch * hout * hout
    m = np.zeros((k * k * rows_per_tap, batch * hin * hin), np.float32)
    for kh in range(k):
        for kw in range(k):
            t = kh * k + kw
            for b in range(batch):
                for oh in range(hout):
                    for ow in range(hout):
                        ro = t * rows_per_tap + b * hout * hout + oh * hout + ow
                        ri = b * hin * hin + (oh + kh) * hin + (ow + kw)
                        m[ro, ri] = 1.0
    return m


def init_model(key):
    """Deterministic synthetic parameters + fixed structure matrices (all bf16).

    Correspondence to the PyTorch module's parameters:
      * conv weights are stored HWIO and flattened to matmul form; the
        equivalent nn.Conv2d weight is the OIHW transpose.
      * wlcat[c, s*HID + o] corresponds to nn.Linear(64, 32).weight[o, c*FEAT_S + s]
        (PyTorch flattens NCHW, the kernel flattens per-(h,w)-position).
      * wo is the transpose of nn.Linear(32, 10).weight.
      * learner_bias = False -> no biases anywhere.
    Structure matrices contain only {0, 1, 0.25}: exactly representable in bf16.
    """
    k1, k2, k3, k4 = jax.random.split(key, 4)
    w1_hwio = jax.random.normal(k1, (K, K, C0, C1), jnp.float32) / np.sqrt(K * K * C0)
    w2_hwio = jax.random.normal(k2, (K, K, C1, C2), jnp.float32) / np.sqrt(K * K * C1)
    wl = jax.random.normal(k3, (FEAT_S, C2, HID), jnp.float32) / np.sqrt(FLAT_FEATS)
    wo = jax.random.normal(k4, (HID, NOUT), jnp.float32) / np.sqrt(HID)
    bf = jnp.bfloat16
    return {
        # conv1 weight, im2col (kh, kw, c) row order                       [36, 8]
        "w1m": w1_hwio.reshape(K * K * C0, C1).astype(bf),
        # conv2 weights, all taps side by side on the lane axis            [8, 144]
        "w2cat": jnp.transpose(w2_hwio.reshape(K * K, C1, C2),
                               (1, 0, 2)).reshape(C1, K * K * C2).astype(bf),
        # Linear(64->32) weights, positions side by side on the lane axis  [16, 128]
        "wlcat": jnp.transpose(wl, (1, 0, 2)).reshape(C2, FEAT_S * HID).astype(bf),
        "wo": wo.astype(bf),                                             # [32, 10]
        # pooling / gather / reduction structure matrices (bf16-exact)
        "p1": jnp.asarray(_pool_mat(BT, H1, 2, 2), bf),                  # [98, 392]
        "g2stk": jnp.asarray(_conv_gather_stacked(BT, HP1, K), bf),      # [450, 98]
        "lred": jnp.asarray(np.tile(np.eye(R2, dtype=np.float32), (1, K * K)), bf),  # [50, 450]
        "rred": jnp.asarray(np.tile(np.eye(C2, dtype=np.float32), (K * K, 1)), bf),  # [144, 16]
        "p2stk": jnp.asarray(_pool_mat_posmajor(BT, H2, 2, 2), bf),      # [8, 50]
        "lb": jnp.asarray(np.tile(np.eye(BT, dtype=np.float32), (1, FEAT_S)), bf),   # [2, 8]
        "rr": jnp.asarray(np.tile(np.eye(HID, dtype=np.float32), (FEAT_S, 1)), bf),  # [128, 32]
    }


# ------------------------------- forward wrapper -----------------------------
def spkconvnet_forward(x_nchw, model, step=0):
    # `step` only feeds nm.LIF state in the original model; the stateless
    # single-step LIF used here does not depend on it.
    del step
    btot = x_nchw.shape[0]
    n_tiles = pl.cdiv(btot, BT)
    bpad = n_tiles * BT
    x = jnp.transpose(x_nchw, (0, 2, 3, 1)).astype(jnp.float32)   # NCHW -> NHWC
    if bpad != btot:
        x = jnp.pad(x, ((0, bpad - btot), (0, 0), (0, 0), (0, 0)))
    a1 = _im2col_nhwc(x, K).astype(jnp.bfloat16)                  # [bpad*196, 36]
    a1 = a1.reshape(n_tiles, R1, K * K * C0)                      # per-tile im2col rows

    rep = lambda shape: pl.BlockSpec(shape, lambda i: (0, 0))     # grid-invariant inputs
    out = pl.pallas_call(
        spkconvnet_kernel,
        out_shape=jax.ShapeDtypeStruct((n_tiles, BT, NOUT), jnp.float32),
        grid=(n_tiles,),
        in_specs=[
            pl.BlockSpec((None, R1, K * K * C0), lambda i: (i, 0, 0)),   # a1 tile
            rep((K * K * C0, C1)),          # w1m
            rep((RP1, R1)),                 # p1
            rep((K * K * R2, RP1)),         # g2stk
            rep((C1, K * K * C2)),          # w2cat
            rep((R2, K * K * R2)),          # lred
            rep((K * K * C2, C2)),          # rred
            rep((FEAT_S * BT, R2)),         # p2stk
            rep((C2, FEAT_S * HID)),        # wlcat
            rep((BT, FEAT_S * BT)),         # lb
            rep((FEAT_S * HID, HID)),       # rr
            rep((HID, NOUT)),               # wo
        ],
        out_specs=pl.BlockSpec((None, BT, NOUT), lambda i: (i, 0, 0)),
        compiler_params=pltpu.CompilerParams(
            dimension_semantics=("parallel",)),
    )(a1, model["w1m"], model["p1"], model["g2stk"], model["w2cat"],
      model["lred"], model["rred"], model["p2stk"], model["wlcat"],
      model["lb"], model["rr"], model["wo"])
    return out.reshape(bpad, NOUT)[:btot]


# ------------------------------------ main ------------------------------------
if __name__ == "__main__":
    key = jax.random.PRNGKey(0)
    kx, kp = jax.random.split(key)
    x = jax.random.normal(kx, (B, C0, H0, H0), jnp.float32)   # NCHW, like PyTorch
    model = init_model(kp)

    out = spkconvnet_forward(x, model, step=0)
    out = jax.block_until_ready(out)

    assert out.shape == (B, NOUT)
    assert bool(jnp.all(jnp.isfinite(out)))
    print("KERNEL_OK")
</pallas_src>

<mosaic_0001>
module attributes {stable_mosaic.version = 11 : i64} {
  func.func @spkconvnet_kernel(%arg0: i32, %arg1: memref<1x392x36xbf16, #tpu.memory_space<vmem>>, %arg2: memref<36x8xbf16, #tpu.memory_space<vmem>>, %arg3: memref<98x392xbf16, #tpu.memory_space<vmem>>, %arg4: memref<450x98xbf16, #tpu.memory_space<vmem>>, %arg5: memref<8x144xbf16, #tpu.memory_space<vmem>>, %arg6: memref<50x450xbf16, #tpu.memory_space<vmem>>, %arg7: memref<144x16xbf16, #tpu.memory_space<vmem>>, %arg8: memref<8x50xbf16, #tpu.memory_space<vmem>>, %arg9: memref<16x128xbf16, #tpu.memory_space<vmem>>, %arg10: memref<2x8xbf16, #tpu.memory_space<vmem>>, %arg11: memref<128x32xbf16, #tpu.memory_space<vmem>>, %arg12: memref<32x10xbf16, #tpu.memory_space<vmem>>, %arg13: memref<1x2x10xf32, #tpu.memory_space<vmem>>) attributes {dimension_semantics = [#tpu.dimension_semantics<parallel>], iteration_bounds = array<i64: 1>, scalar_prefetch = 0 : i64, scratch_operands = 0 : i64, tpu.core_type = #tpu.core_type<tc>, window_params = [{transform_indices = @transform_0, window_bounds = array<i64: 1, 392, 36>}, {pipeline_mode = #tpu.pipeline_mode<synchronous>, transform_indices = @transform_1, window_bounds = array<i64: 36, 8>}, {pipeline_mode = #tpu.pipeline_mode<synchronous>, transform_indices = @transform_2, window_bounds = array<i64: 98, 392>}, {pipeline_mode = #tpu.pipeline_mode<synchronous>, transform_indices = @transform_3, window_bounds = array<i64: 450, 98>}, {pipeline_mode = #tpu.pipeline_mode<synchronous>, transform_indices = @transform_4, window_bounds = array<i64: 8, 144>}, {pipeline_mode = #tpu.pipeline_mode<synchronous>, transform_indices = @transform_5, window_bounds = array<i64: 50, 450>}, {pipeline_mode = #tpu.pipeline_mode<synchronous>, transform_indices = @transform_6, window_bounds = array<i64: 144, 16>}, {pipeline_mode = #tpu.pipeline_mode<synchronous>, transform_indices = @transform_7, window_bounds = array<i64: 8, 50>}, {pipeline_mode = #tpu.pipeline_mode<synchronous>, transform_indices = @transform_8, window_bounds = array<i64: 16, 128>}, {pipeline_mode = #tpu.pipeline_mode<synchronous>, transform_indices = @transform_9, window_bounds = array<i64: 2, 8>}, {pipeline_mode = #tpu.pipeline_mode<synchronous>, transform_indices = @transform_10, window_bounds = array<i64: 128, 32>}, {pipeline_mode = #tpu.pipeline_mode<synchronous>, transform_indices = @transform_11, window_bounds = array<i64: 32, 10>}, {transform_indices = @transform_12, window_bounds = array<i64: 1, 2, 10>}]} {
    %c0 = arith.constant 0 : index
    %c0_0 = arith.constant 0 : index
    %c0_1 = arith.constant 0 : index
    %0 = vector.load %arg1[%c0, %c0_0, %c0_1] : memref<1x392x36xbf16, #tpu.memory_space<vmem>>, vector<1x392x36xbf16>
    %1 = vector.shape_cast %0 : vector<1x392x36xbf16> to vector<392x36xbf16>
    %c0_2 = arith.constant 0 : index
    %c0_3 = arith.constant 0 : index
    %2 = vector.load %arg2[%c0_2, %c0_3] : memref<36x8xbf16, #tpu.memory_space<vmem>>, vector<36x8xbf16>
    %cst = arith.constant dense<0.000000e+00> : vector<392x8xf32>
    %3 = tpu.matmul %1, %2, %cst {dimension_numbers = #tpu.dot_dimension_numbers<[1], [0], [0], [1], [0, 0, 1, 1], [], []>} : vector<392x36xbf16>, vector<36x8xbf16>, vector<392x8xf32> -> vector<392x8xf32>
    %cst_4 = arith.constant 5.000000e-01 : f32
    %4 = vector.broadcast %cst_4 : f32 to vector<392x8xf32>
    %5 = arith.cmpf oge, %3, %4 : vector<392x8xf32>
    %cst_5 = arith.constant 1.000000e+00 : f32
    %cst_6 = arith.constant 0.000000e+00 : f32
    %6 = vector.broadcast %cst_5 : f32 to vector<392x8xf32>
    %7 = vector.broadcast %cst_6 : f32 to vector<392x8xf32>
    %8 = arith.select %5, %6, %7 : vector<392x8xi1>, vector<392x8xf32>
    %9 = arith.truncf %8 : vector<392x8xf32> to vector<392x8xbf16>
    %c0_7 = arith.constant 0 : index
    %c0_8 = arith.constant 0 : index
    %10 = vector.load %arg3[%c0_7, %c0_8] : memref<98x392xbf16, #tpu.memory_space<vmem>>, vector<98x392xbf16>
    %cst_9 = arith.constant dense<0.000000e+00> : vector<98x8xf32>
    %11 = tpu.matmul %10, %9, %cst_9 {dimension_numbers = #tpu.dot_dimension_numbers<[1], [0], [0], [1], [0, 0, 1, 1], [], []>} : vector<98x392xbf16>, vector<392x8xbf16>, vector<98x8xf32> -> vector<98x8xf32>
    %12 = arith.truncf %11 : vector<98x8xf32> to vector<98x8xbf16>
    %c0_10 = arith.constant 0 : index
    %c0_11 = arith.constant 0 : index
    %13 = vector.load %arg4[%c0_10, %c0_11] : memref<450x98xbf16, #tpu.memory_space<vmem>>, vector<450x98xbf16>
    %cst_12 = arith.constant dense<0.000000e+00> : vector<450x8xf32>
    %14 = tpu.matmul %13, %12, %cst_12 {dimension_numbers = #tpu.dot_dimension_numbers<[1], [0], [0], [1], [0, 0, 1, 1], [], []>} : vector<450x98xbf16>, vector<98x8xbf16>, vector<450x8xf32> -> vector<450x8xf32>
    %15 = arith.truncf %14 : vector<450x8xf32> to vector<450x8xbf16>
    %c0_13 = arith.constant 0 : index
    %c0_14 = arith.constant 0 : index
    %16 = vector.load %arg5[%c0_13, %c0_14] : memref<8x144xbf16, #tpu.memory_space<vmem>>, vector<8x144xbf16>
    %cst_15 = arith.constant dense<0.000000e+00> : vector<450x144xf32>
    %17 = tpu.matmul %15, %16, %cst_15 {dimension_numbers = #tpu.dot_dimension_numbers<[1], [0], [0], [1], [0, 0, 1, 1], [], []>} : vector<450x8xbf16>, vector<8x144xbf16>, vector<450x144xf32> -> vector<450x144xf32>
    %18 = tpu.iota {dimensions = array<i32: 0>} : vector<450x144xi32>
    %19 = arith.sitofp %18 : vector<450x144xi32> to vector<450x144xf32>
    %20 = tpu.iota {dimensions = array<i32: 1>} : vector<450x144xi32>
    %21 = arith.sitofp %20 : vector<450x144xi32> to vector<450x144xf32>
    %cst_16 = arith.constant 6.250000e-02 : f32
    %22 = vector.broadcast %cst_16 : f32 to vector<450x144xf32>
    %23 = arith.mulf %21, %22 : vector<450x144xf32>
    %24 = math.floor %23 : vector<450x144xf32>
    %cst_17 = arith.constant 5.000000e+01 : f32
    %25 = vector.broadcast %cst_17 : f32 to vector<450x144xf32>
    %26 = arith.mulf %24, %25 : vector<450x144xf32>
    %27 = arith.cmpf oge, %19, %26 : vector<450x144xf32>
    %cst_18 = arith.constant 5.000000e+01 : f32
    %28 = vector.broadcast %cst_18 : f32 to vector<450x144xf32>
    %29 = arith.addf %26, %28 : vector<450x144xf32>
    %30 = arith.cmpf olt, %19, %29 : vector<450x144xf32>
    %31 = arith.andi %27, %30 : vector<450x144xi1>
    %cst_19 = arith.constant 0.000000e+00 : f32
    %32 = vector.broadcast %cst_19 : f32 to vector<450x144xf32>
    %33 = arith.select %31, %17, %32 : vector<450x144xi1>, vector<450x144xf32>
    %34 = arith.truncf %33 : vector<450x144xf32> to vector<450x144xbf16>
    %c0_20 = arith.constant 0 : index
    %c0_21 = arith.constant 0 : index
    %35 = vector.load %arg6[%c0_20, %c0_21] : memref<50x450xbf16, #tpu.memory_space<vmem>>, vector<50x450xbf16>
    %cst_22 = arith.constant dense<0.000000e+00> : vector<50x144xf32>
    %36 = tpu.matmul %35, %34, %cst_22 {dimension_numbers = #tpu.dot_dimension_numbers<[1], [0], [0], [1], [0, 0, 1, 1], [], []>} : vector<50x450xbf16>, vector<450x144xbf16>, vector<50x144xf32> -> vector<50x144xf32>
    %37 = arith.truncf %36 : vector<50x144xf32> to vector<50x144xbf16>
    %c0_23 = arith.constant 0 : index
    %c0_24 = arith.constant 0 : index
    %38 = vector.load %arg7[%c0_23, %c0_24] : memref<144x16xbf16, #tpu.memory_space<vmem>>, vector<144x16xbf16>
    %cst_25 = arith.constant dense<0.000000e+00> : vector<50x16xf32>
    %39 = tpu.matmul %37, %38, %cst_25 {dimension_numbers = #tpu.dot_dimension_numbers<[1], [0], [0], [1], [0, 0, 1, 1], [], []>} : vector<50x144xbf16>, vector<144x16xbf16>, vector<50x16xf32> -> vector<50x16xf32>
    %cst_26 = arith.constant 5.000000e-01 : f32
    %40 = vector.broadcast %cst_26 : f32 to vector<50x16xf32>
    %41 = arith.cmpf oge, %39, %40 : vector<50x16xf32>
    %cst_27 = arith.constant 1.000000e+00 : f32
    %cst_28 = arith.constant 0.000000e+00 : f32
    %42 = vector.broadcast %cst_27 : f32 to vector<50x16xf32>
    %43 = vector.broadcast %cst_28 : f32 to vector<50x16xf32>
    %44 = arith.select %41, %42, %43 : vector<50x16xi1>, vector<50x16xf32>
    %45 = arith.truncf %44 : vector<50x16xf32> to vector<50x16xbf16>
    %c0_29 = arith.constant 0 : index
    %c0_30 = arith.constant 0 : index
    %46 = vector.load %arg8[%c0_29, %c0_30] : memref<8x50xbf16, #tpu.memory_space<vmem>>, vector<8x50xbf16>
    %cst_31 = arith.constant dense<0.000000e+00> : vector<8x16xf32>
    %47 = tpu.matmul %46, %45, %cst_31 {dimension_numbers = #tpu.dot_dimension_numbers<[1], [0], [0], [1], [0, 0, 1, 1], [], []>} : vector<8x50xbf16>, vector<50x16xbf16>, vector<8x16xf32> -> vector<8x16xf32>
    %48 = arith.truncf %47 : vector<8x16xf32> to vector<8x16xbf16>
    %c0_32 = arith.constant 0 : index
    %c0_33 = arith.constant 0 : index
    %49 = vector.load %arg9[%c0_32, %c0_33] : memref<16x128xbf16, #tpu.memory_space<vmem>>, vector<16x128xbf16>
    %cst_34 = arith.constant dense<0.000000e+00> : vector<8x128xf32>
    %50 = tpu.matmul %48, %49, %cst_34 {dimension_numbers = #tpu.dot_dimension_numbers<[1], [0], [0], [1], [0, 0, 1, 1], [], []>} : vector<8x16xbf16>, vector<16x128xbf16>, vector<8x128xf32> -> vector<8x128xf32>
    %51 = tpu.iota {dimensions = array<i32: 0>} : vector<8x128xi32>
    %52 = arith.sitofp %51 : vector<8x128xi32> to vector<8x128xf32>
    %53 = tpu.iota {dimensions = array<i32: 1>} : vector<8x128xi32>
    %54 = arith.sitofp %53 : vector<8x128xi32> to vector<8x128xf32>
    %cst_35 = arith.constant 3.125000e-02 : f32
    %55 = vector.broadcast %cst_35 : f32 to vector<8x128xf32>
    %56 = arith.mulf %54, %55 : vector<8x128xf32>
    %57 = math.floor %56 : vector<8x128xf32>
    %cst_36 = arith.constant 2.000000e+00 : f32
    %58 = vector.broadcast %cst_36 : f32 to vector<8x128xf32>
    %59 = arith.mulf %57, %58 : vector<8x128xf32>
    %60 = arith.cmpf oge, %52, %59 : vector<8x128xf32>
    %cst_37 = arith.constant 2.000000e+00 : f32
    %61 = vector.broadcast %cst_37 : f32 to vector<8x128xf32>
    %62 = arith.addf %59, %61 : vector<8x128xf32>
    %63 = arith.cmpf olt, %52, %62 : vector<8x128xf32>
    %64 = arith.andi %60, %63 : vector<8x128xi1>
    %cst_38 = arith.constant 0.000000e+00 : f32
    %65 = vector.broadcast %cst_38 : f32 to vector<8x128xf32>
    %66 = arith.select %64, %50, %65 : vector<8x128xi1>, vector<8x128xf32>
    %67 = arith.truncf %66 : vector<8x128xf32> to vector<8x128xbf16>
    %c0_39 = arith.constant 0 : index
    %c0_40 = arith.constant 0 : index
    %68 = vector.load %arg10[%c0_39, %c0_40] : memref<2x8xbf16, #tpu.memory_space<vmem>>, vector<2x8xbf16>
    %cst_41 = arith.constant dense<0.000000e+00> : vector<2x128xf32>
    %69 = tpu.matmul %68, %67, %cst_41 {dimension_numbers = #tpu.dot_dimension_numbers<[1], [0], [0], [1], [0, 0, 1, 1], [], []>} : vector<2x8xbf16>, vector<8x128xbf16>, vector<2x128xf32> -> vector<2x128xf32>
    %70 = arith.truncf %69 : vector<2x128xf32> to vector<2x128xbf16>
    %c0_42 = arith.constant 0 : index
    %c0_43 = arith.constant 0 : index
    %71 = vector.load %arg11[%c0_42, %c0_43] : memref<128x32xbf16, #tpu.memory_space<vmem>>, vector<128x32xbf16>
    %cst_44 = arith.constant dense<0.000000e+00> : vector<2x32xf32>
    %72 = tpu.matmul %70, %71, %cst_44 {dimension_numbers = #tpu.dot_dimension_numbers<[1], [0], [0], [1], [0, 0, 1, 1], [], []>} : vector<2x128xbf16>, vector<128x32xbf16>, vector<2x32xf32> -> vector<2x32xf32>
    %cst_45 = arith.constant 5.000000e-01 : f32
    %73 = vector.broadcast %cst_45 : f32 to vector<2x32xf32>
    %74 = arith.cmpf oge, %72, %73 : vector<2x32xf32>
    %cst_46 = arith.constant 1.000000e+00 : f32
    %cst_47 = arith.constant 0.000000e+00 : f32
    %75 = vector.broadcast %cst_46 : f32 to vector<2x32xf32>
    %76 = vector.broadcast %cst_47 : f32 to vector<2x32xf32>
    %77 = arith.select %74, %75, %76 : vector<2x32xi1>, vector<2x32xf32>
    %78 = arith.truncf %77 : vector<2x32xf32> to vector<2x32xbf16>
    %c0_48 = arith.constant 0 : index
    %c0_49 = arith.constant 0 : index
    %79 = vector.load %arg12[%c0_48, %c0_49] : memref<32x10xbf16, #tpu.memory_space<vmem>>, vector<32x10xbf16>
    %cst_50 = arith.constant dense<0.000000e+00> : vector<2x10xf32>
    %80 = tpu.matmul %78, %79, %cst_50 {dimension_numbers = #tpu.dot_dimension_numbers<[1], [0], [0], [1], [0, 0, 1, 1], [], []>} : vector<2x32xbf16>, vector<32x10xbf16>, vector<2x10xf32> -> vector<2x10xf32>
    %c0_51 = arith.constant 0 : index
    %c0_52 = arith.constant 0 : index
    %c0_53 = arith.constant 0 : index
    %81 = vector.load %arg13[%c0_51, %c0_52, %c0_53] : memref<1x2x10xf32, #tpu.memory_space<vmem>>, vector<1x2x10xf32>
    %82 = vector.shape_cast %81 : vector<1x2x10xf32> to vector<2x10xf32>
    %83 = vector.shape_cast %80 : vector<2x10xf32> to vector<1x2x10xf32>
    tpu.vector_store %arg13[%c0_51, %c0_52, %c0_53], %83 {strides = array<i32>} : memref<1x2x10xf32, #tpu.memory_space<vmem>>, vector<1x2x10xf32>,
    return
  }
  func.func @transform_0(%arg0: i32) -> (i32, i32, i32) {
    %c0_i32 = arith.constant 0 : i32
    %c0_i32_0 = arith.constant 0 : i32
    %c0_i32_1 = arith.constant 0 : i32
    return %arg0, %c0_i32, %c0_i32_0 : i32, i32, i32
  }
  func.func @transform_1(%arg0: i32) -> (i32, i32) {
    %c0_i32 = arith.constant 0 : i32
    %c0_i32_0 = arith.constant 0 : i32
    %c0_i32_1 = arith.constant 0 : i32
    return %c0_i32, %c0_i32_0 : i32, i32
  }
  func.func @transform_2(%arg0: i32) -> (i32, i32) {
    %c0_i32 = arith.constant 0 : i32
    %c0_i32_0 = arith.constant 0 : i32
    %c0_i32_1 = arith.constant 0 : i32
    return %c0_i32, %c0_i32_0 : i32, i32
  }
  func.func @transform_3(%arg0: i32) -> (i32, i32) {
    %c0_i32 = arith.constant 0 : i32
    %c0_i32_0 = arith.constant 0 : i32
    %c0_i32_1 = arith.constant 0 : i32
    return %c0_i32, %c0_i32_0 : i32, i32
  }
  func.func @transform_4(%arg0: i32) -> (i32, i32) {
    %c0_i32 = arith.constant 0 : i32
    %c0_i32_0 = arith.constant 0 : i32
    %c0_i32_1 = arith.constant 0 : i32
    return %c0_i32, %c0_i32_0 : i32, i32
  }
  func.func @transform_5(%arg0: i32) -> (i32, i32) {
    %c0_i32 = arith.constant 0 : i32
    %c0_i32_0 = arith.constant 0 : i32
    %c0_i32_1 = arith.constant 0 : i32
    return %c0_i32, %c0_i32_0 : i32, i32
  }
  func.func @transform_6(%arg0: i32) -> (i32, i32) {
    %c0_i32 = arith.constant 0 : i32
    %c0_i32_0 = arith.constant 0 : i32
    %c0_i32_1 = arith.constant 0 : i32
    return %c0_i32, %c0_i32_0 : i32, i32
  }
  func.func @transform_7(%arg0: i32) -> (i32, i32) {
    %c0_i32 = arith.constant 0 : i32
    %c0_i32_0 = arith.constant 0 : i32
    %c0_i32_1 = arith.constant 0 : i32
    return %c0_i32, %c0_i32_0 : i32, i32
  }
  func.func @transform_8(%arg0: i32) -> (i32, i32) {
    %c0_i32 = arith.constant 0 : i32
    %c0_i32_0 = arith.constant 0 : i32
    %c0_i32_1 = arith.constant 0 : i32
    return %c0_i32, %c0_i32_0 : i32, i32
  }
  func.func @transform_9(%arg0: i32) -> (i32, i32) {
    %c0_i32 = arith.constant 0 : i32
    %c0_i32_0 = arith.constant 0 : i32
    %c0_i32_1 = arith.constant 0 : i32
    return %c0_i32, %c0_i32_0 : i32, i32
  }
  func.func @transform_10(%arg0: i32) -> (i32, i32) {
    %c0_i32 = arith.constant 0 : i32
    %c0_i32_0 = arith.constant 0 : i32
    %c0_i32_1 = arith.constant 0 : i32
    return %c0_i32, %c0_i32_0 : i32, i32
  }
  func.func @transform_11(%arg0: i32) -> (i32, i32) {
    %c0_i32 = arith.constant 0 : i32
    %c0_i32_0 = arith.constant 0 : i32
    %c0_i32_1 = arith.constant 0 : i32
    return %c0_i32, %c0_i32_0 : i32, i32
  }
  func.func @transform_12(%arg0: i32) -> (i32, i32, i32) {
    %c0_i32 = arith.constant 0 : i32
    %c0_i32_0 = arith.constant 0 : i32
    %c0_i32_1 = arith.constant 0 : i32
    return %arg0, %c0_i32, %c0_i32_0 : i32, i32, i32
  }
}

</mosaic_0001>

<bundles_post_ra>
// kernel: tpu_custom_call.1
= control target key start
LH: loop header
LB: loop body
LE: loop exit
PB: predicated region body
PF: predicated region fallthrough
CT: control target
= control target key end

     0   :  { %v4521_v1 = vmov 0.0   ;;  %vm4522_vm0 = vmmov 0   ;;  %vm311_vm1 = vcmask 1041408   ;;  %vm235_vm2 = vcmask 293888   ;;  %s6368_s0 = inlined_call_operand.vmem [shape: bf16[1,392,36], index: 0, kind: input, shape index: {}]   ;;  %s6369_s1 = inlined_call_operand.vmem [shape: bf16[36,8], index: 1, kind: input, shape index: {}]   ;;  %s6370_s2 = inlined_call_operand.vmem [shape: bf16[98,392], index: 2, kind: input, shape index: {}]   ;;  %s6371_s3 = inlined_call_operand.vmem [shape: bf16[450,98], index: 3, kind: input, shape index: {}]   ;;  %s6372_s4 = inlined_call_operand.vmem [shape: bf16[8,144], index: 4, kind: input, shape index: {}]   ;;  %s6373_s5 = inlined_call_operand.vmem [shape: bf16[50,450], index: 5, kind: input, shape index: {}]   ;;  %s6374_s6 = inlined_call_operand.vmem [shape: bf16[144,16], index: 6, kind: input, shape index: {}]   ;;  %s6375_s7 = inlined_call_operand.vmem [shape: bf16[8,50], index: 7, kind: input, shape index: {}]   ;;  %s6376_s8 = inlined_call_operand.vmem [shape: bf16[16,128], index: 8, kind: input, shape index: {}]   ;;  %s6377_s9 = inlined_call_operand.vmem [shape: bf16[2,8], index: 9, kind: input, shape index: {}]   ;;  %s6378_s10 = inlined_call_operand.vmem [shape: bf16[128,32], index: 10, kind: input, shape index: {}]   ;;  %s6379_s11 = inlined_call_operand.vmem [shape: bf16[32,10], index: 11, kind: input, shape index: {}]   ;;  %s6380_s12 = inlined_call_operand.hbm [shape: f32[1,2,10], index: 12, kind: output, shape index: {}]  }
   0x1   :  { %v4356_v0 = vld [vmem:[%s6369_s1] sm:$0xff]   ;;  %4031 = vmatprep.subr.bf16.mxu0 %v4521_v1  ;;  %v4357_v2 = vld [vmem:[%s6369_s1 + $0x8] sm:$0xff]   ;;  %v4358_v3 = vld [vmem:[%s6369_s1 + $0x10] ss:$0 sps:$4 sm:$0x33]   ;;  %4037 = vmatprep.mubr.msk.bf16.mxu0 %vm4522_vm0, %v4521_v1 }
   0x2   :  { %4032 = vmatpush3.bf16.msra.mxu0 %v4356_v0  ;;  %v313_v4 = vsel %vm311_vm1, %v4358_v3, 0  ;;  %v4359_v5 = vld [vmem:[%s6368_s0] sm:$0xff]   ;;  %v4360_v6 = vld [vmem:[%s6368_s0 + $0x8] sm:$0xff]   ;;  %v4361_v7 = vld [vmem:[%s6368_s0 + $0x10] sm:$0xff]  }
   0x3   :  { %4033 = vmatprep.subr.bf16.mxu0 %v4521_v1  ;;  %v4362_v8 = vld [vmem:[%s6368_s0 + $0x18] sm:$0xff]   ;;  %v4363_v9 = vld [vmem:[%s6368_s0 + $0x20] sm:$0xff]   ;;  %v4364_v10 = vld [vmem:[%s6368_s0 + $0x28] sm:$0xff]  }
   0x4   :  { %v4365_v11 = vld [vmem:[%s6368_s0 + $0x30] sm:$0xff]   ;;  %v4366_v12 = vld [vmem:[%s6368_s0 + $0x38] sm:$0xff]  }
   0x6   :  { %4034 = vmatpush3.bf16.msra.mxu0 %v4357_v2 }
   0x7   :  { %4035 = vmatprep.subr.bf16.mxu0 %v4521_v1 }
   0xa   :  { %4036 = vmatpush3.bf16.msra.mxu0 %v313_v4 }
   0xd   :  { %4038 = vmatmul.mubr.msk.bf16.vlgmr.msra.gmra.mrb[0].mxu0 %vm235_vm2, %v4359_v5 }
   0xe   :  { %4041 = vmatprep.mubr.msk.bf16.mxu0 %vm4522_vm0, %v4521_v1 }
  0x15   :  { %4042 = vmatmul.mubr.msk.bf16.gmra.mrb[4].mxu0 %vm235_vm2, %v4360_v6 }
  0x16   :  { %4045 = vmatprep.mubr.msk.bf16.mxu0 %vm4522_vm0, %v4521_v1 }
  0x1d   :  { %4046 = vmatmul.mubr.msk.bf16.gmra.mrb[8].mxu0 %vm235_vm2, %v4361_v7 }
  0x1e   :  { %4049 = vmatprep.mubr.msk.bf16.mxu0 %vm4522_vm0, %v4521_v1 }
  0x25   :  { %4050 = vmatmul.mubr.msk.bf16.gmra.mrb[12].mxu0 %vm235_vm2, %v4362_v8 }
  0x26   :  { %4053 = vmatprep.mubr.msk.bf16.mxu0 %vm4522_vm0, %v4521_v1 }
  0x2d   :  { %4054 = vmatmul.mubr.msk.bf16.gmra.mrb[16].mxu0 %vm235_vm2, %v4363_v9 }
  0x2e   :  { %4057 = vmatprep.mubr.msk.bf16.mxu0 %vm4522_vm0, %v4521_v1 }
  0x35   :  { %4058 = vmatmul.mubr.msk.bf16.gmra.mrb[20].mxu0 %vm235_vm2, %v4364_v10 }
  0x36   :  { %4061 = vmatprep.mubr.msk.bf16.mxu0 %vm4522_vm0, %v4521_v1 }
  0x3d   :  { %4062 = vmatmul.mubr.msk.bf16.gmra.mrb[24].mxu0 %vm235_vm2, %v4365_v11 }
  0x3e   :  { %4065 = vmatprep.mubr.msk.bf16.mxu0 %vm4522_vm0, %v4521_v1 }
  0x45   :  { %4066 = vmatmul.mubr.msk.bf16.gmra.mrb[28].mxu0 %vm235_vm2, %v4366_v12 }
  0x46   :  { %4069 = vmatprep.mubr.msk.bf16.mxu0 %vm4522_vm0, %v4521_v1 }
  0x47   :  { %17 = vsyncpa [#allocation3], 0  ;;  %v4367_v13 = vld [vmem:[%s6368_s0 + $0x40] sm:$0xff]   ;;  %v4368_v14 = vld [vmem:[%s6368_s0 + $0x48] sm:$0xff]   ;;  %v4524_v45 = vmov 0  }
  0x48   :  { %v4369_v15 = vld [vmem:[%s6368_s0 + $0x50] sm:$0xff]   ;;  %v4370_v16 = vld [vmem:[%s6368_s0 + $0x58] sm:$0xff]   ;;  %v4371_v17 = vld [vmem:[%s6368_s0 + $0x60] sm:$0xff]  }
  0x49   :  { %v4372_v18 = vld [vmem:[%s6368_s0 + $0x68] sm:$0xff]   ;;  %v4373_v19 = vld [vmem:[%s6368_s0 + $0x70] sm:$0xff]   ;;  %v4374_v20 = vld [vmem:[%s6368_s0 + $0x78] sm:$0xff]  }
  0x4a   :  { %v4375_v21 = vld [vmem:[%s6368_s0 + $0x80] sm:$0xff]   ;;  %v4376_v22 = vld [vmem:[%s6368_s0 + $0x88] sm:$0xff]   ;;  %v4377_v23 = vld [vmem:[%s6368_s0 + $0x90] sm:$0xff]  }
  0x4b   :  { %v4378_v24 = vld [vmem:[%s6368_s0 + $0x98] sm:$0xff]   ;;  %v4379_v25 = vld [vmem:[%s6368_s0 + $0xa0] sm:$0xff]   ;;  %v4380_v26 = vld [vmem:[%s6368_s0 + $0xa8] sm:$0xff]  }
  0x4c   :  { %v4381_v27 = vld [vmem:[%s6368_s0 + $0xb0] sm:$0xff]   ;;  %v4382_v28 = vld [vmem:[%s6368_s0 + $0xb8] sm:$0xff]   ;;  %v4383_v29 = vld [vmem:[%s6368_s0 + $0xc0] ss:$0 sps:$4 sm:$0xff]  }
  0x4d   :  { %4070 = vmatmul.mubr.msk.bf16.gmra.mrb[32].mxu0 %vm235_vm2, %v4367_v13  ;;  %v4386_v33 = vld [vmem:[%s6370_s2 + $0x24] ss:$16 sps:$4 sm:$0xff]   ;;  %v4523_v13 = vmov 1.0|1.0   ;;  %v4389_v50 = vld [vmem:[%s6370_s2 + $0x40] ss:$16 sps:$4 sm:$0xff]  }
  0x4e   :  { %4073 = vmatprep.mubr.msk.bf16.mxu0 %vm4522_vm0, %v4521_v1  ;;  %889 = vmatprep.mubr.bf16.mxu1 %v4386_v33  ;;  %v4403_v12 = vld [vmem:[%s6370_s2 + $0x4] ss:$16 sps:$4 sm:$0xff]  }
  0x55   :  { %4074 = vmatmul.mubr.msk.bf16.gmra.mrb[36].mxu0 %vm235_vm2, %v4368_v14 }
  0x56   :  { %4077 = vmatprep.mubr.msk.bf16.mxu0 %vm4522_vm0, %v4521_v1 }
  0x5d   :  { %4078 = vmatmul.mubr.msk.bf16.gmra.mrb[40].mxu0 %vm235_vm2, %v4369_v15 }
  0x5e   :  { %4081 = vmatprep.mubr.msk.bf16.mxu0 %vm4522_vm0, %v4521_v1 }
  0x65   :  { %4082 = vmatmul.mubr.msk.bf16.gmra.mrb[44].mxu0 %vm235_vm2, %v4370_v16 }
  0x66   :  { %4085 = vmatprep.mubr.msk.bf16.mxu0 %vm4522_vm0, %v4521_v1 }
  0x6d   :  { %4086 = vmatmul.mubr.msk.bf16.gmra.mrb[48].mxu0 %vm235_vm2, %v4371_v17 }
  0x6e   :  { %4089 = vmatprep.mubr.msk.bf16.mxu0 %vm4522_vm0, %v4521_v1 }
  0x75   :  { %4090 = vmatmul.mubr.msk.bf16.gmra.mrb[52].mxu0 %vm235_vm2, %v4372_v18 }
  0x76   :  { %4093 = vmatprep.mubr.msk.bf16.mxu0 %vm4522_vm0, %v4521_v1 }
  0x7d   :  { %4094 = vmatmul.mubr.msk.bf16.gmra.mrb[56].mxu0 %vm235_vm2, %v4373_v19 }
  0x7e   :  { %4097 = vmatprep.mubr.msk.bf16.mxu0 %vm4522_vm0, %v4521_v1 }
  0x85   :  { %4098 = vmatmul.mubr.msk.bf16.gmra.mrb[60].mxu0 %vm235_vm2, %v4374_v20 }
  0x86   :  { %4101 = vmatprep.mubr.msk.bf16.mxu0 %vm4522_vm0, %v4521_v1 }
  0x8d   :  { %4102 = vmatmul.mubr.msk.bf16.gmra.mrb[64].mxu0 %vm235_vm2, %v4375_v21 }
  0x8e   :  { %4105 = vmatprep.mubr.msk.bf16.mxu0 %vm4522_vm0, %v4521_v1 }
  0x95   :  { %4106 = vmatmul.mubr.msk.bf16.gmra.mrb[68].mxu0 %vm235_vm2, %v4376_v22 }
  0x96   :  { %4109 = vmatprep.mubr.msk.bf16.mxu0 %vm4522_vm0, %v4521_v1 }
  0x9d   :  { %4110 = vmatmul.mubr.msk.bf16.gmra.mrb[72].mxu0 %vm235_vm2, %v4377_v23 }
  0x9e   :  { %4113 = vmatprep.mubr.msk.bf16.mxu0 %vm4522_vm0, %v4521_v1 }
  0xa5   :  { %4114 = vmatmul.mubr.msk.bf16.gmra.mrb[76].mxu0 %vm235_vm2, %v4378_v24 }
  0xa6   :  { %4117 = vmatprep.mubr.msk.bf16.mxu0 %vm4522_vm0, %v4521_v1 }
  0xad   :  { %4118 = vmatmul.mubr.msk.bf16.gmra.mrb[80].mxu0 %vm235_vm2, %v4379_v25 }
  0xae   :  { %4121 = vmatprep.mubr.msk.bf16.mxu0 %vm4522_vm0, %v4521_v1 }
  0xb5   :  { %4122 = vmatmul.mubr.msk.bf16.gmra.mrb[84].mxu0 %vm235_vm2, %v4380_v26 }
  0xb6   :  { %4125 = vmatprep.mubr.msk.bf16.mxu0 %vm4522_vm0, %v4521_v1 }
  0xbd   :  { %4126 = vmatmul.mubr.msk.bf16.gmra.mrb[88].mxu0 %vm235_vm2, %v4381_v27 }
  0xbe   :  { %4129 = vmatprep.mubr.msk.bf16.mxu0 %vm4522_vm0, %v4521_v1 }
  0xc5   :  { %4130 = vmatmul.mubr.msk.bf16.gmra.mrb[92].mxu0 %vm235_vm2, %v4382_v28 }
  0xc6   :  { %4133 = vmatprep.mubr.msk.bf16.mxu0 %vm4522_vm0, %v4521_v1 }
  0xcd   :  { %4134 = vmatmul.mubr.msk.bf16.gmra.mrb[96].mxu0 %vm235_vm2, %v4383_v29 }
  0xce   :  { %881 = vmatprep.mubr.bf16.mxu0 %v4403_v12 }
  0xe0   :  { %v349_v30 = vpop.f32.mrb[0].mxu0 }
  0xe1   :  { %v4039_v31 = vpop.f32.mrb[1].mxu0  ;;  %vm547_vm3 = vcmp.ge.f32.partialorder %v349_v30, 0.5 }
  0xe2   :  { %v352_v32 = vpop.f32.mrb[2].mxu0 }
  0xe3   :  { %vm548_vm4 = vcmp.ge.f32.partialorder %v352_v32, 0.5  ;;  %v4040_v34 = vpop.f32.mrb[3].mxu0 }
  0xe4   :  { %vm4756_vm5 = vmpackc.low %vm548_vm4, %vm547_vm3 }
  0xe8   :  { %v357_v36 = vpop.f32.mrb[4].mxu0 }
  0xe9   :  { %v4043_v37 = vpop.f32.mrb[5].mxu0  ;;  %vm549_vm6 = vcmp.ge.f32.partialorder %v357_v36, 0.5 }
  0xea   :  { %v360_v38 = vpop.f32.mrb[6].mxu0 }
  0xeb   :  { %vm550_vm7 = vcmp.ge.f32.partialorder %v360_v38, 0.5  ;;  %v4044_v39 = vpop.f32.mrb[7].mxu0 }
  0xec   :  { %vm4760_vm8 = vmpackc.low %vm550_vm7, %vm549_vm6 }
  0xf0   :  { %v365_v41 = vpop.f32.mrb[8].mxu0 }
  0xf1   :  { %v4047_v42 = vpop.f32.mrb[9].mxu0  ;;  %vm551_vm9 = vcmp.ge.f32.partialorder %v365_v41, 0.5 }
  0xf2   :  { %v368_v43 = vpop.f32.mrb[10].mxu0  ;;  %v4384_v42 = vld [vmem:[%s6370_s2 + $0x20] ss:$16 sps:$4 sm:$0xff]  }
  0xf3   :  { %vm552_vm10 = vcmp.ge.f32.partialorder %v368_v43, 0.5  ;;  %v4048_v44 = vpop.f32.mrb[11].mxu0  ;;  %v4401_v43 = vld [vmem:[%s6370_s2] ss:$16 sps:$4 sm:$0xff]  }
  0xf4   :  { %vm4764_vm11 = vmpackc.low %vm552_vm10, %vm551_vm9  ;;  %v4387_v44 = vld [vmem:[%s6370_s2 + $0x44] ss:$16 sps:$4 sm:$0xff]  }
  0xf8   :  { %v373_v46 = vpop.f32.mrb[12].mxu0 }
  0xf9   :  { %v4051_v47 = vpop.f32.mrb[13].mxu0  ;;  %vm553_vm12 = vcmp.ge.f32.partialorder %v373_v46, 0.5 }
  0xfa   :  { %v376_v48 = vpop.f32.mrb[14].mxu0 }
  0xfb   :  { %vm554_vm13 = vcmp.ge.f32.partialorder %v376_v48, 0.5  ;;  %v4052_v49 = vpop.f32.mrb[15].mxu0 }
  0xfc   :  { %vm4768_vm14 = vmpackc.low %vm554_vm13, %vm553_vm12 }
 0x100   :  { %v381_v51 = vpop.f32.mrb[16].mxu0 }
 0x101   :  { %v4055_v52 = vpop.f32.mrb[17].mxu0  ;;  %vm555_vm15 = vcmp.ge.f32.partialorder %v381_v51, 0.5  ;;  %v4390_v51 = vld [vmem:[%s6370_s2 + $0x64] ss:$16 sps:$4 sm:$0xff]  }
 0x102   :  { %v384_v53 = vpop.f32.mrb[18].mxu0 }
 0x103   :  { %vm556_vm1 = vcmp.ge.f32.partialorder %v384_v53, 0.5  ;;  %v4056_v54 = vpop.f32.mrb[19].mxu0 }
 0x104   :  { %vm4772_vm2 = vmpackc.low %vm556_vm1, %vm555_vm15 }
 0x108   :  { %v389_v56 = vpop.f32.mrb[20].mxu0 }
 0x109   :  { %v4059_v57 = vpop.f32.mrb[21].mxu0  ;;  %vm557_vm3 = vcmp.ge.f32.partialorder %v389_v56, 0.5  ;;  %v4392_v56 = vld [vmem:[%s6370_s2 + $0x60] ss:$16 sps:$4 sm:$0xff]  }
 0x10a   :  { %v392_v58 = vpop.f32.mrb[22].mxu0  ;;  %v4393_v57 = vld [vmem:[%s6370_s2 + $0x84] ss:$16 sps:$4 sm:$0xff]  }
 0x10b   :  { %vm558_vm4 = vcmp.ge.f32.partialorder %v392_v58, 0.5  ;;  %v4060_v59 = vpop.f32.mrb[23].mxu0 }
 0x10c   :  { %vm4776_vm6 = vmpackc.low %vm558_vm4, %vm557_vm3 }
 0x110   :  { %v397_v61 = vpop.f32.mrb[24].mxu0 }
 0x111   :  { %v4063_v62 = vpop.f32.mrb[25].mxu0  ;;  %vm559_vm7 = vcmp.ge.f32.partialorder %v397_v61, 0.5 }
 0x112   :  { %v400_v63 = vpop.f32.mrb[26].mxu0  ;;  %v4395_v62 = vld [vmem:[%s6370_s2 + $0x80] ss:$16 sps:$4 sm:$0xff]  }
 0x113   :  { %vm560_vm9 = vcmp.ge.f32.partialorder %v400_v63, 0.5  ;;  %v4064_v0 = vpop.f32.mrb[27].mxu0  ;;  %v4396_v63 = vld [vmem:[%s6370_s2 + $0xa4] ss:$16 sps:$4 sm:$0xff]  }
 0x114   :  { %vm4780_vm10 = vmpackc.low %vm560_vm9, %vm559_vm7 }
 0x118   :  { %v405_v3 = vpop.f32.mrb[28].mxu0 }
 0x119   :  { %v4067_v4 = vpop.f32.mrb[29].mxu0  ;;  %vm561_vm12 = vcmp.ge.f32.partialorder %v405_v3, 0.5 }
 0x11a   :  { %v408_v5 = vpop.f32.mrb[30].mxu0 }
 0x11b   :  { %vm562_vm13 = vcmp.ge.f32.partialorder %v408_v5, 0.5  ;;  %v4068_v6 = vpop.f32.mrb[31].mxu0  ;;  %v694_v5 = vld [vmem:[%s6370_s2 + $0xc0] sm:$0x11] }
 0x11c   :  { %vm4784_vm15 = vmpackc.low %vm562_vm13, %vm561_vm12  ;;  %v4398_v6 = vld [vmem:[%s6370_s2 + $0xa0] ss:$16 sps:$4 sm:$0xff]   ;;  %v3517_v7 = vcombine.high %v694_v5, %v694_v5  ;;  %v3516_v12 = vcombine.low %v694_v5, %v694_v5 }
 0x120   :  { %v413_v8 = vpop.f32.mrb[32].mxu0 }
 0x121   :  { %v4071_v9 = vpop.f32.mrb[33].mxu0  ;;  %vm563_vm1 = vcmp.ge.f32.partialorder %v413_v8, 0.5 }
 0x122   :  { %v416_v10 = vpop.f32.mrb[34].mxu0 }
 0x123   :  { %vm564_vm3 = vcmp.ge.f32.partialorder %v416_v10, 0.5  ;;  %v4072_v11 = vpop.f32.mrb[35].mxu0 }
 0x124   :  { %vm3536_vm4 = vmpackc.low %vm564_vm3, %vm563_vm1 }
 0x125   :  { %3916 = vmatprep.subr.msk.bf16.mxu0 %vm3536_vm4, %v4523_v13  ;;  %4319 = vmatprep.subr.msk.bf16.mxu1 %vm3536_vm4, %v4523_v13 }
 0x126   :  { %3917 = vmatpush3.bf16.msk.msra.mxu0 %vm4756_vm5, %v4523_v13  ;;  %4327 = vmatpush3.bf16.msk.msra.mxu1 %vm4756_vm5, %v4523_v13 }
 0x128   :  { %v421_v14 = vpop.f32.mrb[36].mxu0 }
 0x129   :  { %v4075_v15 = vpop.f32.mrb[37].mxu0  ;;  %vm565_vm7 = vcmp.ge.f32.partialorder %v421_v14, 0.5  ;;  %v4406_v14 = vld [vmem:[%s6370_s2 + $0xc] ss:$16 sps:$4 sm:$0xff]  }
 0x12a   :  { %v424_v16 = vpop.f32.mrb[38].mxu0 }
 0x12b   :  { %vm566_vm9 = vcmp.ge.f32.partialorder %v424_v16, 0.5  ;;  %v4076_v17 = vpop.f32.mrb[39].mxu0 }
 0x12c   :  { %vm3538_vm12 = vmpackc.low %vm566_vm9, %vm565_vm7 }
 0x12d   :  { %3918 = vmatprep.subr.msk.bf16.mxu0 %vm3538_vm12, %v4523_v13  ;;  %4320 = vmatprep.subr.msk.bf16.mxu1 %vm3538_vm12, %v4523_v13 }
 0x12e   :  { %3919 = vmatpush3.bf16.msk.msra.mxu0 %vm4760_vm8, %v4523_v13  ;;  %4328 = vmatpush3.bf16.msk.msra.mxu1 %vm4760_vm8, %v4523_v13 }
 0x130   :  { %v429_v18 = vpop.f32.mrb[40].mxu0 }
 0x131   :  { %v4079_v19 = vpop.f32.mrb[41].mxu0  ;;  %vm567_vm5 = vcmp.ge.f32.partialorder %v429_v18, 0.5 }
 0x132   :  { %v432_v20 = vpop.f32.mrb[42].mxu0 }
 0x133   :  { %vm568_vm13 = vcmp.ge.f32.partialorder %v432_v20, 0.5  ;;  %v4080_v21 = vpop.f32.mrb[43].mxu0 }
 0x134   :  { %vm3540_vm1 = vmpackc.low %vm568_vm13, %vm567_vm5 }
 0x135   :  { %3920 = vmatprep.subr.msk.bf16.mxu0 %vm3540_vm1, %v4523_v13  ;;  %4321 = vmatprep.subr.msk.bf16.mxu1 %vm3540_vm1, %v4523_v13 }
 0x136   :  { %3921 = vmatpush3.bf16.msk.msra.mxu0 %vm4764_vm11, %v4523_v13  ;;  %4329 = vmatpush3.bf16.msk.msra.mxu1 %vm4764_vm11, %v4523_v13 }
 0x138   :  { %v437_v22 = vpop.f32.mrb[44].mxu0 }
 0x139   :  { %v4083_v23 = vpop.f32.mrb[45].mxu0  ;;  %vm569_vm8 = vcmp.ge.f32.partialorder %v437_v22, 0.5 }
 0x13a   :  { %v440_v24 = vpop.f32.mrb[46].mxu0 }
 0x13b   :  { %vm570_vm3 = vcmp.ge.f32.partialorder %v440_v24, 0.5  ;;  %v4084_v25 = vpop.f32.mrb[47].mxu0 }
 0x13c   :  { %vm3542_vm4 = vmpackc.low %vm570_vm3, %vm569_vm8 }
 0x13d   :  { %3922 = vmatprep.subr.msk.bf16.mxu0 %vm3542_vm4, %v4523_v13  ;;  %4322 = vmatprep.subr.msk.bf16.mxu1 %vm3542_vm4, %v4523_v13 }
 0x13e   :  { %3923 = vmatpush3.bf16.msk.msra.mxu0 %vm4768_vm14, %v4523_v13  ;;  %4330 = vmatpush3.bf16.msk.msra.mxu1 %vm4768_vm14, %v4523_v13 }
 0x140   :  { %v445_v26 = vpop.f32.mrb[48].mxu0 }
 0x141   :  { %v4087_v27 = vpop.f32.mrb[49].mxu0  ;;  %vm571_vm11 = vcmp.ge.f32.partialorder %v445_v26, 0.5 }
 0x142   :  { %v448_v28 = vpop.f32.mrb[50].mxu0 }
 0x143   :  { %vm572_vm7 = vcmp.ge.f32.partialorder %v448_v28, 0.5  ;;  %v4088_v29 = vpop.f32.mrb[51].mxu0 }
 0x144   :  { %vm3544_vm9 = vmpackc.low %vm572_vm7, %vm571_vm11 }
 0x145   :  { %3924 = vmatprep.subr.msk.bf16.mxu0 %vm3544_vm9, %v4523_v13  ;;  %4323 = vmatprep.subr.msk.bf16.mxu1 %vm3544_vm9, %v4523_v13 }
 0x146   :  { %3925 = vmatpush3.bf16.msk.msra.mxu0 %vm4772_vm2, %v4523_v13  ;;  %4331 = vmatpush3.bf16.msk.msra.mxu1 %vm4772_vm2, %v4523_v13 }
 0x148   :  { %v453_v30 = vpop.f32.mrb[52].mxu0 }
 0x149   :  { %v4091_v31 = vpop.f32.mrb[53].mxu0  ;;  %vm573_vm14 = vcmp.ge.f32.partialorder %v453_v30, 0.5 }
 0x14a   :  { %v456_v32 = vpop.f32.mrb[54].mxu0 }
 0x14b   :  { %vm574_vm12 = vcmp.ge.f32.partialorder %v456_v32, 0.5  ;;  %v4092_v33 = vpop.f32.mrb[55].mxu0 }
 0x14c   :  { %vm3546_vm5 = vmpackc.low %vm574_vm12, %vm573_vm14 }
 0x14d   :  { %3926 = vmatprep.subr.msk.bf16.mxu0 %vm3546_vm5, %v4523_v13  ;;  %4324 = vmatprep.subr.msk.bf16.mxu1 %vm3546_vm5, %v4523_v13 }
 0x14e   :  { %3927 = vmatpush3.bf16.msk.msra.mxu0 %vm4776_vm6, %v4523_v13  ;;  %4332 = vmatpush3.bf16.msk.msra.mxu1 %vm4776_vm6, %v4523_v13 }
 0x150   :  { %v461_v34 = vpop.f32.mrb[56].mxu0 }
 0x151   :  { %v4095_v35 = vpop.f32.mrb[57].mxu0  ;;  %vm575_vm2 = vcmp.ge.f32.partialorder %v461_v34, 0.5  ;;  %v4404_v34 = vld [vmem:[%s6370_s2 + $0x8] ss:$16 sps:$4 sm:$0xff]  }
 0x152   :  { %v464_v36 = vpop.f32.mrb[58].mxu0  ;;  %v4407_v35 = vld [vmem:[%s6370_s2 + $0x2c] ss:$16 sps:$4 sm:$0xff]  }
 0x153   :  { %vm576_vm13 = vcmp.ge.f32.partialorder %v464_v36, 0.5  ;;  %v4096_v37 = vpop.f32.mrb[59].mxu0  ;;  %v4409_v36 = vld [vmem:[%s6370_s2 + $0x28] ss:$16 sps:$4 sm:$0xff]  }
 0x154   :  { %vm3548_vm1 = vmpackc.low %vm576_vm13, %vm575_vm2  ;;  %v4410_v37 = vld [vmem:[%s6370_s2 + $0x4c] ss:$16 sps:$4 sm:$0xff]  }
 0x155   :  { %3928 = vmatprep.subr.msk.bf16.mxu0 %vm3548_vm1, %v4523_v13  ;;  %4325 = vmatprep.subr.msk.bf16.mxu1 %vm3548_vm1, %v4523_v13 }
 0x156   :  { %3929 = vmatpush3.bf16.msk.msra.mxu0 %vm4780_vm10, %v4523_v13  ;;  %4333 = vmatpush3.bf16.msk.msra.mxu1 %vm4780_vm10, %v4523_v13 }
 0x158   :  { %v469_v38 = vpop.f32.mrb[60].mxu0 }
 0x159   :  { %v4099_v39 = vpop.f32.mrb[61].mxu0  ;;  %vm577_vm6 = vcmp.ge.f32.partialorder %v469_v38, 0.5  ;;  %v4412_v38 = vld [vmem:[%s6370_s2 + $0x48] ss:$16 sps:$4 sm:$0xff]  }
 0x15a   :  { %v472_v40 = vpop.f32.mrb[62].mxu0  ;;  %v4413_v39 = vld [vmem:[%s6370_s2 + $0x6c] ss:$16 sps:$4 sm:$0xff]  }
 0x15b   :  { %vm578_vm8 = vcmp.ge.f32.partialorder %v472_v40, 0.5  ;;  %v4100_v41 = vpop.f32.mrb[63].mxu0  ;;  %v4415_v40 = vld [vmem:[%s6370_s2 + $0x68] ss:$16 sps:$4 sm:$0xff]  }
 0x15c   :  { %vm3550_vm3 = vmpackc.low %vm578_vm8, %vm577_vm6  ;;  %v4416_v41 = vld [vmem:[%s6370_s2 + $0x8c] ss:$16 sps:$4 sm:$0xff]  }
 0x15d   :  { %3930 = vmatprep.subr.msk.bf16.mxu0 %vm3550_vm3, %v4523_v13  ;;  %4326 = vmatprep.subr.msk.bf16.mxu1 %vm3550_vm3, %v4523_v13 }
 0x15e   :  { %3931 = vmatpush3.bf16.msk.msra.mxu0 %vm4784_vm15, %v4523_v13  ;;  %4334 = vmatpush3.bf16.msk.msra.mxu1 %vm4784_vm15, %v4523_v13 }
 0x15f   :  { %937 = vmatprep.subr.bf16.mxu1 %v4524_v45 }
 0x160   :  { %v477_v46 = vpop.f32.mrb[64].mxu0 }
 0x161   :  { %v4103_v47 = vpop.f32.mrb[65].mxu0  ;;  %890 = vmatmul.mubr.bf16.vlgmr.msra.gmra.mrb[0].mxu1 %v4384_v42  ;;  %882 = vmatmul.mubr.bf16.vlgmr.msra.gmra.mrb[100].mxu0 %v4401_v43  ;;  %vm579_vm10 = vcmp.ge.f32.partialorder %v477_v46, 0.5  ;;  %v4418_v42 = vld [vmem:[%s6370_s2 + $0x88] ss:$16 sps:$4 sm:$0xff]   ;;  %v4419_v43 = vld [vmem:[%s6370_s2 + $0xac] ss:$16 sps:$4 sm:$0xff]  }
 0x162   :  { %v480_v48 = vpop.f32.mrb[66].mxu0  ;;  %897 = vmatprep.mubr.bf16.mxu1 %v4387_v44  ;;  %1748 = vmatprep.mubr.bf16.mxu0 %v4524_v45  ;;  %v695_v44 = vld [vmem:[%s6370_s2 + $0xc8] sm:$0x11] }
 0x163   :  { %vm580_vm4 = vcmp.ge.f32.partialorder %v480_v48, 0.5  ;;  %v4104_v49 = vpop.f32.mrb[67].mxu0  ;;  %v4421_v46 = vld [vmem:[%s6370_s2 + $0xa8] ss:$16 sps:$4 sm:$0xff]   ;;  %v3519_v47 = vcombine.high %v695_v44, %v695_v44  ;;  %v3518_v48 = vcombine.low %v695_v44, %v695_v44 }
 0x164   :  { %vm3552_vm11 = vmpackc.low %vm580_vm4, %vm579_vm10  ;;  %vm6381_vm10 = vcmask 64512  }
 0x165   :  { %3553 = vmatpush1.bf16.msk.msra.mxu1 %vm3552_vm11, %v4523_v13 }
 0x166   :  { %939 = vmatprep.subr.bf16.mxu1 %v4524_v45 }
 0x168   :  { %v485_v52 = vpop.f32.mrb[68].mxu0 }
 0x169   :  { %v4107_v53 = vpop.f32.mrb[69].mxu0  ;;  %898 = vmatmul.mubr.bf16.gmra.mrb[4].mxu1 %v4389_v50  ;;  %vm581_vm15 = vcmp.ge.f32.partialorder %v485_v52, 0.5 }
 0x16a   :  { %v488_v54 = vpop.f32.mrb[70].mxu0  ;;  %905 = vmatprep.mubr.bf16.mxu1 %v4390_v51 }
 0x16b   :  { %vm582_vm7 = vcmp.ge.f32.partialorder %v488_v54, 0.5  ;;  %v4108_v55 = vpop.f32.mrb[71].mxu0 }
 0x16c   :  { %vm3554_vm9 = vmpackc.low %vm582_vm7, %vm581_vm15 }
 0x16d   :  { %3555 = vmatpush1.bf16.msk.msra.mxu1 %vm3554_vm9, %v4523_v13 }
 0x16e   :  { %941 = vmatprep.subr.bf16.mxu1 %v4524_v45 }
 0x170   :  { %v493_v58 = vpop.f32.mrb[72].mxu0 }
 0x171   :  { %v4111_v59 = vpop.f32.mrb[73].mxu0  ;;  %906 = vmatmul.mubr.bf16.gmra.mrb[8].mxu1 %v4392_v56  ;;  %vm583_vm14 = vcmp.ge.f32.partialorder %v493_v58, 0.5 }
 0x172   :  { %v496_v60 = vpop.f32.mrb[74].mxu0  ;;  %913 = vmatprep.mubr.bf16.mxu1 %v4393_v57 }
 0x173   :  { %vm584_vm12 = vcmp.ge.f32.partialorder %v496_v60, 0.5  ;;  %v4112_v61 = vpop.f32.mrb[75].mxu0 }
 0x174   :  { %vm3556_vm5 = vmpackc.low %vm584_vm12, %vm583_vm14 }
 0x175   :  { %3557 = vmatpush1.bf16.msk.msra.mxu1 %vm3556_vm5, %v4523_v13 }
 0x176   :  { %943 = vmatprep.subr.bf16.mxu1 %v4524_v45 }
 0x178   :  { %v501_v0 = vpop.f32.mrb[76].mxu0 }
 0x179   :  { %v4115_v2 = vpop.f32.mrb[77].mxu0  ;;  %914 = vmatmul.mubr.bf16.gmra.mrb[12].mxu1 %v4395_v62  ;;  %vm585_vm2 = vcmp.ge.f32.partialorder %v501_v0, 0.5 }
 0x17a   :  { %v504_v3 = vpop.f32.mrb[78].mxu0  ;;  %921 = vmatprep.mubr.bf16.mxu1 %v4396_v63 }
 0x17b   :  { %vm586_vm13 = vcmp.ge.f32.partialorder %v504_v3, 0.5  ;;  %v4116_v4 = vpop.f32.mrb[79].mxu0 }
 0x17c   :  { %vm3558_vm1 = vmpackc.low %vm586_vm13, %vm585_vm2 }
 0x17d   :  { %3559 = vmatpush1.bf16.msk.msra.mxu1 %vm3558_vm1, %v4523_v13  ;;  %vm6382_vm1 = vcmask 1043456  }
 0x17e   :  { %945 = vmatprep.subr.bf16.mxu1 %v4524_v45 }
 0x180   :  { %v509_v8 = vpop.f32.mrb[80].mxu0 }
 0x181   :  { %v4119_v9 = vpop.f32.mrb[81].mxu0  ;;  %922 = vmatmul.mubr.bf16.gmra.mrb[16].mxu1 %v4398_v6  ;;  %vm587_vm6 = vcmp.ge.f32.partialorder %v509_v8, 0.5 }
 0x182   :  { %v512_v10 = vpop.f32.mrb[82].mxu0  ;;  %929 = vmatprep.mubr.bf16.mxu1 %v3517_v7 }
 0x183   :  { %vm588_vm8 = vcmp.ge.f32.partialorder %v512_v10, 0.5  ;;  %v4120_v11 = vpop.f32.mrb[83].mxu0 }
 0x184   :  { %vm3560_vm3 = vmpackc.low %vm588_vm8, %vm587_vm6  ;;  %vm1320_vm6 = vcmask 1040384   ;;  %vm1232_vm8 = vcmask 801792  }
 0x185   :  { %3561 = vmatpush1.bf16.msk.msra.mxu1 %vm3560_vm3, %v4523_v13 }
 0x186   :  { %947 = vmatprep.subr.bf16.mxu1 %v4524_v45 }
 0x188   :  { %v517_v15 = vpop.f32.mrb[84].mxu0 }
 0x189   :  { %v4123_v16 = vpop.f32.mrb[85].mxu0  ;;  %930 = vmatmul.mubr.bf16.gmra.mrb[20].mxu1 %v3516_v12  ;;  %vm589_vm4 = vcmp.ge.f32.partialorder %v517_v15, 0.5 }
 0x18a   :  { %v520_v17 = vpop.f32.mrb[86].mxu0  ;;  %3568 = vmatprep.mubr.msk.bf16.mxu1 %vm6381_vm10, %v4406_v14 }
 0x18b   :  { %vm590_vm11 = vcmp.ge.f32.partialorder %v520_v17, 0.5  ;;  %v4124_v18 = vpop.f32.mrb[87].mxu0 }
 0x18c   :  { %vm3562_vm15 = vmpackc.low %vm590_vm11, %vm589_vm4 }
 0x18d   :  { %3563 = vmatpush1.bf16.msk.msra.mxu1 %vm3562_vm15, %v4523_v13 }
 0x18e   :  { %949 = vmatprep.subr.bf16.mxu1 %v4524_v45 }
 0x190   :  { %v525_v19 = vpop.f32.mrb[88].mxu0 }
 0x191   :  { %v4127_v20 = vpop.f32.mrb[89].mxu0  ;;  %vm591_vm7 = vcmp.ge.f32.partialorder %v525_v19, 0.5 }
 0x192   :  { %v528_v21 = vpop.f32.mrb[90].mxu0 }
 0x193   :  { %vm592_vm9 = vcmp.ge.f32.partialorder %v528_v21, 0.5  ;;  %v4128_v22 = vpop.f32.mrb[91].mxu0 }
 0x194   :  { %vm3564_vm14 = vmpackc.low %vm592_vm9, %vm591_vm7 }
 0x195   :  { %3565 = vmatpush1.bf16.msk.msra.mxu1 %vm3564_vm14, %v4523_v13 }
 0x196   :  { %951 = vmatprep.subr.bf16.mxu1 %v4524_v45 }
 0x198   :  { %v533_v23 = vpop.f32.mrb[92].mxu0 }
 0x199   :  { %v4131_v24 = vpop.f32.mrb[93].mxu0  ;;  %vm593_vm12 = vcmp.ge.f32.partialorder %v533_v23, 0.5 }
 0x19a   :  { %v536_v25 = vpop.f32.mrb[94].mxu0 }
 0x19b   :  { %vm594_vm5 = vcmp.ge.f32.partialorder %v536_v25, 0.5  ;;  %v4132_v26 = vpop.f32.mrb[95].mxu0 }
 0x19c   :  { %vm3566_vm2 = vmpackc.low %vm594_vm5, %vm593_vm12 }
 0x19d   :  { %3567 = vmatpush1.bf16.msk.msra.mxu1 %vm3566_vm2, %v4523_v13 }
 0x19e   :  { %953 = vmatprep.subr.bf16.mxu1 %v4524_v45 }
 0x1a0   :  { %v541_v27 = vpop.f32.mrb[96].mxu0 }
 0x1a1   :  { %vm595_vm13 = vcmp.ge.f32.partialorder %v541_v27, 0.5  ;;  %v4135_v28 = vpop.f32.mrb[97].mxu0 }
 0x1a2   :  { %v644_v29 = vsel %vm595_vm13, 1.0, %v4521_v1  ;;  %v544_v30 = vpop.f32.mrb[98].mxu0 }
 0x1a3   :  { %v669_v31 = vpack.c.bf16 %v644_v29, %v644_v29  ;;  %v4136_v32 = vpop.f32.mrb[99].mxu0 }
 0x1a5   :  { %v847_v33 = vsel %vm6382_vm1, %v669_v31, 0 }
 0x1a6   :  { %954 = vmatpush1.bf16.msra.mxu1 %v847_v33 }
 0x1a7   :  { %4137 = vmatprep.subr.bf16.mxu1 %v4521_v1 }
 0x1a9   :  { %970 = vmatmul.mubr.bf16.vlgmr.msra.gmra.mrb[24].mxu1 %v4404_v34 }
 0x1aa   :  { %3569 = vmatprep.mubr.msk.bf16.mxu1 %vm6381_vm10, %v4407_v35 }
 0x1b1   :  { %978 = vmatmul.mubr.bf16.gmra.mrb[28].mxu1 %v4409_v36 }
 0x1b2   :  { %3570 = vmatprep.mubr.msk.bf16.mxu1 %vm6381_vm10, %v4410_v37 }
 0x1b9   :  { %986 = vmatmul.mubr.bf16.gmra.mrb[32].mxu1 %v4412_v38 }
 0x1ba   :  { %3571 = vmatprep.mubr.msk.bf16.mxu1 %vm6381_vm10, %v4413_v39 }
 0x1c1   :  { %994 = vmatmul.mubr.bf16.gmra.mrb[36].mxu1 %v4415_v40 }
 0x1c2   :  { %3572 = vmatprep.mubr.msk.bf16.mxu1 %vm6381_vm10, %v4416_v41 }
 0x1c9   :  { %1002 = vmatmul.mubr.bf16.gmra.mrb[40].mxu1 %v4418_v42 }
 0x1ca   :  { %3573 = vmatprep.mubr.msk.bf16.mxu1 %vm6381_vm10, %v4419_v43 }
 0x1d1   :  { %1010 = vmatmul.mubr.bf16.gmra.mrb[44].mxu1 %v4421_v46 }
 0x1d2   :  { %3574 = vmatprep.mubr.msk.bf16.mxu1 %vm6381_vm10, %v3519_v47 }
 0x1d9   :  { %1018 = vmatmul.mubr.bf16.gmra.mrb[48].mxu1 %v3518_v48 }
 0x1da   :  { %4151 = vmatprep.mubr.msk.bf16.mxu1 %vm4522_vm0, %v4521_v1 }
 0x234   :  { %v3938_v49 = vpop.f32.mrb[0].mxu1  ;;  %v3932_v50 = vpop.f32.mrb[100].mxu0 }
 0x235   :  { %v3939_v51 = vpop.f32.mrb[1].mxu1  ;;  %v3933_v52 = vpop.f32.mrb[101].mxu0 }
 0x236   :  { %v3940_v53 = vadd.f32 %v3939_v51, %v3938_v49  ;;  %v3941_v54 = vpop.f32.mrb[2].mxu1  ;;  %v3934_v55 = vadd.f32 %v3933_v52, %v3932_v50  ;;  %v3935_v56 = vpop.f32.mrb[102].mxu0 }
 0x237   :  { %v3942_v57 = vpop.f32.mrb[3].mxu1  ;;  %v3936_v58 = vpop.f32.mrb[103].mxu0 }
 0x238   :  { %v3943_v59 = vadd.f32 %v3942_v57, %v3941_v54  ;;  %v3937_v60 = vadd.f32 %v3936_v58, %v3935_v56 }
 0x23c   :  { %v3944_v61 = vpop.f32.mrb[4].mxu1 }
 0x23d   :  { %v3945_v62 = vpop.f32.mrb[5].mxu1 }
 0x23e   :  { %v3946_v63 = vadd.f32 %v3945_v62, %v3944_v61  ;;  %v3947_v0 = vpop.f32.mrb[6].mxu1 }
 0x23f   :  { %v3948_v2 = vpop.f32.mrb[7].mxu1 }
 0x240   :  { %v3949_v3 = vadd.f32 %v3948_v2, %v3947_v0 }
 0x244   :  { %v3950_v4 = vpop.f32.mrb[8].mxu1 }
 0x245   :  { %v3951_v5 = vpop.f32.mrb[9].mxu1 }
 0x246   :  { %v3952_v6 = vadd.f32 %v3951_v5, %v3950_v4  ;;  %v3953_v7 = vpop.f32.mrb[10].mxu1 }
 0x247   :  { %v3954_v8 = vpop.f32.mrb[11].mxu1 }
 0x248   :  { %v3955_v9 = vadd.f32 %v3954_v8, %v3953_v7 }
 0x24c   :  { %v3956_v10 = vpop.f32.mrb[12].mxu1 }
 0x24d   :  { %v3957_v11 = vpop.f32.mrb[13].mxu1 }
 0x24e   :  { %v3958_v12 = vadd.f32 %v3957_v11, %v3956_v10  ;;  %v3959_v14 = vpop.f32.mrb[14].mxu1 }
 0x24f   :  { %v3960_v15 = vpop.f32.mrb[15].mxu1 }
 0x250   :  { %v3961_v16 = vadd.f32 %v3960_v15, %v3959_v14 }
 0x254   :  { %v3962_v17 = vpop.f32.mrb[16].mxu1 }
 0x255   :  { %v3963_v18 = vpop.f32.mrb[17].mxu1 }
 0x256   :  { %v3964_v19 = vadd.f32 %v3963_v18, %v3962_v17  ;;  %v3965_v20 = vpop.f32.mrb[18].mxu1  ;;  %v4425_v17 = vld [vmem:[%s6371_s3 + $0x8] sm:$0xff]   ;;  %v4426_v18 = vld [vmem:[%s6371_s3 + $0x10] sm:$0xff]  }
 0x257   :  { %v3966_v21 = vpop.f32.mrb[19].mxu1 }
 0x258   :  { %v3967_v22 = vadd.f32 %v3966_v21, %v3965_v20  ;;  %v4428_v20 = vld [vmem:[%s6371_s3 + $0x20] sm:$0xff]   ;;  %v4429_v21 = vld [vmem:[%s6371_s3 + $0x28] sm:$0xff]  }
 0x25c   :  { %v3968_v23 = vpop.f32.mrb[20].mxu1 }
 0x25d   :  { %v3969_v24 = vpop.f32.mrb[21].mxu1 }
 0x25e   :  { %v3970_v25 = vadd.f32 %v3969_v24, %v3968_v23  ;;  %v3971_v26 = vpop.f32.mrb[22].mxu1  ;;  %v4431_v23 = vld [vmem:[%s6371_s3 + $0x38] sm:$0xff]   ;;  %v4432_v24 = vld [vmem:[%s6371_s3 + $0x40] sm:$0xff]  }
 0x25f   :  { %v3972_v27 = vpop.f32.mrb[23].mxu1  ;;  %v4434_v26 = vld [vmem:[%s6371_s3 + $0x50] sm:$0xff]  }
 0x260   :  { %v1617_v27 = vld [vmem:[%s6372_s4] sm:$0xff] }
 0x27c   :  { %v971_v28 = vpop.f32.mrb[24].mxu1 }
 0x27d   :  { %v972_v29 = vadd.f32 %v3934_v55, %v971_v28  ;;  %v973_v30 = vpop.f32.mrb[25].mxu1  ;;  %v3634_v28 = vcombine.high %v1617_v27, %v1617_v27 }
 0x27e   :  { %v974_v31 = vpop.f32.mrb[26].mxu1  ;;  %v4435_v30 = vld [vmem:[%s6371_s3 + $0x58] sm:$0xff]  }
 0x27f   :  { %v975_v32 = vadd.f32 %v3937_v60, %v974_v31  ;;  %v976_v33 = vpop.f32.mrb[27].mxu1  ;;  %3635 = vmatprep.subr.msk.bf16.mxu0 %vm6382_vm1, %v3634_v28 }
 0x280   :  { %v4437_v33 = vld [vmem:[%s6371_s3 + $0x68] sm:$0xff]  }
 0x281   :  { %v1025_v34 = vpack.c.bf16 %v975_v32, %v972_v29  ;;  %v3633_v29 = vcombine.low %v1617_v27, %v1617_v27  ;;  %v4436_v32 = vld [vmem:[%s6371_s3 + $0x60] sm:$0xff]  }
 0x283   :  { %4138 = vmatpush3.bf16.msra.mxu1 %v1025_v34  ;;  %v1711_v31 = vsel %vm6382_vm1, %v3633_v29, 0  ;;  %v4438_v34 = vld [vmem:[%s6371_s3 + $0x70] sm:$0xff]  }
 0x284   :  { %v979_v35 = vpop.f32.mrb[28].mxu1  ;;  %4139 = vmatprep.subr.bf16.mxu1 %v4521_v1  ;;  %1717 = vmatpush1.bf16.msra.mxu0 %v1711_v31 }
 0x285   :  { %v980_v36 = vadd.f32 %v3940_v53, %v979_v35  ;;  %v981_v37 = vpop.f32.mrb[29].mxu1  ;;  %3017 = vmatprep.subr.bf16.mxu0 %v4524_v45  ;;  %v4439_v35 = vld [vmem:[%s6371_s3 + $0x78] sm:$0xff]  }
 0x286   :  { %v982_v38 = vpop.f32.mrb[30].mxu1  ;;  %v4441_v37 = vld [vmem:[%s6371_s3 + $0x88] sm:$0xff]  }
 0x287   :  { %v983_v39 = vadd.f32 %v3943_v59, %v982_v38  ;;  %v984_v40 = vpop.f32.mrb[31].mxu1  ;;  %v4442_v38 = vld [vmem:[%s6371_s3 + $0x90] sm:$0xff]  }
 0x288   :  { %v4444_v40 = vld [vmem:[%s6371_s3 + $0xa0] sm:$0xff]  }
 0x289   :  { %v1026_v41 = vpack.c.bf16 %v983_v39, %v980_v36  ;;  %v4440_v36 = vld [vmem:[%s6371_s3 + $0x80] sm:$0xff]   ;;  %v4443_v39 = vld [vmem:[%s6371_s3 + $0x98] sm:$0xff]  }
 0x28b   :  { %4140 = vmatpush3.bf16.msra.mxu1 %v1026_v41  ;;  %v4445_v41 = vld [vmem:[%s6371_s3 + $0xa8] sm:$0xff]  }
 0x28c   :  { %v987_v42 = vpop.f32.mrb[32].mxu1  ;;  %4141 = vmatprep.subr.bf16.mxu1 %v4521_v1 }
 0x28d   :  { %v988_v43 = vadd.f32 %v3946_v63, %v987_v42  ;;  %v989_v44 = vpop.f32.mrb[33].mxu1  ;;  %v4446_v42 = vld [vmem:[%s6371_s3 + $0xb0] sm:$0xff]  }
 0x28e   :  { %v990_v46 = vpop.f32.mrb[34].mxu1  ;;  %v4448_v44 = vld [vmem:[%s6371_s3 + $0xc0] sm:$0xff]  }
 0x28f   :  { %v991_v47 = vadd.f32 %v3949_v3, %v990_v46  ;;  %v992_v48 = vpop.f32.mrb[35].mxu1  ;;  %v4449_v46 = vld [vmem:[%s6371_s3 + $0xc8] sm:$0xff]  }
 0x291   :  { %v1027_v49 = vpack.c.bf16 %v991_v47, %v988_v43  ;;  %v4447_v43 = vld [vmem:[%s6371_s3 + $0xb8] sm:$0xff]   ;;  %v4450_v47 = vld [vmem:[%s6371_s3 + $0xd0] sm:$0xff]  }
 0x293   :  { %4142 = vmatpush3.bf16.msra.mxu1 %v1027_v49 }
 0x294   :  { %v995_v50 = vpop.f32.mrb[36].mxu1  ;;  %4143 = vmatprep.subr.bf16.mxu1 %v4521_v1 }
 0x295   :  { %v996_v51 = vadd.f32 %v3952_v6, %v995_v50  ;;  %v997_v52 = vpop.f32.mrb[37].mxu1  ;;  %v4453_v50 = vld [vmem:[%s6371_s3 + $0xd8] sm:$0xff]  }
 0x296   :  { %v998_v53 = vpop.f32.mrb[38].mxu1 }
 0x297   :  { %v999_v54 = vadd.f32 %v3955_v9, %v998_v53  ;;  %v1000_v55 = vpop.f32.mrb[39].mxu1 }
 0x299   :  { %v1028_v56 = vpack.c.bf16 %v999_v54, %v996_v51 }
 0x29b   :  { %4144 = vmatpush3.bf16.msra.mxu1 %v1028_v56  ;;  %v4454_v56 = vld [vmem:[%s6371_s3 + $0xe0] ss:$0 sps:$4 sm:$0x11]  }
 0x29c   :  { %v1003_v57 = vpop.f32.mrb[40].mxu1  ;;  %4145 = vmatprep.subr.bf16.mxu1 %v4521_v1 }
 0x29d   :  { %v1004_v58 = vadd.f32 %v3958_v12, %v1003_v57  ;;  %v1005_v59 = vpop.f32.mrb[41].mxu1 }
 0x29e   :  { %v1006_v60 = vpop.f32.mrb[42].mxu1 }
 0x29f   :  { %v1007_v61 = vadd.f32 %v3961_v16, %v1006_v60  ;;  %v1008_v62 = vpop.f32.mrb[43].mxu1  ;;  %v4424_v16 = vld [vmem:[%s6371_s3] sm:$0xff]  }
 0x2a1   :  { %v1029_v63 = vpack.c.bf16 %v1007_v61, %v1004_v58 }
 0x2a3   :  { %4146 = vmatpush3.bf16.msra.mxu1 %v1029_v63 }
 0x2a4   :  { %v1011_v0 = vpop.f32.mrb[44].mxu1  ;;  %4147 = vmatprep.subr.bf16.mxu1 %v4521_v1 }
 0x2a5   :  { %v1012_v2 = vadd.f32 %v3964_v19, %v1011_v0  ;;  %v1013_v3 = vpop.f32.mrb[45].mxu1  ;;  %v4427_v19 = vld [vmem:[%s6371_s3 + $0x18] sm:$0xff]  }
 0x2a6   :  { %v1014_v4 = vpop.f32.mrb[46].mxu1 }
 0x2a7   :  { %v1015_v5 = vadd.f32 %v3967_v22, %v1014_v4  ;;  %v1016_v6 = vpop.f32.mrb[47].mxu1  ;;  %v4430_v22 = vld [vmem:[%s6371_s3 + $0x30] sm:$0xff]  }
 0x2a9   :  { %v1030_v7 = vpack.c.bf16 %v1015_v5, %v1012_v2 }
 0x2ab   :  { %4148 = vmatpush3.bf16.msra.mxu1 %v1030_v7 }
 0x2ac   :  { %v1019_v8 = vpop.f32.mrb[48].mxu1  ;;  %4149 = vmatprep.subr.bf16.mxu1 %v4521_v1 }
 0x2ad   :  { %v1020_v9 = vadd.f32 %v3970_v25, %v1019_v8  ;;  %v1021_v10 = vpop.f32.mrb[49].mxu1  ;;  %v4433_v25 = vld [vmem:[%s6371_s3 + $0x48] sm:$0xff]  }
 0x2ae   :  { %v1022_v11 = vpop.f32.mrb[50].mxu1 }
 0x2af   :  { %v1031_v12 = vpack.c.bf16 %v1020_v9, %v1020_v9  ;;  %v1023_v14 = vpop.f32.mrb[51].mxu1 }
 0x2b1   :  { %v1322_v15 = vsel %vm1320_vm6, %v1031_v12, 0 }
 0x2b2   :  { %4150 = vmatpush3.bf16.msra.mxu1 %v1322_v15 }
 0x2b5   :  { %4152 = vmatmul.mubr.msk.bf16.vlgmr.msra.gmra.mrb[52].mxu1 %vm1232_vm8, %v4424_v16 }
 0x2b6   :  { %4155 = vmatprep.mubr.msk.bf16.mxu1 %vm4522_vm0, %v4521_v1 }
 0x2bd   :  { %4156 = vmatmul.mubr.msk.bf16.gmra.mrb[56].mxu1 %vm1232_vm8, %v4425_v17 }
 0x2be   :  { %4159 = vmatprep.mubr.msk.bf16.mxu1 %vm4522_vm0, %v4521_v1 }
 0x2c5   :  { %4160 = vmatmul.mubr.msk.bf16.gmra.mrb[60].mxu1 %vm1232_vm8, %v4426_v18 }
 0x2c6   :  { %4163 = vmatprep.mubr.msk.bf16.mxu1 %vm4522_vm0, %v4521_v1 }
 0x2cd   :  { %4164 = vmatmul.mubr.msk.bf16.gmra.mrb[64].mxu1 %vm1232_vm8, %v4427_v19 }
 0x2ce   :  { %4167 = vmatprep.mubr.msk.bf16.mxu1 %vm4522_vm0, %v4521_v1 }
 0x2d5   :  { %4168 = vmatmul.mubr.msk.bf16.gmra.mrb[68].mxu1 %vm1232_vm8, %v4428_v20 }
 0x2d6   :  { %4171 = vmatprep.mubr.msk.bf16.mxu1 %vm4522_vm0, %v4521_v1 }
 0x2dd   :  { %4172 = vmatmul.mubr.msk.bf16.gmra.mrb[72].mxu1 %vm1232_vm8, %v4429_v21 }
 0x2de   :  { %4175 = vmatprep.mubr.msk.bf16.mxu1 %vm4522_vm0, %v4521_v1 }
 0x2e5   :  { %4176 = vmatmul.mubr.msk.bf16.gmra.mrb[76].mxu1 %vm1232_vm8, %v4430_v22 }
 0x2e6   :  { %4179 = vmatprep.mubr.msk.bf16.mxu1 %vm4522_vm0, %v4521_v1 }
 0x2ed   :  { %4180 = vmatmul.mubr.msk.bf16.gmra.mrb[80].mxu1 %vm1232_vm8, %v4431_v23 }
 0x2ee   :  { %4183 = vmatprep.mubr.msk.bf16.mxu1 %vm4522_vm0, %v4521_v1 }
 0x2f5   :  { %4184 = vmatmul.mubr.msk.bf16.gmra.mrb[84].mxu1 %vm1232_vm8, %v4432_v24 }
 0x2f6   :  { %4187 = vmatprep.mubr.msk.bf16.mxu1 %vm4522_vm0, %v4521_v1 }
 0x2fd   :  { %4188 = vmatmul.mubr.msk.bf16.gmra.mrb[88].mxu1 %vm1232_vm8, %v4433_v25 }
 0x2fe   :  { %4191 = vmatprep.mubr.msk.bf16.mxu1 %vm4522_vm0, %v4521_v1 }
 0x305   :  { %4192 = vmatmul.mubr.msk.bf16.gmra.mrb[92].mxu1 %vm1232_vm8, %v4434_v26 }
 0x306   :  { %4195 = vmatprep.mubr.msk.bf16.mxu1 %vm4522_vm0, %v4521_v1 }
 0x30d   :  { %4196 = vmatmul.mubr.msk.bf16.gmra.mrb[96].mxu1 %vm1232_vm8, %v4435_v30 }
 0x30e   :  { %4199 = vmatprep.mubr.msk.bf16.mxu1 %vm4522_vm0, %v4521_v1 }
 0x315   :  { %4200 = vmatmul.mubr.msk.bf16.gmra.mrb[100].mxu1 %vm1232_vm8, %v4436_v32 }
 0x316   :  { %4203 = vmatprep.mubr.msk.bf16.mxu1 %vm4522_vm0, %v4521_v1 }
 0x31d   :  { %4204 = vmatmul.mubr.msk.bf16.gmra.mrb[104].mxu1 %vm1232_vm8, %v4437_v33 }
 0x31e   :  { %4207 = vmatprep.mubr.msk.bf16.mxu1 %vm4522_vm0, %v4521_v1 }
 0x325   :  { %4208 = vmatmul.mubr.msk.bf16.gmra.mrb[108].mxu1 %vm1232_vm8, %v4438_v34 }
 0x326   :  { %4211 = vmatprep.mubr.msk.bf16.mxu1 %vm4522_vm0, %v4521_v1 }
 0x32d   :  { %4212 = vmatmul.mubr.msk.bf16.gmra.mrb[112].mxu1 %vm1232_vm8, %v4439_v35 }
 0x32e   :  { %4215 = vmatprep.mubr.msk.bf16.mxu1 %vm4522_vm0, %v4521_v1 }
 0x335   :  { %4216 = vmatmul.mubr.msk.bf16.gmra.mrb[116].mxu1 %vm1232_vm8, %v4440_v36 }
 0x336   :  { %4219 = vmatprep.mubr.msk.bf16.mxu1 %vm4522_vm0, %v4521_v1 }
 0x33d   :  { %4220 = vmatmul.mubr.msk.bf16.gmra.mrb[120].mxu1 %vm1232_vm8, %v4441_v37 }
 0x33e   :  { %4223 = vmatprep.mubr.msk.bf16.mxu1 %vm4522_vm0, %v4521_v1 }
 0x345   :  { %4224 = vmatmul.mubr.msk.bf16.gmra.mrb[124].mxu1 %vm1232_vm8, %v4442_v38 }
 0x346   :  { %4227 = vmatprep.mubr.msk.bf16.mxu1 %vm4522_vm0, %v4521_v1 }
 0x34d   :  { %4228 = vmatmul.mubr.msk.bf16.gmra.mrb[128].mxu1 %vm1232_vm8, %v4443_v39 }
 0x34e   :  { %4231 = vmatprep.mubr.msk.bf16.mxu1 %vm4522_vm0, %v4521_v1 }
 0x355   :  { %4232 = vmatmul.mubr.msk.bf16.gmra.mrb[132].mxu1 %vm1232_vm8, %v4444_v40 }
 0x356   :  { %4235 = vmatprep.mubr.msk.bf16.mxu1 %vm4522_vm0, %v4521_v1 }
 0x35d   :  { %4236 = vmatmul.mubr.msk.bf16.gmra.mrb[136].mxu1 %vm1232_vm8, %v4445_v41 }
 0x35e   :  { %4239 = vmatprep.mubr.msk.bf16.mxu1 %vm4522_vm0, %v4521_v1 }
 0x365   :  { %4240 = vmatmul.mubr.msk.bf16.gmra.mrb[140].mxu1 %vm1232_vm8, %v4446_v42 }
 0x366   :  { %4243 = vmatprep.mubr.msk.bf16.mxu1 %vm4522_vm0, %v4521_v1 }
 0x36d   :  { %4244 = vmatmul.mubr.msk.bf16.gmra.mrb[144].mxu1 %vm1232_vm8, %v4447_v43 }
 0x36e   :  { %4247 = vmatprep.mubr.msk.bf16.mxu1 %vm4522_vm0, %v4521_v1 }
 0x375   :  { %4248 = vmatmul.mubr.msk.bf16.gmra.mrb[148].mxu1 %vm1232_vm8, %v4448_v44 }
 0x376   :  { %4251 = vmatprep.mubr.msk.bf16.mxu1 %vm4522_vm0, %v4521_v1 }
 0x37d   :  { %4252 = vmatmul.mubr.msk.bf16.gmra.mrb[152].mxu1 %vm1232_vm8, %v4449_v46 }
 0x37e   :  { %4255 = vmatprep.mubr.msk.bf16.mxu1 %vm4522_vm0, %v4521_v1 }
 0x385   :  { %4256 = vmatmul.mubr.msk.bf16.gmra.mrb[156].mxu1 %vm1232_vm8, %v4450_v47 }
 0x386   :  { %4259 = vmatprep.mubr.msk.bf16.mxu1 %vm4522_vm0, %v4521_v1 }
 0x388   :  { %v1358_v48 = vpop.f32.mrb[52].mxu1 }
 0x389   :  { %v4153_v49 = vpop.f32.mrb[53].mxu1 }
 0x38a   :  { %v1361_v51 = vpop.f32.mrb[54].mxu1 }
 0x38b   :  { %v1588_v52 = vpack.c.bf16 %v1361_v51, %v1358_v48  ;;  %v4154_v53 = vpop.f32.mrb[55].mxu1 }
 0x38d   :  { %4260 = vmatmul.mubr.msk.bf16.gmra.mrb[160].mxu1 %vm1232_vm8, %v4453_v50  ;;  %3636 = vmatmul.mubr.msk.bf16.vlgmr.msra.gmra.mrb[104].mxu0 %vm6381_vm10, %v1588_v52 }
 0x38e   :  { %1758 = vmatprep.mubr.bf16.mxu0 %v4524_v45  ;;  %4263 = vmatprep.mubr.msk.bf16.mxu1 %vm4522_vm0, %v4521_v1 }
 0x390   :  { %v1366_v54 = vpop.f32.mrb[56].mxu1 }
 0x391   :  { %v4157_v55 = vpop.f32.mrb[57].mxu1 }
 0x392   :  { %v1369_v57 = vpop.f32.mrb[58].mxu1 }
 0x393   :  { %v1589_v58 = vpack.c.bf16 %v1369_v57, %v1366_v54  ;;  %v4158_v59 = vpop.f32.mrb[59].mxu1 }
 0x395   :  { %3637 = vmatmul.mubr.msk.bf16.gmra.mrb[108].mxu0 %vm6381_vm10, %v1589_v58  ;;  %4264 = vmatmul.mubr.msk.bf16.gmra.mrb[164].mxu1 %vm1232_vm8, %v4454_v56 }
 0x396   :  { %1768 = vmatprep.mubr.bf16.mxu0 %v4524_v45 }
 0x398   :  { %v1374_v60 = vpop.f32.mrb[60].mxu1 }
 0x399   :  { %v4161_v61 = vpop.f32.mrb[61].mxu1 }
 0x39a   :  { %v1377_v62 = vpop.f32.mrb[62].mxu1 }
 0x39b   :  { %v1590_v63 = vpack.c.bf16 %v1377_v62, %v1374_v60  ;;  %v4162_v0 = vpop.f32.mrb[63].mxu1 }
 0x39d   :  { %3638 = vmatmul.mubr.msk.bf16.gmra.mrb[112].mxu0 %vm6381_vm10, %v1590_v63 }
 0x39e   :  { %1778 = vmatprep.mubr.bf16.mxu0 %v4524_v45 }
 0x3a0   :  { %v1382_v2 = vpop.f32.mrb[64].mxu1 }
 0x3a1   :  { %v4165_v3 = vpop.f32.mrb[65].mxu1 }
 0x3a2   :  { %v1385_v4 = vpop.f32.mrb[66].mxu1 }
 0x3a3   :  { %v1591_v5 = vpack.c.bf16 %v1385_v4, %v1382_v2  ;;  %v4166_v6 = vpop.f32.mrb[67].mxu1 }
 0x3a5   :  { %3639 = vmatmul.mubr.msk.bf16.gmra.mrb[116].mxu0 %vm6381_vm10, %v1591_v5 }
 0x3a6   :  { %1788 = vmatprep.mubr.bf16.mxu0 %v4524_v45 }
 0x3a8   :  { %v1390_v7 = vpop.f32.mrb[68].mxu1 }
 0x3a9   :  { %v4169_v8 = vpop.f32.mrb[69].mxu1 }
 0x3aa   :  { %v1393_v9 = vpop.f32.mrb[70].mxu1 }
 0x3ab   :  { %v1592_v10 = vpack.c.bf16 %v1393_v9, %v1390_v7  ;;  %v4170_v11 = vpop.f32.mrb[71].mxu1 }
 0x3ad   :  { %3640 = vmatmul.mubr.msk.bf16.gmra.mrb[120].mxu0 %vm6381_vm10, %v1592_v10 }
 0x3ae   :  { %1798 = vmatprep.mubr.bf16.mxu0 %v4524_v45 }
 0x3b0   :  { %v1398_v12 = vpop.f32.mrb[72].mxu1 }
 0x3b1   :  { %v4173_v14 = vpop.f32.mrb[73].mxu1 }
 0x3b2   :  { %v1401_v15 = vpop.f32.mrb[74].mxu1 }
 0x3b3   :  { %v1593_v16 = vpack.c.bf16 %v1401_v15, %v1398_v12  ;;  %v4174_v17 = vpop.f32.mrb[75].mxu1 }
 0x3b5   :  { %3641 = vmatmul.mubr.msk.bf16.gmra.mrb[124].mxu0 %vm6381_vm10, %v1593_v16 }
 0x3b6   :  { %1808 = vmatprep.mubr.bf16.mxu0 %v4524_v45 }
 0x3b8   :  { %v1406_v18 = vpop.f32.mrb[76].mxu1 }
 0x3b9   :  { %v4177_v19 = vpop.f32.mrb[77].mxu1 }
 0x3ba   :  { %v1409_v20 = vpop.f32.mrb[78].mxu1 }
 0x3bb   :  { %v1594_v21 = vpack.c.bf16 %v1409_v20, %v1406_v18  ;;  %v4178_v22 = vpop.f32.mrb[79].mxu1 }
 0x3bd   :  { %3642 = vmatmul.mubr.msk.bf16.gmra.mrb[128].mxu0 %vm6381_vm10, %v1594_v21 }
 0x3be   :  { %1818 = vmatprep.mubr.bf16.mxu0 %v4524_v45 }
 0x3c0   :  { %v1414_v23 = vpop.f32.mrb[80].mxu1 }
 0x3c1   :  { %v4181_v24 = vpop.f32.mrb[81].mxu1 }
 0x3c2   :  { %v1417_v25 = vpop.f32.mrb[82].mxu1 }
 0x3c3   :  { %v1595_v26 = vpack.c.bf16 %v1417_v25, %v1414_v23  ;;  %v4182_v27 = vpop.f32.mrb[83].mxu1 }
 0x3c5   :  { %3643 = vmatmul.mubr.msk.bf16.gmra.mrb[132].mxu0 %vm6381_vm10, %v1595_v26 }
 0x3c6   :  { %1828 = vmatprep.mubr.bf16.mxu0 %v4524_v45 }
 0x3c8   :  { %v1422_v28 = vpop.f32.mrb[84].mxu1 }
 0x3c9   :  { %v4185_v29 = vpop.f32.mrb[85].mxu1 }
 0x3ca   :  { %v1425_v30 = vpop.f32.mrb[86].mxu1 }
 0x3cb   :  { %v1596_v31 = vpack.c.bf16 %v1425_v30, %v1422_v28  ;;  %v4186_v32 = vpop.f32.mrb[87].mxu1 }
 0x3cd   :  { %3644 = vmatmul.mubr.msk.bf16.gmra.mrb[136].mxu0 %vm6381_vm10, %v1596_v31 }
 0x3ce   :  { %1838 = vmatprep.mubr.bf16.mxu0 %v4524_v45 }
 0x3d0   :  { %v1430_v33 = vpop.f32.mrb[88].mxu1 }
 0x3d1   :  { %v4189_v34 = vpop.f32.mrb[89].mxu1 }
 0x3d2   :  { %v1433_v35 = vpop.f32.mrb[90].mxu1 }
 0x3d3   :  { %v1597_v36 = vpack.c.bf16 %v1433_v35, %v1430_v33  ;;  %v4190_v37 = vpop.f32.mrb[91].mxu1 }
 0x3d5   :  { %3645 = vmatmul.mubr.msk.bf16.gmra.mrb[140].mxu0 %vm6381_vm10, %v1597_v36 }
 0x3d6   :  { %1848 = vmatprep.mubr.bf16.mxu0 %v4524_v45 }
 0x3d8   :  { %v1438_v38 = vpop.f32.mrb[92].mxu1 }
 0x3d9   :  { %v4193_v39 = vpop.f32.mrb[93].mxu1 }
 0x3da   :  { %v1441_v40 = vpop.f32.mrb[94].mxu1 }
 0x3db   :  { %v1598_v41 = vpack.c.bf16 %v1441_v40, %v1438_v38  ;;  %v4194_v42 = vpop.f32.mrb[95].mxu1 }
 0x3dc   :  { %v2037_v42 = vlaneseq }
 0x3dd   :  { %3646 = vmatmul.mubr.msk.bf16.gmra.mrb[144].mxu0 %vm6381_vm10, %v1598_v41 }
 0x3de   :  { %1858 = vmatprep.mubr.bf16.mxu0 %v4524_v45 }
 0x3e0   :  { %v1446_v43 = vpop.f32.mrb[96].mxu1 }
 0x3e1   :  { %v4197_v44 = vpop.f32.mrb[97].mxu1 }
 0x3e2   :  { %v1449_v46 = vpop.f32.mrb[98].mxu1 }
 0x3e3   :  { %v1599_v47 = vpack.c.bf16 %v1449_v46, %v1446_v43  ;;  %v4198_v48 = vpop.f32.mrb[99].mxu1  ;;  %v5188_v43 = vand.u32 127, %v2037_v42 }
 0x3e5   :  { %3647 = vmatmul.mubr.msk.bf16.gmra.mrb[148].mxu0 %vm6381_vm10, %v1599_v47 }
 0x3e6   :  { %1868 = vmatprep.mubr.bf16.mxu0 %v4524_v45 }
 0x3e8   :  { %v1454_v49 = vpop.f32.mrb[100].mxu1 }
 0x3e9   :  { %v4201_v50 = vpop.f32.mrb[101].mxu1 }
 0x3ea   :  { %v1457_v51 = vpop.f32.mrb[102].mxu1  ;;  %v2154_v50 = vadd.s32 128, %v5188_v43 }
 0x3eb   :  { %v1600_v52 = vpack.c.bf16 %v1457_v51, %v1454_v49  ;;  %v4202_v53 = vpop.f32.mrb[103].mxu1 }
 0x3ec   :  { %v2156_v51 = vcvt.s32.f32 %v2154_v50 }
 0x3ed   :  { %3648 = vmatmul.mubr.msk.bf16.gmra.mrb[152].mxu0 %vm6381_vm10, %v1600_v52 }
 0x3ee   :  { %1878 = vmatprep.mubr.bf16.mxu0 %v4524_v45 }
 0x3f0   :  { %v1462_v54 = vpop.f32.mrb[104].mxu1 }
 0x3f1   :  { %v4205_v55 = vpop.f32.mrb[105].mxu1 }
 0x3f2   :  { %v1465_v56 = vpop.f32.mrb[106].mxu1 }
 0x3f3   :  { %v1601_v57 = vpack.c.bf16 %v1465_v56, %v1462_v54  ;;  %v4206_v58 = vpop.f32.mrb[107].mxu1  ;;  %v2155_v54 = vcvt.s32.f32 %v5188_v43  ;;  %v3208_v43 = vld [vmem:[%s6377_s9] sm:$0x1] }
 0x3f4   :  { %v2158_v58 = vmul.f32 0.0625, %v2156_v51 }
 0x3f5   :  { %3649 = vmatmul.mubr.msk.bf16.gmra.mrb[156].mxu0 %vm6381_vm10, %v1601_v57 }
 0x3f6   :  { %1888 = vmatprep.mubr.bf16.mxu0 %v4524_v45 }
 0x3f8   :  { %v1470_v59 = vpop.f32.mrb[108].mxu1 }
 0x3f9   :  { %v4209_v60 = vpop.f32.mrb[109].mxu1 }
 0x3fa   :  { %v1473_v61 = vpop.f32.mrb[110].mxu1  ;;  %v2160_v60 = vfloor.f32 %v2158_v58 }
 0x3fb   :  { %v1602_v62 = vpack.c.bf16 %v1473_v61, %v1470_v59  ;;  %v4210_v63 = vpop.f32.mrb[111].mxu1  ;;  %v2157_v59 = vmul.f32 0.0625, %v2155_v54 }
 0x3fd   :  { %3650 = vmatmul.mubr.msk.bf16.gmra.mrb[160].mxu0 %vm6381_vm10, %v1602_v62  ;;  %v5198_v62 = vshrl.u32 %v2037_v42, 7 }
 0x3fe   :  { %1898 = vmatprep.mubr.bf16.mxu0 %v4524_v45 }
 0x400   :  { %v1478_v0 = vpop.f32.mrb[112].mxu1 }
 0x401   :  { %v4213_v2 = vpop.f32.mrb[113].mxu1 }
 0x402   :  { %v1481_v3 = vpop.f32.mrb[114].mxu1 }
 0x403   :  { %v1603_v4 = vpack.c.bf16 %v1481_v3, %v1478_v0  ;;  %v4214_v5 = vpop.f32.mrb[115].mxu1  ;;  %v2159_v0 = vfloor.f32 %v2157_v59  ;;  %v2044_v59 = vadd.s32 48, %v5198_v62 }
 0x404   :  { %v5200_v5 = vmul.f32 50.0, %v2160_v60 }
 0x405   :  { %3651 = vmatmul.mubr.msk.bf16.gmra.mrb[164].mxu0 %vm6381_vm10, %v1603_v4 }
 0x406   :  { %1908 = vmatprep.mubr.bf16.mxu0 %v4524_v45 }
 0x408   :  { %v1486_v6 = vpop.f32.mrb[116].mxu1 }
 0x409   :  { %v4217_v7 = vpop.f32.mrb[117].mxu1 }
 0x40a   :  { %v1489_v8 = vpop.f32.mrb[118].mxu1  ;;  %v5204_v7 = vmul.f32 50.0, %v2159_v0 }
 0x40b   :  { %v1604_v9 = vpack.c.bf16 %v1489_v8, %v1486_v6  ;;  %v4218_v10 = vpop.f32.mrb[119].mxu1  ;;  %v2039_v6 = vadd.s32 8, %v5198_v62  ;;  %v5208_v8 = vcvt.s32.f32 %v5198_v62 }
 0x40d   :  { %3652 = vmatmul.mubr.msk.bf16.gmra.mrb[168].mxu0 %vm6381_vm10, %v1604_v9  ;;  %v5211_v9 = vadd.f32 50.0, %v5200_v5  ;;  %vm2164_vm3 = vcmp.ge.f32.partialorder %v5208_v8, %v5200_v5  ;;  %vm2163_vm7 = vcmp.ge.f32.partialorder %v5208_v8, %v5204_v7 }
 0x40e   :  { %1918 = vmatprep.mubr.bf16.mxu0 %v4524_v45 }
 0x40f   :  { %vm2280_vm4 = vcmp.lt.f32.partialorder %v5208_v8, %v5211_v9 }
 0x410   :  { %v1494_v11 = vpop.f32.mrb[120].mxu1  ;;  %vm5230_vm14 = vmand %vm2164_vm3, %vm2280_vm4 }
 0x411   :  { %v4221_v12 = vpop.f32.mrb[121].mxu1 }
 0x412   :  { %v1497_v14 = vpop.f32.mrb[122].mxu1 }
 0x413   :  { %v1605_v15 = vpack.c.bf16 %v1497_v14, %v1494_v11  ;;  %v4222_v16 = vpop.f32.mrb[123].mxu1  ;;  %v2096_v11 = vcvt.s32.f32 %v2039_v6  ;;  %v5214_v14 = vadd.f32 50.0, %v5204_v7 }
 0x414   :  { %v2040_v16 = vadd.s32 16, %v5198_v62 }
 0x415   :  { %3653 = vmatmul.mubr.msk.bf16.gmra.mrb[172].mxu0 %vm6381_vm10, %v1605_v15  ;;  %vm2166_vm11 = vcmp.ge.f32.partialorder %v2096_v11, %v5200_v5  ;;  %vm2282_vm15 = vcmp.lt.f32.partialorder %v2096_v11, %v5211_v9  ;;  %vm2279_vm9 = vcmp.lt.f32.partialorder %v5208_v8, %v5214_v14  ;;  %vm2165_vm12 = vcmp.ge.f32.partialorder %v2096_v11, %v5204_v7 }
 0x416   :  { %1928 = vmatprep.mubr.bf16.mxu0 %v4524_v45  ;;  %vm2281_vm5 = vcmp.lt.f32.partialorder %v2096_v11, %v5214_v14  ;;  %vm5236_vm2 = vmand %vm2166_vm11, %vm2282_vm15 }
 0x417   :  { %vm5240_vm13 = vmand %vm2163_vm7, %vm2279_vm9 }
 0x418   :  { %v1502_v17 = vpop.f32.mrb[124].mxu1  ;;  %vm5244_vm8 = vmand %vm2165_vm12, %vm2281_vm5 }
 0x419   :  { %v4225_v18 = vpop.f32.mrb[125].mxu1  ;;  %vm3681_vm4 = vmpackc.low %vm5236_vm2, %vm5230_vm14 }
 0x41a   :  { %v1505_v19 = vpop.f32.mrb[126].mxu1  ;;  %vm3684_vm15 = vmpackc.low %vm5244_vm8, %vm5240_vm13 }
 0x41b   :  { %v1606_v20 = vpack.c.bf16 %v1505_v19, %v1502_v17  ;;  %v4226_v21 = vpop.f32.mrb[127].mxu1  ;;  %v2041_v19 = vadd.s32 24, %v5198_v62 }
 0x41c   :  { %v2097_v21 = vcvt.s32.f32 %v2040_v16 }
 0x41d   :  { %3654 = vmatmul.mubr.msk.bf16.gmra.mrb[176].mxu0 %vm6381_vm10, %v1606_v20  ;;  %v2054_v20 = vadd.s32 128, %v5198_v62 }
 0x41e   :  { %1938 = vmatprep.mubr.bf16.mxu0 %v4524_v45  ;;  %vm2168_vm3 = vcmp.ge.f32.partialorder %v2097_v21, %v5200_v5  ;;  %vm2284_vm11 = vcmp.lt.f32.partialorder %v2097_v21, %v5211_v9  ;;  %vm2167_vm14 = vcmp.ge.f32.partialorder %v2097_v21, %v5204_v7  ;;  %vm2283_vm12 = vcmp.lt.f32.partialorder %v2097_v21, %v5214_v14 }
 0x41f   :  { %vm5271_vm5 = vmand %vm2168_vm3, %vm2284_vm11 }
 0x420   :  { %v1510_v22 = vpop.f32.mrb[128].mxu1 }
 0x421   :  { %v4229_v23 = vpop.f32.mrb[129].mxu1 }
 0x422   :  { %v1513_v24 = vpop.f32.mrb[130].mxu1 }
 0x423   :  { %v1607_v25 = vpack.c.bf16 %v1513_v24, %v1510_v22  ;;  %v4230_v26 = vpop.f32.mrb[131].mxu1 }
 0x424   :  { %v2098_v26 = vcvt.s32.f32 %v2041_v19  ;;  %v2047_v19 = vadd.s32 72, %v5198_v62 }
 0x425   :  { %3655 = vmatmul.mubr.msk.bf16.gmra.mrb[180].mxu0 %vm6381_vm10, %v1607_v25 }
 0x426   :  { %1948 = vmatprep.mubr.bf16.mxu0 %v4524_v45  ;;  %vm2170_vm7 = vcmp.ge.f32.partialorder %v2098_v26, %v5200_v5  ;;  %vm2286_vm9 = vcmp.lt.f32.partialorder %v2098_v26, %v5211_v9  ;;  %vm2169_vm2 = vcmp.ge.f32.partialorder %v2098_v26, %v5204_v7  ;;  %vm2285_vm13 = vcmp.lt.f32.partialorder %v2098_v26, %v5214_v14 }
 0x427   :  { %vm5277_vm8 = vmand %vm2170_vm7, %vm2286_vm9  ;;  %v2104_v25 = vcvt.s32.f32 %v2047_v19 }
 0x428   :  { %v1518_v27 = vpop.f32.mrb[132].mxu1  ;;  %vm5285_vm3 = vmand %vm2169_vm2, %vm2285_vm13 }
 0x429   :  { %v4233_v28 = vpop.f32.mrb[133].mxu1  ;;  %vm3687_vm11 = vmpackc.low %vm5277_vm8, %vm5271_vm5 }
 0x42a   :  { %v1521_v29 = vpop.f32.mrb[134].mxu1 }
 0x42b   :  { %v1608_v30 = vpack.c.bf16 %v1521_v29, %v1518_v27  ;;  %v4234_v31 = vpop.f32.mrb[135].mxu1 }
 0x42d   :  { %3656 = vmatmul.mubr.msk.bf16.gmra.mrb[184].mxu0 %vm6381_vm10, %v1608_v30 }
 0x42e   :  { %1958 = vmatprep.mubr.bf16.mxu0 %v4524_v45 }
 0x430   :  { %v1526_v32 = vpop.f32.mrb[136].mxu1 }
 0x431   :  { %v4237_v33 = vpop.f32.mrb[137].mxu1 }
 0x432   :  { %v1529_v34 = vpop.f32.mrb[138].mxu1 }
 0x433   :  { %v1609_v35 = vpack.c.bf16 %v1529_v34, %v1526_v32  ;;  %v4238_v36 = vpop.f32.mrb[139].mxu1 }
 0x434   :  { %v2042_v36 = vadd.s32 32, %v5198_v62 }
 0x435   :  { %3657 = vmatmul.mubr.msk.bf16.gmra.mrb[188].mxu0 %vm6381_vm10, %v1609_v35 }
 0x436   :  { %1968 = vmatprep.mubr.bf16.mxu0 %v4524_v45  ;;  %v2099_v42 = vcvt.s32.f32 %v2042_v36 }
 0x438   :  { %v1534_v37 = vpop.f32.mrb[140].mxu1  ;;  %vm2288_vm7 = vcmp.lt.f32.partialorder %v2099_v42, %v5211_v9  ;;  %vm2171_vm5 = vcmp.ge.f32.partialorder %v2099_v42, %v5204_v7  ;;  %vm2287_vm2 = vcmp.lt.f32.partialorder %v2099_v42, %v5214_v14 }
 0x439   :  { %v4241_v38 = vpop.f32.mrb[141].mxu1 }
 0x43a   :  { %v1537_v39 = vpop.f32.mrb[142].mxu1  ;;  %v2043_v38 = vadd.s32 40, %v5198_v62 }
 0x43b   :  { %v1610_v40 = vpack.c.bf16 %v1537_v39, %v1534_v37  ;;  %v4242_v41 = vpop.f32.mrb[143].mxu1  ;;  %v4457_v39 = vld [vmem:[%s6373_s5 + $0x4] ss:$16 sps:$4 sm:$0xff]  }
 0x43c   :  { %2814 = vmatprep.mubr.bf16.mxu1 %v4457_v39 }
 0x43d   :  { %3658 = vmatmul.mubr.msk.bf16.gmra.mrb[192].mxu0 %vm6381_vm10, %v1610_v40 }
 0x43e   :  { %1978 = vmatprep.mubr.bf16.mxu0 %v4524_v45 }
 0x440   :  { %v1542_v44 = vpop.f32.mrb[144].mxu1 }
 0x441   :  { %v4245_v46 = vpop.f32.mrb[145].mxu1 }
 0x442   :  { %v1545_v47 = vpop.f32.mrb[146].mxu1 }
 0x443   :  { %v1611_v48 = vpack.c.bf16 %v1545_v47, %v1542_v44  ;;  %v4246_v49 = vpop.f32.mrb[147].mxu1  ;;  %v2050_v47 = vadd.s32 96, %v5198_v62 }
 0x445   :  { %3659 = vmatmul.mubr.msk.bf16.gmra.mrb[196].mxu0 %vm6381_vm10, %v1611_v48  ;;  %v2100_v48 = vcvt.s32.f32 %v2043_v38 }
 0x446   :  { %1988 = vmatprep.mubr.bf16.mxu0 %v4524_v45 }
 0x447   :  { %vm2173_vm8 = vcmp.ge.f32.partialorder %v2100_v48, %v5204_v7 }
 0x448   :  { %v1550_v52 = vpop.f32.mrb[148].mxu1 }
 0x449   :  { %v4249_v53 = vpop.f32.mrb[149].mxu1 }
 0x44a   :  { %v1553_v55 = vpop.f32.mrb[150].mxu1 }
 0x44b   :  { %v1612_v56 = vpack.c.bf16 %v1553_v55, %v1550_v52  ;;  %v4250_v57 = vpop.f32.mrb[151].mxu1 }
 0x44d   :  { %3660 = vmatmul.mubr.msk.bf16.gmra.mrb[200].mxu0 %vm6381_vm10, %v1612_v56 }
 0x44e   :  { %1998 = vmatprep.mubr.bf16.mxu0 %v4524_v45 }
 0x450   :  { %v1558_v61 = vpop.f32.mrb[152].mxu1 }
 0x451   :  { %v4253_v63 = vpop.f32.mrb[153].mxu1 }
 0x452   :  { %v1561_v2 = vpop.f32.mrb[154].mxu1  ;;  %v2052_v63 = vadd.s32 112, %v5198_v62 }
 0x453   :  { %v1613_v3 = vpack.c.bf16 %v1561_v2, %v1558_v61  ;;  %v4254_v4 = vpop.f32.mrb[155].mxu1  ;;  %v2045_v61 = vadd.s32 56, %v5198_v62  ;;  %v2101_v2 = vcvt.s32.f32 %v2044_v59 }
 0x455   :  { %3661 = vmatmul.mubr.msk.bf16.gmra.mrb[204].mxu0 %vm6381_vm10, %v1613_v3  ;;  %v2102_v6 = vcvt.s32.f32 %v2045_v61 }
 0x456   :  { %2008 = vmatprep.mubr.bf16.mxu0 %v4524_v45 }
 0x458   :  { %v1566_v10 = vpop.f32.mrb[156].mxu1 }
 0x459   :  { %v4257_v12 = vpop.f32.mrb[157].mxu1 }
 0x45a   :  { %v1569_v15 = vpop.f32.mrb[158].mxu1 }
 0x45b   :  { %v1614_v17 = vpack.c.bf16 %v1569_v15, %v1566_v10  ;;  %v4258_v18 = vpop.f32.mrb[159].mxu1 }
 0x45d   :  { %3662 = vmatmul.mubr.msk.bf16.gmra.mrb[208].mxu0 %vm6381_vm10, %v1614_v17  ;;  %v2046_v17 = vadd.s32 64, %v5198_v62 }
 0x45e   :  { %2018 = vmatprep.mubr.bf16.mxu0 %v4524_v45 }
 0x45f   :  { %v2103_v22 = vcvt.s32.f32 %v2046_v17 }
 0x460   :  { %v1574_v23 = vpop.f32.mrb[160].mxu1  ;;  %v1750_v24 = vpop.f32.mrb[104].mxu0 }
 0x461   :  { %v4261_v27 = vpop.f32.mrb[161].mxu1  ;;  %v1752_v28 = vpop.f32.mrb[105].mxu0 }
 0x462   :  { %v1577_v30 = vpop.f32.mrb[162].mxu1  ;;  %v1754_v31 = vpop.f32.mrb[106].mxu0 }
 0x463   :  { %v1615_v32 = vpack.c.bf16 %v1577_v30, %v1574_v23  ;;  %v3685_v33 = vpack.c.bf16 %v1754_v31, %v1750_v24  ;;  %v1756_v34 = vpop.f32.mrb[107].mxu0  ;;  %v4262_v35 = vpop.f32.mrb[163].mxu1  ;;  %v2048_v31 = vadd.s32 80, %v5198_v62 }
 0x464   :  { %v3682_v37 = vpack.c.bf16 %v1756_v34, %v1752_v28  ;;  %v2056_v34 = vadd.s32 144, %v5198_v62 }
 0x465   :  { %3663 = vmatmul.mubr.msk.bf16.gmra.mrb[212].mxu0 %vm6381_vm10, %v1615_v32  ;;  %v2105_v36 = vcvt.s32.f32 %v2048_v31 }
 0x466   :  { %3683 = vmatprep.subr.msk.bf16.mxu1 %vm3681_vm4, %v3682_v37  ;;  %2028 = vmatprep.mubr.bf16.mxu0 %v4524_v45  ;;  %vm5281_vm4 = vmand %vm2167_vm14, %vm2283_vm12  ;;  %vm2174_vm14 = vcmp.ge.f32.partialorder %v2100_v48, %v5200_v5  ;;  %vm2290_vm12 = vcmp.lt.f32.partialorder %v2100_v48, %v5211_v9 }
 0x467   :  { %3686 = vmatpush1.bf16.msk.msra.mxu1 %vm3684_vm15, %v3685_v33  ;;  %vm2172_vm15 = vcmp.ge.f32.partialorder %v2099_v42, %v5200_v5  ;;  %vm3690_vm9 = vmpackc.low %vm5285_vm3, %vm5281_vm4  ;;  %vm2289_vm4 = vcmp.lt.f32.partialorder %v2100_v48, %v5214_v14  ;;  %v2049_v33 = vadd.s32 88, %v5198_v62 }
 0x468   :  { %v1760_v44 = vpop.f32.mrb[108].mxu0  ;;  %v1582_v46 = vpop.f32.mrb[164].mxu1  ;;  %vm5306_vm13 = vmand %vm2172_vm15, %vm2288_vm7  ;;  %vm2176_vm7 = vcmp.ge.f32.partialorder %v2101_v2, %v5200_v5 }
 0x469   :  { %v1616_v49 = vpack.c.bf16 %v1582_v46, %v1582_v46  ;;  %v1762_v50 = vpop.f32.mrb[109].mxu0  ;;  %v4265_v52 = vpop.f32.mrb[165].mxu1  ;;  %vm5312_vm3 = vmand %vm2174_vm14, %vm2290_vm12  ;;  %vm2178_vm12 = vcmp.ge.f32.partialorder %v2102_v6, %v5200_v5  ;;  %v2106_v39 = vcvt.s32.f32 %v2049_v33 }
 0x46a   :  { %v1764_v53 = vpop.f32.mrb[110].mxu0  ;;  %v1585_v55 = vpop.f32.mrb[166].mxu1  ;;  %vm3693_vm15 = vmpackc.low %vm5312_vm3, %vm5306_vm13  ;;  %vm2291_vm13 = vcmp.lt.f32.partialorder %v2101_v2, %v5214_v14  ;;  %vm2293_vm3 = vcmp.lt.f32.partialorder %v2102_v6, %v5214_v14  ;;  %v2107_v52 = vcvt.s32.f32 %v2050_v47 }
 0x46b   :  { %v3691_v56 = vpack.c.bf16 %v1764_v53, %v1760_v44  ;;  %v1766_v57 = vpop.f32.mrb[111].mxu0  ;;  %v4266_v58 = vpop.f32.mrb[167].mxu1 }
 0x46c   :  { %v3688_v60 = vpack.c.bf16 %v1766_v57, %v1762_v50  ;;  %v2058_v50 = vadd.s32 160, %v5198_v62 }
 0x46d   :  { %3664 = vmatmul.mubr.msk.bf16.gmra.mrb[216].mxu0 %vm6381_vm10, %v1616_v49  ;;  %vm5316_vm10 = vmand %vm2171_vm5, %vm2287_vm2  ;;  %vm2294_vm5 = vcmp.lt.f32.partialorder %v2102_v6, %v5211_v9  ;;  %vm2175_vm2 = vcmp.ge.f32.partialorder %v2101_v2, %v5204_v7  ;;  %v2051_v49 = vadd.s32 104, %v5198_v62 }
 0x46e   :  { %3689 = vmatprep.subr.msk.bf16.mxu1 %vm3687_vm11, %v3688_v60  ;;  %vm5320_vm11 = vmand %vm2173_vm8, %vm2289_vm4  ;;  %vm2177_vm4 = vcmp.ge.f32.partialorder %v2102_v6, %v5204_v7  ;;  %v2109_v6 = vcvt.s32.f32 %v2052_v63 }
 0x46f   :  { %3692 = vmatpush1.bf16.msk.msra.mxu1 %vm3690_vm9, %v3691_v56  ;;  %vm2292_vm9 = vcmp.lt.f32.partialorder %v2101_v2, %v5211_v9  ;;  %vm3696_vm14 = vmpackc.low %vm5320_vm11, %vm5316_vm10  ;;  %v2108_v56 = vcvt.s32.f32 %v2051_v49  ;;  %v2053_v2 = vadd.s32 120, %v5198_v62 }
 0x470   :  { %v1770_v3 = vpop.f32.mrb[112].mxu0  ;;  %vm5340_vm8 = vmand %vm2176_vm7, %vm2292_vm9  ;;  %vm2180_vm9 = vcmp.ge.f32.partialorder %v2103_v22, %v5200_v5 }
 0x471   :  { %v1772_v10 = vpop.f32.mrb[113].mxu0  ;;  %vm5346_vm10 = vmand %vm2178_vm12, %vm2294_vm5  ;;  %vm2182_vm5 = vcmp.ge.f32.partialorder %v2104_v25, %v5200_v5 }
 0x472   :  { %v1774_v12 = vpop.f32.mrb[114].mxu0  ;;  %vm5350_vm11 = vmand %vm2175_vm2, %vm2291_vm13  ;;  %vm2298_vm2 = vcmp.lt.f32.partialorder %v2104_v25, %v5211_v9  ;;  %vm2179_vm13 = vcmp.ge.f32.partialorder %v2103_v22, %v5204_v7 }
 0x473   :  { %v3697_v15 = vpack.c.bf16 %v1774_v12, %v1770_v3  ;;  %v1776_v16 = vpop.f32.mrb[115].mxu0  ;;  %vm3699_vm7 = vmpackc.low %vm5346_vm10, %vm5340_vm8  ;;  %vm2295_vm8 = vcmp.lt.f32.partialorder %v2103_v22, %v5214_v14  ;;  %vm2297_vm10 = vcmp.lt.f32.partialorder %v2104_v25, %v5214_v14  ;;  %v2110_v12 = vcvt.s32.f32 %v2053_v2 }
 0x474   :  { %v3694_v18 = vpack.c.bf16 %v1776_v16, %v1772_v10  ;;  %v2060_v3 = vadd.s32 176, %v5198_v62 }
 0x476   :  { %3695 = vmatprep.subr.msk.bf16.mxu1 %vm3693_vm15, %v3694_v18  ;;  %vm5354_vm15 = vmand %vm2177_vm4, %vm2293_vm3  ;;  %vm2181_vm3 = vcmp.ge.f32.partialorder %v2104_v25, %v5204_v7  ;;  %v2111_v25 = vcvt.s32.f32 %v2054_v20 }
 0x477   :  { %3698 = vmatpush1.bf16.msk.msra.mxu1 %vm3696_vm14, %v3697_v15  ;;  %vm2296_vm14 = vcmp.lt.f32.partialorder %v2103_v22, %v5211_v9  ;;  %vm3702_vm12 = vmpackc.low %vm5354_vm15, %vm5350_vm11  ;;  %v2055_v22 = vadd.s32 136, %v5198_v62 }
 0x478   :  { %v1780_v23 = vpop.f32.mrb[116].mxu0  ;;  %vm5374_vm4 = vmand %vm2180_vm9, %vm2296_vm14  ;;  %vm2184_vm14 = vcmp.ge.f32.partialorder %v2105_v36, %v5200_v5 }
 0x479   :  { %v1782_v26 = vpop.f32.mrb[117].mxu0  ;;  %vm5380_vm11 = vmand %vm2182_vm5, %vm2298_vm2  ;;  %vm2186_vm2 = vcmp.ge.f32.partialorder %v2106_v39, %v5200_v5 }
 0x47a   :  { %v1784_v28 = vpop.f32.mrb[118].mxu0  ;;  %vm5384_vm15 = vmand %vm2179_vm13, %vm2295_vm8  ;;  %vm2302_vm13 = vcmp.lt.f32.partialorder %v2106_v39, %v5211_v9  ;;  %vm2183_vm8 = vcmp.ge.f32.partialorder %v2105_v36, %v5204_v7 }
 0x47b   :  { %v3703_v29 = vpack.c.bf16 %v1784_v28, %v1780_v23  ;;  %v1786_v30 = vpop.f32.mrb[119].mxu0  ;;  %vm3705_vm9 = vmpackc.low %vm5380_vm11, %vm5374_vm4  ;;  %vm2299_vm4 = vcmp.lt.f32.partialorder %v2105_v36, %v5214_v14  ;;  %vm2301_vm11 = vcmp.lt.f32.partialorder %v2106_v39, %v5214_v14  ;;  %v2112_v28 = vcvt.s32.f32 %v2055_v22 }
 0x47c   :  { %v3700_v32 = vpack.c.bf16 %v1786_v30, %v1782_v26  ;;  %v2062_v23 = vadd.s32 192, %v5198_v62 }
 0x47e   :  { %3701 = vmatprep.subr.msk.bf16.mxu1 %vm3699_vm7, %v3700_v32  ;;  %vm5388_vm7 = vmand %vm2181_vm3, %vm2297_vm10  ;;  %vm2185_vm10 = vcmp.ge.f32.partialorder %v2106_v39, %v5204_v7  ;;  %v2113_v39 = vcvt.s32.f32 %v2056_v34 }
 0x47f   :  { %3704 = vmatpush1.bf16.msk.msra.mxu1 %vm3702_vm12, %v3703_v29  ;;  %vm2300_vm12 = vcmp.lt.f32.partialorder %v2105_v36, %v5211_v9  ;;  %vm3708_vm5 = vmpackc.low %vm5388_vm7, %vm5384_vm15  ;;  %v2057_v36 = vadd.s32 152, %v5198_v62 }
 0x480   :  { %v1790_v37 = vpop.f32.mrb[120].mxu0  ;;  %vm5408_vm3 = vmand %vm2184_vm14, %vm2300_vm12  ;;  %vm2188_vm12 = vcmp.ge.f32.partialorder %v2107_v52, %v5200_v5 }
 0x481   :  { %v1792_v40 = vpop.f32.mrb[121].mxu0  ;;  %vm5414_vm15 = vmand %vm2186_vm2, %vm2302_vm13  ;;  %vm2190_vm13 = vcmp.ge.f32.partialorder %v2108_v56, %v5200_v5 }
 0x482   :  { %v1794_v42 = vpop.f32.mrb[122].mxu0  ;;  %vm5418_vm7 = vmand %vm2183_vm8, %vm2299_vm4  ;;  %vm2306_vm8 = vcmp.lt.f32.partialorder %v2108_v56, %v5211_v9  ;;  %vm2187_vm4 = vcmp.ge.f32.partialorder %v2107_v52, %v5204_v7 }
 0x483   :  { %v3709_v44 = vpack.c.bf16 %v1794_v42, %v1790_v37  ;;  %v1796_v46 = vpop.f32.mrb[123].mxu0  ;;  %vm3711_vm14 = vmpackc.low %vm5414_vm15, %vm5408_vm3  ;;  %vm2303_vm3 = vcmp.lt.f32.partialorder %v2107_v52, %v5214_v14  ;;  %vm2305_vm15 = vcmp.lt.f32.partialorder %v2108_v56, %v5214_v14  ;;  %v2114_v42 = vcvt.s32.f32 %v2057_v36 }
 0x484   :  { %v3706_v48 = vpack.c.bf16 %v1796_v46, %v1792_v40  ;;  %v2064_v37 = vadd.s32 208, %v5198_v62  ;;  %v2079_v46 = vadd.s32 328, %v5198_v62 }
 0x486   :  { %3707 = vmatprep.subr.msk.bf16.mxu1 %vm3705_vm9, %v3706_v48  ;;  %vm5422_vm9 = vmand %vm2185_vm10, %vm2301_vm11  ;;  %vm2189_vm11 = vcmp.ge.f32.partialorder %v2108_v56, %v5204_v7  ;;  %v2115_v56 = vcvt.s32.f32 %v2058_v50 }
 0x487   :  { %3710 = vmatpush1.bf16.msk.msra.mxu1 %vm3708_vm5, %v3709_v44  ;;  %vm2304_vm5 = vcmp.lt.f32.partialorder %v2107_v52, %v5211_v9  ;;  %vm3714_vm2 = vmpackc.low %vm5422_vm9, %vm5418_vm7  ;;  %v2059_v52 = vadd.s32 168, %v5198_v62 }
 0x488   :  { %v1800_v53 = vpop.f32.mrb[124].mxu0  ;;  %vm5442_vm10 = vmand %vm2188_vm12, %vm2304_vm5  ;;  %vm2192_vm5 = vcmp.ge.f32.partialorder %v2109_v6, %v5200_v5 }
 0x489   :  { %v1802_v57 = vpop.f32.mrb[125].mxu0  ;;  %vm5448_vm7 = vmand %vm2190_vm13, %vm2306_vm8  ;;  %vm2194_vm8 = vcmp.ge.f32.partialorder %v2110_v12, %v5200_v5 }
 0x48a   :  { %v1804_v59 = vpop.f32.mrb[126].mxu0  ;;  %vm5452_vm9 = vmand %vm2187_vm4, %vm2303_vm3  ;;  %vm2310_vm4 = vcmp.lt.f32.partialorder %v2110_v12, %v5211_v9  ;;  %vm2191_vm3 = vcmp.ge.f32.partialorder %v2109_v6, %v5204_v7 }
 0x48b   :  { %v3715_v60 = vpack.c.bf16 %v1804_v59, %v1800_v53  ;;  %v1806_v61 = vpop.f32.mrb[127].mxu0  ;;  %vm3717_vm12 = vmpackc.low %vm5448_vm7, %vm5442_vm10  ;;  %vm2307_vm10 = vcmp.lt.f32.partialorder %v2109_v6, %v5214_v14  ;;  %vm2309_vm7 = vcmp.lt.f32.partialorder %v2110_v12, %v5214_v14  ;;  %v2116_v59 = vcvt.s32.f32 %v2059_v52 }
 0x48c   :  { %v3712_v0 = vpack.c.bf16 %v1806_v61, %v1802_v57  ;;  %v2066_v53 = vadd.s32 224, %v5198_v62  ;;  %v4478_v61 = vld [vmem:[%s6374_s6 + $0x8] sm:$0xff]  }
 0x48e   :  { %3713 = vmatprep.subr.msk.bf16.mxu1 %vm3711_vm14, %v3712_v0  ;;  %vm5456_vm14 = vmand %vm2189_vm11, %vm2305_vm15  ;;  %vm2193_vm15 = vcmp.ge.f32.partialorder %v2110_v12, %v5204_v7  ;;  %v2117_v12 = vcvt.s32.f32 %v2060_v3 }
 0x48f   :  { %3716 = vmatpush1.bf16.msk.msra.mxu1 %vm3714_vm2, %v3715_v60  ;;  %vm2308_vm2 = vcmp.lt.f32.partialorder %v2109_v6, %v5211_v9  ;;  %vm3720_vm13 = vmpackc.low %vm5456_vm14, %vm5452_vm9  ;;  %v2061_v6 = vadd.s32 184, %v5198_v62 }
 0x490   :  { %v1810_v10 = vpop.f32.mrb[128].mxu0  ;;  %vm5476_vm11 = vmand %vm2192_vm5, %vm2308_vm2  ;;  %vm2196_vm2 = vcmp.ge.f32.partialorder %v2111_v25, %v5200_v5 }
 0x491   :  { %v1812_v15 = vpop.f32.mrb[129].mxu0  ;;  %vm5482_vm9 = vmand %vm2194_vm8, %vm2310_vm4  ;;  %vm2198_vm4 = vcmp.ge.f32.partialorder %v2112_v28, %v5200_v5 }
 0x492   :  { %v1814_v17 = vpop.f32.mrb[130].mxu0  ;;  %vm5486_vm14 = vmand %vm2191_vm3, %vm2307_vm10  ;;  %vm2314_vm3 = vcmp.lt.f32.partialorder %v2112_v28, %v5211_v9  ;;  %vm2195_vm10 = vcmp.ge.f32.partialorder %v2111_v25, %v5204_v7 }
 0x493   :  { %v3721_v18 = vpack.c.bf16 %v1814_v17, %v1810_v10  ;;  %v1816_v19 = vpop.f32.mrb[131].mxu0  ;;  %vm3723_vm5 = vmpackc.low %vm5482_vm9, %vm5476_vm11  ;;  %vm2311_vm11 = vcmp.lt.f32.partialorder %v2111_v25, %v5214_v14  ;;  %vm2313_vm9 = vcmp.lt.f32.partialorder %v2112_v28, %v5214_v14  ;;  %v2118_v17 = vcvt.s32.f32 %v2061_v6 }
 0x494   :  { %v3718_v21 = vpack.c.bf16 %v1816_v19, %v1812_v15  ;;  %v2068_v10 = vadd.s32 240, %v5198_v62 }
 0x496   :  { %3719 = vmatprep.subr.msk.bf16.mxu1 %vm3717_vm12, %v3718_v21  ;;  %vm5490_vm12 = vmand %vm2193_vm15, %vm2309_vm7  ;;  %vm2197_vm7 = vcmp.ge.f32.partialorder %v2112_v28, %v5204_v7  ;;  %v2119_v28 = vcvt.s32.f32 %v2062_v23 }
 0x497   :  { %3722 = vmatpush1.bf16.msk.msra.mxu1 %vm3720_vm13, %v3721_v18  ;;  %vm2312_vm13 = vcmp.lt.f32.partialorder %v2111_v25, %v5211_v9  ;;  %vm3726_vm8 = vmpackc.low %vm5490_vm12, %vm5486_vm14  ;;  %v2063_v25 = vadd.s32 200, %v5198_v62 }
 0x498   :  { %v1820_v26 = vpop.f32.mrb[132].mxu0  ;;  %vm5510_vm15 = vmand %vm2196_vm2, %vm2312_vm13  ;;  %vm2200_vm13 = vcmp.ge.f32.partialorder %v2113_v39, %v5200_v5 }
 0x499   :  { %v1822_v29 = vpop.f32.mrb[133].mxu0  ;;  %vm5516_vm14 = vmand %vm2198_vm4, %vm2314_vm3  ;;  %vm2202_vm3 = vcmp.ge.f32.partialorder %v2114_v42, %v5200_v5 }
 0x49a   :  { %v1824_v31 = vpop.f32.mrb[134].mxu0  ;;  %vm5520_vm12 = vmand %vm2195_vm10, %vm2311_vm11  ;;  %vm2318_vm10 = vcmp.lt.f32.partialorder %v2114_v42, %v5211_v9  ;;  %vm2199_vm11 = vcmp.ge.f32.partialorder %v2113_v39, %v5204_v7 }
 0x49b   :  { %v3727_v32 = vpack.c.bf16 %v1824_v31, %v1820_v26  ;;  %v1826_v33 = vpop.f32.mrb[135].mxu0  ;;  %vm3729_vm2 = vmpackc.low %vm5516_vm14, %vm5510_vm15  ;;  %vm2315_vm15 = vcmp.lt.f32.partialorder %v2113_v39, %v5214_v14  ;;  %vm2317_vm14 = vcmp.lt.f32.partialorder %v2114_v42, %v5214_v14  ;;  %v2120_v31 = vcvt.s32.f32 %v2063_v25 }
 0x49c   :  { %v3724_v35 = vpack.c.bf16 %v1826_v33, %v1822_v29  ;;  %v2070_v26 = vadd.s32 256, %v5198_v62 }
 0x49e   :  { %3725 = vmatprep.subr.msk.bf16.mxu1 %vm3723_vm5, %v3724_v35  ;;  %vm5524_vm5 = vmand %vm2197_vm7, %vm2313_vm9  ;;  %vm2201_vm9 = vcmp.ge.f32.partialorder %v2114_v42, %v5204_v7  ;;  %v2121_v42 = vcvt.s32.f32 %v2064_v37 }
 0x49f   :  { %3728 = vmatpush1.bf16.msk.msra.mxu1 %vm3726_vm8, %v3727_v32  ;;  %vm2316_vm8 = vcmp.lt.f32.partialorder %v2113_v39, %v5211_v9  ;;  %vm3732_vm4 = vmpackc.low %vm5524_vm5, %vm5520_vm12  ;;  %v2065_v39 = vadd.s32 216, %v5198_v62 }
 0x4a0   :  { %v1830_v40 = vpop.f32.mrb[136].mxu0  ;;  %vm5544_vm7 = vmand %vm2200_vm13, %vm2316_vm8  ;;  %vm2204_vm8 = vcmp.ge.f32.partialorder %v2115_v56, %v5200_v5 }
 0x4a1   :  { %v1832_v44 = vpop.f32.mrb[137].mxu0  ;;  %vm5550_vm12 = vmand %vm2202_vm3, %vm2318_vm10  ;;  %vm2206_vm10 = vcmp.ge.f32.partialorder %v2116_v59, %v5200_v5 }
 0x4a2   :  { %v1834_v47 = vpop.f32.mrb[138].mxu0  ;;  %vm5554_vm5 = vmand %vm2199_vm11, %vm2315_vm15  ;;  %vm2322_vm11 = vcmp.lt.f32.partialorder %v2116_v59, %v5211_v9  ;;  %vm2203_vm15 = vcmp.ge.f32.partialorder %v2115_v56, %v5204_v7 }
 0x4a3   :  { %v3733_v48 = vpack.c.bf16 %v1834_v47, %v1830_v40  ;;  %v1836_v49 = vpop.f32.mrb[139].mxu0  ;;  %vm3735_vm13 = vmpackc.low %vm5550_vm12, %vm5544_vm7  ;;  %vm2319_vm7 = vcmp.lt.f32.partialorder %v2115_v56, %v5214_v14  ;;  %vm2321_vm12 = vcmp.lt.f32.partialorder %v2116_v59, %v5214_v14  ;;  %v2122_v47 = vcvt.s32.f32 %v2065_v39 }
 0x4a4   :  { %v3730_v51 = vpack.c.bf16 %v1836_v49, %v1832_v44  ;;  %v2072_v40 = vadd.s32 272, %v5198_v62  ;;  %v4458_v49 = vld [vmem:[%s6373_s5 + $0x24] ss:$16 sps:$4 sm:$0xff]  }
 0x4a6   :  { %3731 = vmatprep.subr.msk.bf16.mxu1 %vm3729_vm2, %v3730_v51  ;;  %vm5558_vm2 = vmand %vm2201_vm9, %vm2317_vm14  ;;  %vm2205_vm14 = vcmp.ge.f32.partialorder %v2116_v59, %v5204_v7  ;;  %v2123_v59 = vcvt.s32.f32 %v2066_v53 }
 0x4a7   :  { %3734 = vmatpush1.bf16.msk.msra.mxu1 %vm3732_vm4, %v3733_v48  ;;  %vm2320_vm4 = vcmp.lt.f32.partialorder %v2115_v56, %v5211_v9  ;;  %vm3738_vm3 = vmpackc.low %vm5558_vm2, %vm5554_vm5  ;;  %v2067_v56 = vadd.s32 232, %v5198_v62 }
 0x4a8   :  { %v1840_v57 = vpop.f32.mrb[140].mxu0  ;;  %vm5578_vm9 = vmand %vm2204_vm8, %vm2320_vm4  ;;  %vm2208_vm4 = vcmp.ge.f32.partialorder %v2117_v12, %v5200_v5 }
 0x4a9   :  { %v1842_v60 = vpop.f32.mrb[141].mxu0  ;;  %vm5584_vm5 = vmand %vm2206_vm10, %vm2322_vm11  ;;  %vm2210_vm11 = vcmp.ge.f32.partialorder %v2118_v17, %v5200_v5 }
 0x4aa   :  { %v1844_v63 = vpop.f32.mrb[142].mxu0  ;;  %vm5588_vm2 = vmand %vm2203_vm15, %vm2319_vm7  ;;  %vm2326_vm15 = vcmp.lt.f32.partialorder %v2118_v17, %v5211_v9  ;;  %vm2207_vm7 = vcmp.ge.f32.partialorder %v2117_v12, %v5204_v7 }
 0x4ab   :  { %v3739_v0 = vpack.c.bf16 %v1844_v63, %v1840_v57  ;;  %v1846_v2 = vpop.f32.mrb[143].mxu0  ;;  %vm3741_vm8 = vmpackc.low %vm5584_vm5, %vm5578_vm9  ;;  %vm2323_vm9 = vcmp.lt.f32.partialorder %v2117_v12, %v5214_v14  ;;  %vm2325_vm5 = vcmp.lt.f32.partialorder %v2118_v17, %v5214_v14  ;;  %v2124_v63 = vcvt.s32.f32 %v2067_v56  ;;  %v4477_v56 = vld [vmem:[%s6374_s6] sm:$0xff]  }
 0x4ac   :  { %v3736_v4 = vpack.c.bf16 %v1846_v2, %v1842_v60  ;;  %3018 = vmatpush1.bf16.msra.mxu0 %v4477_v56  ;;  %v2136_v56 = vcvt.s32.f32 %v2079_v46  ;;  %v2081_v2 = vadd.s32 344, %v5198_v62 }
 0x4ad   :  { %3019 = vmatprep.subr.bf16.mxu0 %v4524_v45 }
 0x4ae   :  { %3737 = vmatprep.subr.msk.bf16.mxu1 %vm3735_vm13, %v3736_v4  ;;  %vm5592_vm13 = vmand %vm2205_vm14, %vm2321_vm12  ;;  %vm2209_vm12 = vcmp.ge.f32.partialorder %v2118_v17, %v5204_v7  ;;  %v2125_v17 = vcvt.s32.f32 %v2068_v10  ;;  %v4461_v10 = vld [vmem:[%s6373_s5 + $0x44] ss:$16 sps:$4 sm:$0xff]  }
 0x4af   :  { %3740 = vmatpush1.bf16.msk.msra.mxu1 %vm3738_vm3, %v3739_v0  ;;  %vm2324_vm3 = vcmp.lt.f32.partialorder %v2117_v12, %v5211_v9  ;;  %vm3744_vm10 = vmpackc.low %vm5592_vm13, %vm5588_vm2  ;;  %v2069_v12 = vadd.s32 248, %v5198_v62 }
 0x4b0   :  { %v1850_v15 = vpop.f32.mrb[144].mxu0  ;;  %vm5612_vm14 = vmand %vm2208_vm4, %vm2324_vm3  ;;  %vm2212_vm3 = vcmp.ge.f32.partialorder %v2119_v28, %v5200_v5  ;;  %3020 = vmatpush1.bf16.msra.mxu0 %v4478_v61 }
 0x4b1   :  { %v1852_v18 = vpop.f32.mrb[145].mxu0  ;;  %vm5618_vm2 = vmand %vm2210_vm11, %vm2326_vm15  ;;  %vm2214_vm15 = vcmp.ge.f32.partialorder %v2120_v31, %v5200_v5  ;;  %3021 = vmatprep.subr.bf16.mxu0 %v4524_v45 }
 0x4b2   :  { %v1854_v20 = vpop.f32.mrb[146].mxu0  ;;  %vm5622_vm13 = vmand %vm2207_vm7, %vm2323_vm9  ;;  %vm2330_vm7 = vcmp.lt.f32.partialorder %v2120_v31, %v5211_v9  ;;  %vm2211_vm9 = vcmp.ge.f32.partialorder %v2119_v28, %v5204_v7 }
 0x4b3   :  { %v3745_v21 = vpack.c.bf16 %v1854_v20, %v1850_v15  ;;  %v1856_v22 = vpop.f32.mrb[147].mxu0  ;;  %vm3747_vm4 = vmpackc.low %vm5618_vm2, %vm5612_vm14  ;;  %vm2327_vm14 = vcmp.lt.f32.partialorder %v2119_v28, %v5214_v14  ;;  %vm2329_vm2 = vcmp.lt.f32.partialorder %v2120_v31, %v5214_v14  ;;  %v2126_v20 = vcvt.s32.f32 %v2069_v12 }
 0x4b4   :  { %v3742_v24 = vpack.c.bf16 %v1856_v22, %v1852_v18  ;;  %v2076_v22 = vadd.s32 304, %v5198_v62 }
 0x4b6   :  { %3743 = vmatprep.subr.msk.bf16.mxu1 %vm3741_vm8, %v3742_v24  ;;  %vm5626_vm8 = vmand %vm2209_vm12, %vm2325_vm5  ;;  %vm2213_vm5 = vcmp.ge.f32.partialorder %v2120_v31, %v5204_v7  ;;  %v2127_v31 = vcvt.s32.f32 %v2070_v26  ;;  %v2691_v26 = vld [vmem:[%s6373_s5 + $0x60] sm:$0x11]  ;;  %v2133_v30 = vcvt.s32.f32 %v2076_v22  ;;  %v2083_v22 = vadd.s32 360, %v5198_v62 }
 0x4b7   :  { %3746 = vmatpush1.bf16.msk.msra.mxu1 %vm3744_vm10, %v3745_v21  ;;  %vm2328_vm10 = vcmp.lt.f32.partialorder %v2119_v28, %v5211_v9  ;;  %vm3750_vm11 = vmpackc.low %vm5626_vm8, %vm5622_vm13  ;;  %v2071_v28 = vadd.s32 264, %v5198_v62 }
 0x4b8   :  { %v1860_v29 = vpop.f32.mrb[148].mxu0  ;;  %vm5646_vm12 = vmand %vm2212_vm3, %vm2328_vm10  ;;  %vm2216_vm10 = vcmp.ge.f32.partialorder %v2121_v42, %v5200_v5 }
 0x4b9   :  { %v1862_v32 = vpop.f32.mrb[149].mxu0  ;;  %vm5652_vm13 = vmand %vm2214_vm15, %vm2330_vm7  ;;  %vm2218_vm7 = vcmp.ge.f32.partialorder %v2122_v47, %v5200_v5 }
 0x4ba   :  { %v1864_v34 = vpop.f32.mrb[150].mxu0  ;;  %vm5656_vm8 = vmand %vm2211_vm9, %vm2327_vm14  ;;  %vm2334_vm9 = vcmp.lt.f32.partialorder %v2122_v47, %v5211_v9  ;;  %vm2215_vm14 = vcmp.ge.f32.partialorder %v2121_v42, %v5204_v7 }
 0x4bb   :  { %v3751_v35 = vpack.c.bf16 %v1864_v34, %v1860_v29  ;;  %v1866_v36 = vpop.f32.mrb[151].mxu0  ;;  %vm3753_vm3 = vmpackc.low %vm5652_vm13, %vm5646_vm12  ;;  %vm2331_vm12 = vcmp.lt.f32.partialorder %v2121_v42, %v5214_v14  ;;  %vm2333_vm13 = vcmp.lt.f32.partialorder %v2122_v47, %v5214_v14  ;;  %v2128_v34 = vcvt.s32.f32 %v2071_v28  ;;  %v4463_v28 = vld [vmem:[%s6373_s5 + $0x40] ss:$16 sps:$4 sm:$0xff]  }
 0x4bc   :  { %v3748_v38 = vpack.c.bf16 %v1866_v36, %v1862_v32 }
 0x4be   :  { %3749 = vmatprep.subr.msk.bf16.mxu1 %vm3747_vm4, %v3748_v38  ;;  %vm5660_vm4 = vmand %vm2213_vm5, %vm2329_vm2  ;;  %vm2217_vm2 = vcmp.ge.f32.partialorder %v2122_v47, %v5204_v7 }
 0x4bf   :  { %3752 = vmatpush1.bf16.msk.msra.mxu1 %vm3750_vm11, %v3751_v35  ;;  %vm2332_vm11 = vcmp.lt.f32.partialorder %v2121_v42, %v5211_v9  ;;  %vm3756_vm15 = vmpackc.low %vm5660_vm4, %vm5656_vm8  ;;  %v2073_v42 = vadd.s32 280, %v5198_v62 }
 0x4c0   :  { %v1870_v44 = vpop.f32.mrb[152].mxu0  ;;  %vm5680_vm5 = vmand %vm2216_vm10, %vm2332_vm11  ;;  %vm2220_vm11 = vcmp.ge.f32.partialorder %v2123_v59, %v5200_v5 }
 0x4c1   :  { %v1872_v48 = vpop.f32.mrb[153].mxu0  ;;  %vm5686_vm8 = vmand %vm2218_vm7, %vm2334_vm9  ;;  %vm2222_vm9 = vcmp.ge.f32.partialorder %v2124_v63, %v5200_v5 }
 0x4c2   :  { %v1874_v50 = vpop.f32.mrb[154].mxu0  ;;  %vm5690_vm4 = vmand %vm2215_vm14, %vm2331_vm12  ;;  %vm2338_vm14 = vcmp.lt.f32.partialorder %v2124_v63, %v5211_v9  ;;  %vm2219_vm12 = vcmp.ge.f32.partialorder %v2123_v59, %v5204_v7 }
 0x4c3   :  { %v3757_v51 = vpack.c.bf16 %v1874_v50, %v1870_v44  ;;  %v1876_v52 = vpop.f32.mrb[155].mxu0  ;;  %vm3759_vm10 = vmpackc.low %vm5686_vm8, %vm5680_vm5  ;;  %vm2335_vm5 = vcmp.lt.f32.partialorder %v2123_v59, %v5214_v14  ;;  %vm2337_vm8 = vcmp.lt.f32.partialorder %v2124_v63, %v5214_v14  ;;  %v4455_v44 = vld [vmem:[%s6373_s5] ss:$16 sps:$4 sm:$0xff]  }
 0x4c4   :  { %v3754_v55 = vpack.c.bf16 %v1876_v52, %v1872_v48  ;;  %v2129_v48 = vcvt.s32.f32 %v2072_v40  ;;  %v2130_v52 = vcvt.s32.f32 %v2073_v42  ;;  %v4482_v42 = vld [vmem:[%s6374_s6 + $0x28] sm:$0xff]  }
 0x4c6   :  { %3755 = vmatprep.subr.msk.bf16.mxu1 %vm3753_vm3, %v3754_v55  ;;  %vm5694_vm3 = vmand %vm2217_vm2, %vm2333_vm13  ;;  %vm2221_vm13 = vcmp.ge.f32.partialorder %v2124_v63, %v5204_v7 }
 0x4c7   :  { %3758 = vmatpush1.bf16.msk.msra.mxu1 %vm3756_vm15, %v3757_v51  ;;  %vm2336_vm15 = vcmp.lt.f32.partialorder %v2123_v59, %v5211_v9  ;;  %vm3762_vm7 = vmpackc.low %vm5694_vm3, %vm5690_vm4  ;;  %v4468_v51 = vld [vmem:[%s6373_s5 + $0xc] ss:$16 sps:$4 sm:$0xff]  }
 0x4c8   :  { %v1880_v60 = vpop.f32.mrb[156].mxu0  ;;  %vm5714_vm2 = vmand %vm2220_vm11, %vm2336_vm15  ;;  %vm2224_vm15 = vcmp.ge.f32.partialorder %v2125_v17, %v5200_v5 }
 0x4c9   :  { %v1882_v0 = vpop.f32.mrb[157].mxu0  ;;  %vm5720_vm4 = vmand %vm2222_vm9, %vm2338_vm14  ;;  %vm2226_vm14 = vcmp.ge.f32.partialorder %v2126_v20, %v5200_v5 }
 0x4ca   :  { %v1884_v3 = vpop.f32.mrb[158].mxu0  ;;  %vm5724_vm3 = vmand %vm2219_vm12, %vm2335_vm5  ;;  %vm2342_vm12 = vcmp.lt.f32.partialorder %v2126_v20, %v5211_v9  ;;  %vm2223_vm5 = vcmp.ge.f32.partialorder %v2125_v17, %v5204_v7 }
 0x4cb   :  { %v3763_v4 = vpack.c.bf16 %v1884_v3, %v1880_v60  ;;  %v1886_v6 = vpop.f32.mrb[159].mxu0  ;;  %vm3765_vm11 = vmpackc.low %vm5720_vm4, %vm5714_vm2  ;;  %vm2339_vm2 = vcmp.lt.f32.partialorder %v2125_v17, %v5214_v14  ;;  %vm2341_vm4 = vcmp.lt.f32.partialorder %v2126_v20, %v5214_v14  ;;  %v2074_v60 = vadd.s32 288, %v5198_v62  ;;  %v4460_v3 = vld [vmem:[%s6373_s5 + $0x20] ss:$16 sps:$4 sm:$0xff]  }
 0x4cc   :  { %v3760_v11 = vpack.c.bf16 %v1886_v6, %v1882_v0  ;;  %v2075_v0 = vadd.s32 296, %v5198_v62 }
 0x4cd   :  { %v2131_v6 = vcvt.s32.f32 %v2074_v60 }
 0x4ce   :  { %3761 = vmatprep.subr.msk.bf16.mxu1 %vm3759_vm10, %v3760_v11  ;;  %vm5728_vm10 = vmand %vm2221_vm13, %vm2337_vm8  ;;  %vm2225_vm8 = vcmp.ge.f32.partialorder %v2126_v20, %v5204_v7  ;;  %v4479_v11 = vld [vmem:[%s6374_s6 + $0x10] sm:$0xff]   ;;  %v2132_v16 = vcvt.s32.f32 %v2075_v0 }
 0x4cf   :  { %3764 = vmatpush1.bf16.msk.msra.mxu1 %vm3762_vm7, %v3763_v4  ;;  %vm2340_vm7 = vcmp.lt.f32.partialorder %v2125_v17, %v5211_v9  ;;  %vm3768_vm9 = vmpackc.low %vm5728_vm10, %vm5724_vm3  ;;  %3022 = vmatpush1.bf16.msra.mxu0 %v4479_v11 }
 0x4d0   :  { %v1890_v18 = vpop.f32.mrb[160].mxu0  ;;  %vm5748_vm13 = vmand %vm2224_vm15, %vm2340_vm7  ;;  %vm2228_vm7 = vcmp.ge.f32.partialorder %v2127_v31, %v5200_v5  ;;  %3023 = vmatprep.subr.bf16.mxu0 %v4524_v45 }
 0x4d1   :  { %v1892_v21 = vpop.f32.mrb[161].mxu0  ;;  %vm5754_vm3 = vmand %vm2226_vm14, %vm2342_vm12  ;;  %vm2230_vm12 = vcmp.ge.f32.partialorder %v2128_v34, %v5200_v5 }
 0x4d2   :  { %v1894_v23 = vpop.f32.mrb[162].mxu0  ;;  %vm5758_vm10 = vmand %vm2223_vm5, %vm2339_vm2  ;;  %vm2346_vm5 = vcmp.lt.f32.partialorder %v2128_v34, %v5211_v9  ;;  %vm2227_vm2 = vcmp.ge.f32.partialorder %v2127_v31, %v5204_v7 }
 0x4d3   :  { %v3769_v24 = vpack.c.bf16 %v1894_v23, %v1890_v18  ;;  %v1896_v25 = vpop.f32.mrb[163].mxu0  ;;  %vm3771_vm15 = vmpackc.low %vm5754_vm3, %vm5748_vm13  ;;  %vm2343_vm13 = vcmp.lt.f32.partialorder %v2127_v31, %v5214_v14  ;;  %vm2345_vm3 = vcmp.lt.f32.partialorder %v2128_v34, %v5214_v14  ;;  %v4480_v23 = vld [vmem:[%s6374_s6 + $0x18] sm:$0xff]  }
 0x4d4   :  { %v3766_v27 = vpack.c.bf16 %v1896_v25, %v1892_v21  ;;  %v2077_v25 = vadd.s32 312, %v5198_v62  ;;  %3024 = vmatpush1.bf16.msra.mxu0 %v4480_v23  ;;  %v2090_v23 = vadd.s32 416, %v5198_v62 }
 0x4d5   :  { %3025 = vmatprep.subr.bf16.mxu0 %v4524_v45 }
 0x4d6   :  { %3767 = vmatprep.subr.msk.bf16.mxu1 %vm3765_vm11, %v3766_v27  ;;  %vm5762_vm11 = vmand %vm2225_vm8, %vm2341_vm4  ;;  %vm2229_vm4 = vcmp.ge.f32.partialorder %v2128_v34, %v5204_v7  ;;  %v2084_v34 = vadd.s32 368, %v5198_v62 }
 0x4d7   :  { %3770 = vmatpush1.bf16.msk.msra.mxu1 %vm3768_vm9, %v3769_v24  ;;  %vm2344_vm9 = vcmp.lt.f32.partialorder %v2127_v31, %v5211_v9  ;;  %vm3774_vm14 = vmpackc.low %vm5762_vm11, %vm5758_vm10  ;;  %v3678_v31 = vcombine.high %v2691_v26, %v2691_v26 }
 0x4d8   :  { %v1900_v32 = vpop.f32.mrb[164].mxu0  ;;  %vm5785_vm8 = vmand %vm2228_vm7, %vm2344_vm9  ;;  %vm2232_vm9 = vcmp.ge.f32.partialorder %v2129_v48, %v5200_v5 }
 0x4d9   :  { %v1902_v35 = vpop.f32.mrb[165].mxu0  ;;  %vm5791_vm10 = vmand %vm2230_vm12, %vm2346_vm5  ;;  %vm2234_vm5 = vcmp.ge.f32.partialorder %v2130_v52, %v5200_v5 }
 0x4da   :  { %v1904_v37 = vpop.f32.mrb[166].mxu0  ;;  %vm5798_vm11 = vmand %vm2227_vm2, %vm2343_vm13  ;;  %vm2350_vm2 = vcmp.lt.f32.partialorder %v2130_v52, %v5211_v9  ;;  %vm2231_vm13 = vcmp.ge.f32.partialorder %v2129_v48, %v5204_v7 }
 0x4db   :  { %v3775_v38 = vpack.c.bf16 %v1904_v37, %v1900_v32  ;;  %v1906_v39 = vpop.f32.mrb[167].mxu0  ;;  %vm3777_vm7 = vmpackc.low %vm5791_vm10, %vm5785_vm8  ;;  %vm2347_vm8 = vcmp.lt.f32.partialorder %v2129_v48, %v5214_v14  ;;  %vm2349_vm10 = vcmp.lt.f32.partialorder %v2130_v52, %v5214_v14  ;;  %v4481_v32 = vld [vmem:[%s6374_s6 + $0x20] sm:$0xff]   ;;  %v2092_v37 = vadd.s32 432, %v5198_v62 }
 0x4dc   :  { %v3772_v41 = vpack.c.bf16 %v1906_v39, %v1902_v35  ;;  %v2134_v35 = vcvt.s32.f32 %v2077_v25  ;;  %3026 = vmatpush1.bf16.msra.mxu0 %v4481_v32 }
 0x4dd   :  { %3027 = vmatprep.subr.bf16.mxu0 %v4524_v45 }
 0x4de   :  { %3773 = vmatprep.subr.msk.bf16.mxu1 %vm3771_vm15, %v3772_v41  ;;  %vm5802_vm15 = vmand %vm2229_vm4, %vm2345_vm3  ;;  %vm2233_vm3 = vcmp.ge.f32.partialorder %v2130_v52, %v5204_v7  ;;  %v2078_v41 = vadd.s32 320, %v5198_v62  ;;  %v4483_v52 = vld [vmem:[%s6374_s6 + $0x30] sm:$0xff]  }
 0x4df   :  { %3776 = vmatpush1.bf16.msk.msra.mxu1 %vm3774_vm14, %v3775_v38  ;;  %vm2348_vm14 = vcmp.lt.f32.partialorder %v2129_v48, %v5211_v9  ;;  %vm3780_vm12 = vmpackc.low %vm5802_vm15, %vm5798_vm11  ;;  %v3677_v48 = vcombine.low %v2691_v26, %v2691_v26 }
 0x4e0   :  { %v1910_v50 = vpop.f32.mrb[168].mxu0  ;;  %vm5831_vm4 = vmand %vm2232_vm9, %vm2348_vm14  ;;  %vm2236_vm14 = vcmp.ge.f32.partialorder %v2131_v6, %v5200_v5  ;;  %3028 = vmatpush1.bf16.msra.mxu0 %v4482_v42 }
 0x4e1   :  { %v1912_v53 = vpop.f32.mrb[169].mxu0  ;;  %vm5840_vm11 = vmand %vm2234_vm5, %vm2350_vm2  ;;  %vm2238_vm2 = vcmp.ge.f32.partialorder %v2132_v16, %v5200_v5  ;;  %3029 = vmatprep.subr.bf16.mxu0 %v4524_v45 }
 0x4e2   :  { %v1914_v57 = vpop.f32.mrb[170].mxu0  ;;  %2815 = vmatmul.mubr.bf16.vlgmr.msra.gmra.mrb[168].mxu1 %v4455_v44  ;;  %vm5850_vm15 = vmand %vm2231_vm13, %vm2347_vm8  ;;  %vm2354_vm13 = vcmp.lt.f32.partialorder %v2132_v16, %v5211_v9  ;;  %vm2235_vm8 = vcmp.ge.f32.partialorder %v2131_v6, %v5204_v7 }
 0x4e3   :  { %v3781_v58 = vpack.c.bf16 %v1914_v57, %v1910_v50  ;;  %v1916_v59 = vpop.f32.mrb[171].mxu0  ;;  %2824 = vmatprep.mubr.bf16.mxu1 %v4458_v49  ;;  %vm3783_vm9 = vmpackc.low %vm5840_vm11, %vm5831_vm4  ;;  %v2135_v50 = vcvt.s32.f32 %v2078_v41 }
 0x4e4   :  { %v3778_v63 = vpack.c.bf16 %v1916_v59, %v1912_v53  ;;  %vm5900_vm1 = vmand %vm2238_vm2, %vm2354_vm13  ;;  %vm2358_vm2 = vcmp.lt.f32.partialorder %v2134_v35, %v5211_v9  ;;  %vm2239_vm13 = vcmp.ge.f32.partialorder %v2133_v30, %v5204_v7  ;;  %3030 = vmatpush1.bf16.msra.mxu0 %v4483_v52  ;;  %v2087_v52 = vadd.s32 392, %v5198_v62 }
 0x4e5   :  { %3031 = vmatprep.subr.bf16.mxu0 %v4524_v45 }
 0x4e6   :  { %3779 = vmatprep.subr.msk.bf16.mxu1 %vm3777_vm7, %v3778_v63  ;;  %vm5855_vm7 = vmand %vm2233_vm3, %vm2349_vm10  ;;  %vm2351_vm3 = vcmp.lt.f32.partialorder %v2131_v6, %v5214_v14  ;;  %v2080_v63 = vadd.s32 336, %v5198_v62 }
 0x4e7   :  { %3782 = vmatpush1.bf16.msk.msra.mxu1 %vm3780_vm12, %v3781_v58  ;;  %vm2352_vm12 = vcmp.lt.f32.partialorder %v2131_v6, %v5211_v9  ;;  %vm3786_vm5 = vmpackc.low %vm5855_vm7, %vm5850_vm15  ;;  %vm2237_vm15 = vcmp.ge.f32.partialorder %v2132_v16, %v5204_v7  ;;  %vm2353_vm7 = vcmp.lt.f32.partialorder %v2132_v16, %v5214_v14  ;;  %v4471_v16 = vld [vmem:[%s6373_s5 + $0x28] ss:$16 sps:$4 sm:$0xff]  }
 0x4e8   :  { %v1920_v12 = vpop.f32.mrb[172].mxu0  ;;  %vm5891_vm10 = vmand %vm2236_vm14, %vm2352_vm12  ;;  %vm2240_vm14 = vcmp.ge.f32.partialorder %v2133_v30, %v5200_v5  ;;  %vm2356_vm12 = vcmp.lt.f32.partialorder %v2133_v30, %v5211_v9  ;;  %v2137_v6 = vcvt.s32.f32 %v2080_v63 }
 0x4e9   :  { %v1922_v17 = vpop.f32.mrb[173].mxu0  ;;  %vm5907_vm4 = vmand %vm2235_vm8, %vm2351_vm3  ;;  %vm2355_vm8 = vcmp.lt.f32.partialorder %v2133_v30, %v5214_v14 }
 0x4ea   :  { %v1924_v19 = vpop.f32.mrb[174].mxu0  ;;  %2825 = vmatmul.mubr.bf16.gmra.mrb[172].mxu1 %v4460_v3  ;;  %vm5912_vm11 = vmand %vm2237_vm15, %vm2353_vm7  ;;  %vm2357_vm15 = vcmp.lt.f32.partialorder %v2134_v35, %v5214_v14  ;;  %v2088_v3 = vadd.s32 400, %v5198_v62 }
 0x4eb   :  { %v3787_v20 = vpack.c.bf16 %v1924_v19, %v1920_v12  ;;  %v1926_v21 = vpop.f32.mrb[175].mxu0  ;;  %2834 = vmatprep.mubr.bf16.mxu1 %v4461_v10  ;;  %vm5938_vm3 = vmand %vm2240_vm14, %vm2356_vm12  ;;  %vm2244_vm12 = vcmp.ge.f32.partialorder %v2135_v50, %v5200_v5  ;;  %v2138_v12 = vcvt.s32.f32 %v2081_v2 }
 0x4ec   :  { %v3784_v24 = vpack.c.bf16 %v1926_v21, %v1922_v17 }
 0x4ee   :  { %3785 = vmatprep.subr.msk.bf16.mxu1 %vm3783_vm9, %v3784_v24  ;;  %vm3789_vm9 = vmpackc.low %vm5900_vm1, %vm5891_vm10  ;;  %vm2242_vm1 = vcmp.ge.f32.partialorder %v2134_v35, %v5200_v5  ;;  %vm2241_vm10 = vcmp.ge.f32.partialorder %v2134_v35, %v5204_v7 }
 0x4ef   :  { %3788 = vmatpush1.bf16.msk.msra.mxu1 %vm3786_vm5, %v3787_v20  ;;  %vm3792_vm5 = vmpackc.low %vm5912_vm11, %vm5907_vm4  ;;  %vm2763_vm11 = vcmask 539648   ;;  %v2082_v20 = vadd.s32 352, %v5198_v62 }
 0x4f0   :  { %v1930_v33 = vpop.f32.mrb[176].mxu0  ;;  %vm5944_vm7 = vmand %vm2242_vm1, %vm2358_vm2  ;;  %vm2246_vm2 = vcmp.ge.f32.partialorder %v2136_v56, %v5200_v5 }
 0x4f1   :  { %v1932_v36 = vpop.f32.mrb[177].mxu0  ;;  %vm5954_vm4 = vmand %vm2239_vm13, %vm2355_vm8  ;;  %vm2362_vm13 = vcmp.lt.f32.partialorder %v2136_v56, %v5211_v9  ;;  %vm2243_vm8 = vcmp.ge.f32.partialorder %v2135_v50, %v5204_v7  ;;  %v2139_v25 = vcvt.s32.f32 %v2082_v20 }
 0x4f2   :  { %v1934_v38 = vpop.f32.mrb[178].mxu0  ;;  %2835 = vmatmul.mubr.bf16.gmra.mrb[176].mxu1 %v4463_v28  ;;  %vm3795_vm14 = vmpackc.low %vm5944_vm7, %vm5938_vm3  ;;  %vm2359_vm3 = vcmp.lt.f32.partialorder %v2135_v50, %v5214_v14  ;;  %vm2361_vm7 = vcmp.lt.f32.partialorder %v2136_v56, %v5214_v14  ;;  %v2140_v28 = vcvt.s32.f32 %v2083_v22 }
 0x4f3   :  { %v3793_v39 = vpack.c.bf16 %v1934_v38, %v1930_v33  ;;  %v1936_v40 = vpop.f32.mrb[179].mxu0  ;;  %2844 = vmatprep.mubr.bf16.mxu1 %v3678_v31 }
 0x4f4   :  { %v3790_v44 = vpack.c.bf16 %v1936_v40, %v1932_v36  ;;  %v2085_v36 = vadd.s32 376, %v5198_v62 }
 0x4f6   :  { %3791 = vmatprep.subr.msk.bf16.mxu1 %vm3789_vm9, %v3790_v44  ;;  %vm5961_vm9 = vmand %vm2241_vm10, %vm2357_vm15  ;;  %vm2245_vm15 = vcmp.ge.f32.partialorder %v2136_v56, %v5204_v7  ;;  %v2142_v42 = vcvt.s32.f32 %v2085_v36 }
 0x4f7   :  { %3794 = vmatpush1.bf16.msk.msra.mxu1 %vm3792_vm5, %v3793_v39  ;;  %vm2360_vm5 = vcmp.lt.f32.partialorder %v2135_v50, %v5211_v9  ;;  %vm3798_vm1 = vmpackc.low %vm5961_vm9, %vm5954_vm4  ;;  %v2141_v39 = vcvt.s32.f32 %v2084_v34  ;;  %v2086_v50 = vadd.s32 384, %v5198_v62 }
 0x4f8   :  { %v1940_v53 = vpop.f32.mrb[180].mxu0  ;;  %vm5983_vm10 = vmand %vm2244_vm12, %vm2360_vm5  ;;  %vm2248_vm5 = vcmp.ge.f32.partialorder %v2137_v6, %v5200_v5 }
 0x4f9   :  { %v1942_v57 = vpop.f32.mrb[181].mxu0  ;;  %vm5989_vm4 = vmand %vm2246_vm2, %vm2362_vm13  ;;  %vm2250_vm13 = vcmp.ge.f32.partialorder %v2138_v12, %v5200_v5  ;;  %v2143_v56 = vcvt.s32.f32 %v2086_v50 }
 0x4fa   :  { %v1944_v59 = vpop.f32.mrb[182].mxu0  ;;  %2845 = vmatmul.mubr.bf16.gmra.mrb[180].mxu1 %v3677_v48  ;;  %vm5993_vm9 = vmand %vm2243_vm8, %vm2359_vm3  ;;  %vm2366_vm8 = vcmp.lt.f32.partialorder %v2138_v12, %v5211_v9  ;;  %vm2247_vm3 = vcmp.ge.f32.partialorder %v2137_v6, %v5204_v7 }
 0x4fb   :  { %v3799_v60 = vpack.c.bf16 %v1944_v59, %v1940_v53  ;;  %v1946_v61 = vpop.f32.mrb[183].mxu0  ;;  %3850 = vmatprep.mubr.msk.bf16.mxu1 %vm2763_vm11, %v4468_v51  ;;  %vm3801_vm12 = vmpackc.low %vm5989_vm4, %vm5983_vm10  ;;  %vm2363_vm10 = vcmp.lt.f32.partialorder %v2137_v6, %v5214_v14  ;;  %vm2365_vm4 = vcmp.lt.f32.partialorder %v2138_v12, %v5214_v14  ;;  %v2144_v59 = vcvt.s32.f32 %v2087_v52 }
 0x4fc   :  { %v3796_v0 = vpack.c.bf16 %v1946_v61, %v1942_v57  ;;  %v2094_v53 = vadd.s32 448, %v5198_v62 }
 0x4fe   :  { %3797 = vmatprep.subr.msk.bf16.mxu1 %vm3795_vm14, %v3796_v0  ;;  %vm5997_vm14 = vmand %vm2245_vm15, %vm2361_vm7  ;;  %vm2249_vm7 = vcmp.ge.f32.partialorder %v2138_v12, %v5204_v7  ;;  %v2145_v12 = vcvt.s32.f32 %v2088_v3 }
 0x4ff   :  { %3800 = vmatpush1.bf16.msk.msra.mxu1 %vm3798_vm1, %v3799_v60  ;;  %vm2364_vm1 = vcmp.lt.f32.partialorder %v2137_v6, %v5211_v9  ;;  %vm3804_vm2 = vmpackc.low %vm5997_vm14, %vm5993_vm9  ;;  %v2089_v6 = vadd.s32 408, %v5198_v62 }
 0x500   :  { %v1950_v10 = vpop.f32.mrb[184].mxu0  ;;  %vm6017_vm15 = vmand %vm2248_vm5, %vm2364_vm1  ;;  %vm2252_vm1 = vcmp.ge.f32.partialorder %v2139_v25, %v5200_v5 }
 0x501   :  { %v1952_v15 = vpop.f32.mrb[185].mxu0  ;;  %vm6023_vm9 = vmand %vm2250_vm13, %vm2366_vm8  ;;  %vm2254_vm8 = vcmp.ge.f32.partialorder %v2140_v28, %v5200_v5 }
 0x502   :  { %v1954_v17 = vpop.f32.mrb[186].mxu0  ;;  %vm6027_vm14 = vmand %vm2247_vm3, %vm2363_vm10  ;;  %vm2370_vm3 = vcmp.lt.f32.partialorder %v2140_v28, %v5211_v9  ;;  %vm2251_vm10 = vcmp.ge.f32.partialorder %v2139_v25, %v5204_v7 }
 0x503   :  { %v3805_v18 = vpack.c.bf16 %v1954_v17, %v1950_v10  ;;  %v1956_v19 = vpop.f32.mrb[187].mxu0  ;;  %vm3807_vm5 = vmpackc.low %vm6023_vm9, %vm6017_vm15  ;;  %vm2367_vm15 = vcmp.lt.f32.partialorder %v2139_v25, %v5214_v14  ;;  %vm2369_vm9 = vcmp.lt.f32.partialorder %v2140_v28, %v5214_v14  ;;  %v2146_v17 = vcvt.s32.f32 %v2089_v6 }
 0x504   :  { %v3802_v21 = vpack.c.bf16 %v1956_v19, %v1952_v15  ;;  %v4474_v19 = vld [vmem:[%s6373_s5 + $0x48] ss:$16 sps:$4 sm:$0xff]  }
 0x506   :  { %3803 = vmatprep.subr.msk.bf16.mxu1 %vm3801_vm12, %v3802_v21  ;;  %vm6031_vm12 = vmand %vm2249_vm7, %vm2365_vm4  ;;  %vm2253_vm4 = vcmp.ge.f32.partialorder %v2140_v28, %v5204_v7  ;;  %v2147_v28 = vcvt.s32.f32 %v2090_v23  ;;  %v4485_v23 = vld [vmem:[%s6374_s6 + $0x40] sm:$0xff]  }
 0x507   :  { %3806 = vmatpush1.bf16.msk.msra.mxu1 %vm3804_vm2, %v3805_v18  ;;  %vm2368_vm2 = vcmp.lt.f32.partialorder %v2139_v25, %v5211_v9  ;;  %vm3810_vm13 = vmpackc.low %vm6031_vm12, %vm6027_vm14  ;;  %v2091_v25 = vadd.s32 424, %v5198_v62 }
 0x508   :  { %v1960_v26 = vpop.f32.mrb[188].mxu0  ;;  %vm6051_vm7 = vmand %vm2252_vm1, %vm2368_vm2  ;;  %vm2256_vm2 = vcmp.ge.f32.partialorder %v2141_v39, %v5200_v5 }
 0x509   :  { %v1962_v29 = vpop.f32.mrb[189].mxu0  ;;  %vm6057_vm14 = vmand %vm2254_vm8, %vm2370_vm3  ;;  %vm2258_vm3 = vcmp.ge.f32.partialorder %v2142_v42, %v5200_v5 }
 0x50a   :  { %v1964_v31 = vpop.f32.mrb[190].mxu0  ;;  %vm6061_vm12 = vmand %vm2251_vm10, %vm2367_vm15  ;;  %vm2374_vm10 = vcmp.lt.f32.partialorder %v2142_v42, %v5211_v9  ;;  %vm2255_vm15 = vcmp.ge.f32.partialorder %v2141_v39, %v5204_v7 }
 0x50b   :  { %v3811_v32 = vpack.c.bf16 %v1964_v31, %v1960_v26  ;;  %v1966_v33 = vpop.f32.mrb[191].mxu0  ;;  %vm3813_vm1 = vmpackc.low %vm6057_vm14, %vm6051_vm7  ;;  %vm2371_vm7 = vcmp.lt.f32.partialorder %v2141_v39, %v5214_v14  ;;  %vm2373_vm14 = vcmp.lt.f32.partialorder %v2142_v42, %v5214_v14  ;;  %v2148_v31 = vcvt.s32.f32 %v2091_v25 }
 0x50c   :  { %v3808_v35 = vpack.c.bf16 %v1966_v33, %v1962_v29 }
 0x50e   :  { %3809 = vmatprep.subr.msk.bf16.mxu1 %vm3807_vm5, %v3808_v35  ;;  %vm6065_vm5 = vmand %vm2253_vm4, %vm2369_vm9  ;;  %vm2257_vm9 = vcmp.ge.f32.partialorder %v2142_v42, %v5204_v7  ;;  %v2149_v42 = vcvt.s32.f32 %v2092_v37 }
 0x50f   :  { %3812 = vmatpush1.bf16.msk.msra.mxu1 %vm3810_vm13, %v3811_v32  ;;  %vm2372_vm13 = vcmp.lt.f32.partialorder %v2141_v39, %v5211_v9  ;;  %vm3816_vm8 = vmpackc.low %vm6065_vm5, %vm6061_vm12  ;;  %v2093_v39 = vadd.s32 440, %v5198_v62 }
 0x510   :  { %v1970_v40 = vpop.f32.mrb[192].mxu0  ;;  %vm6085_vm4 = vmand %vm2256_vm2, %vm2372_vm13  ;;  %vm2260_vm13 = vcmp.ge.f32.partialorder %v2143_v56, %v5200_v5 }
 0x511   :  { %v1972_v44 = vpop.f32.mrb[193].mxu0  ;;  %vm6091_vm12 = vmand %vm2258_vm3, %vm2374_vm10  ;;  %vm2262_vm10 = vcmp.ge.f32.partialorder %v2144_v59, %v5200_v5 }
 0x512   :  { %v1974_v47 = vpop.f32.mrb[194].mxu0  ;;  %vm6095_vm5 = vmand %vm2255_vm15, %vm2371_vm7  ;;  %vm2378_vm15 = vcmp.lt.f32.partialorder %v2144_v59, %v5211_v9  ;;  %vm2259_vm7 = vcmp.ge.f32.partialorder %v2143_v56, %v5204_v7 }
 0x513   :  { %v3817_v48 = vpack.c.bf16 %v1974_v47, %v1970_v40  ;;  %v1976_v49 = vpop.f32.mrb[195].mxu0  ;;  %vm3819_vm2 = vmpackc.low %vm6091_vm12, %vm6085_vm4  ;;  %vm2375_vm4 = vcmp.lt.f32.partialorder %v2143_v56, %v5214_v14  ;;  %vm2377_vm12 = vcmp.lt.f32.partialorder %v2144_v59, %v5214_v14  ;;  %v2150_v47 = vcvt.s32.f32 %v2093_v39 }
 0x514   :  { %v3814_v51 = vpack.c.bf16 %v1976_v49, %v1972_v44 }
 0x516   :  { %3815 = vmatprep.subr.msk.bf16.mxu1 %vm3813_vm1, %v3814_v51  ;;  %vm6099_vm1 = vmand %vm2257_vm9, %vm2373_vm14  ;;  %vm2261_vm14 = vcmp.ge.f32.partialorder %v2144_v59, %v5204_v7 }
 0x517   :  { %3818 = vmatpush1.bf16.msk.msra.mxu1 %vm3816_vm8, %v3817_v48  ;;  %vm2376_vm8 = vcmp.lt.f32.partialorder %v2143_v56, %v5211_v9  ;;  %vm3822_vm3 = vmpackc.low %vm6099_vm1, %vm6095_vm5  ;;  %v2151_v56 = vcvt.s32.f32 %v2094_v53 }
 0x518   :  { %v1980_v57 = vpop.f32.mrb[196].mxu0  ;;  %vm6119_vm9 = vmand %vm2260_vm13, %vm2376_vm8  ;;  %vm2264_vm8 = vcmp.ge.f32.partialorder %v2145_v12, %v5200_v5 }
 0x519   :  { %v1982_v60 = vpop.f32.mrb[197].mxu0  ;;  %vm6125_vm5 = vmand %vm2262_vm10, %vm2378_vm15  ;;  %vm2266_vm15 = vcmp.ge.f32.partialorder %v2146_v17, %v5200_v5 }
 0x51a   :  { %v1984_v63 = vpop.f32.mrb[198].mxu0  ;;  %vm6129_vm1 = vmand %vm2259_vm7, %vm2375_vm4  ;;  %vm2382_vm7 = vcmp.lt.f32.partialorder %v2146_v17, %v5211_v9  ;;  %vm2263_vm4 = vcmp.ge.f32.partialorder %v2145_v12, %v5204_v7 }
 0x51b   :  { %v3823_v0 = vpack.c.bf16 %v1984_v63, %v1980_v57  ;;  %v1986_v2 = vpop.f32.mrb[199].mxu0  ;;  %vm3825_vm13 = vmpackc.low %vm6125_vm5, %vm6119_vm9  ;;  %vm2379_vm9 = vcmp.lt.f32.partialorder %v2145_v12, %v5214_v14  ;;  %vm2381_vm5 = vcmp.lt.f32.partialorder %v2146_v17, %v5214_v14 }
 0x51c   :  { %v3820_v4 = vpack.c.bf16 %v1986_v2, %v1982_v60 }
 0x51e   :  { %3821 = vmatprep.subr.msk.bf16.mxu1 %vm3819_vm2, %v3820_v4  ;;  %vm6133_vm2 = vmand %vm2261_vm14, %vm2377_vm12  ;;  %vm2265_vm12 = vcmp.ge.f32.partialorder %v2146_v17, %v5204_v7  ;;  %v4472_v17 = vld [vmem:[%s6373_s5 + $0x4c] ss:$16 sps:$4 sm:$0xff]  }
 0x51f   :  { %3824 = vmatpush1.bf16.msk.msra.mxu1 %vm3822_vm3, %v3823_v0  ;;  %vm2380_vm3 = vcmp.lt.f32.partialorder %v2145_v12, %v5211_v9  ;;  %vm3828_vm10 = vmpackc.low %vm6133_vm2, %vm6129_vm1 }
 0x520   :  { %v1990_v15 = vpop.f32.mrb[200].mxu0  ;;  %vm6153_vm14 = vmand %vm2264_vm8, %vm2380_vm3  ;;  %vm2268_vm3 = vcmp.ge.f32.partialorder %v2147_v28, %v5200_v5 }
 0x521   :  { %v1992_v18 = vpop.f32.mrb[201].mxu0  ;;  %vm6159_vm1 = vmand %vm2266_vm15, %vm2382_vm7  ;;  %vm2270_vm7 = vcmp.ge.f32.partialorder %v2148_v31, %v5200_v5 }
 0x522   :  { %v1994_v20 = vpop.f32.mrb[202].mxu0  ;;  %vm6163_vm2 = vmand %vm2263_vm4, %vm2379_vm9  ;;  %vm2386_vm4 = vcmp.lt.f32.partialorder %v2148_v31, %v5211_v9  ;;  %vm2267_vm9 = vcmp.ge.f32.partialorder %v2147_v28, %v5204_v7 }
 0x523   :  { %v3829_v21 = vpack.c.bf16 %v1994_v20, %v1990_v15  ;;  %v1996_v22 = vpop.f32.mrb[203].mxu0  ;;  %vm3831_vm8 = vmpackc.low %vm6159_vm1, %vm6153_vm14  ;;  %vm2383_vm14 = vcmp.lt.f32.partialorder %v2147_v28, %v5214_v14  ;;  %vm2385_vm1 = vcmp.lt.f32.partialorder %v2148_v31, %v5214_v14 }
 0x524   :  { %v3826_v24 = vpack.c.bf16 %v1996_v22, %v1992_v18  ;;  %v2692_v18 = vld [vmem:[%s6373_s5 + $0x68] sm:$0x11]  ;;  %v4484_v22 = vld [vmem:[%s6374_s6 + $0x38] sm:$0xff]  }
 0x525   :  { %v3680_v20 = vcombine.high %v2692_v18, %v2692_v18  ;;  %3032 = vmatpush1.bf16.msra.mxu0 %v4484_v22 }
 0x526   :  { %3827 = vmatprep.subr.msk.bf16.mxu1 %vm3825_vm13, %v3826_v24  ;;  %vm6167_vm13 = vmand %vm2265_vm12, %vm2381_vm5  ;;  %vm2269_vm5 = vcmp.ge.f32.partialorder %v2148_v31, %v5204_v7  ;;  %3033 = vmatprep.subr.bf16.mxu0 %v4524_v45 }
 0x527   :  { %3830 = vmatpush1.bf16.msk.msra.mxu1 %vm3828_vm10, %v3829_v21  ;;  %vm2384_vm10 = vcmp.lt.f32.partialorder %v2147_v28, %v5211_v9  ;;  %vm3834_vm15 = vmpackc.low %vm6167_vm13, %vm6163_vm2  ;;  %v3679_v21 = vcombine.low %v2692_v18, %v2692_v18  ;;  %v4491_v18 = vld [vmem:[%s6378_s10 + $0x20] sm:$0xff]  }
 0x528   :  { %v2000_v29 = vpop.f32.mrb[204].mxu0  ;;  %vm6187_vm12 = vmand %vm2268_vm3, %vm2384_vm10  ;;  %vm2272_vm10 = vcmp.ge.f32.partialorder %v2149_v42, %v5200_v5 }
 0x529   :  { %v2002_v32 = vpop.f32.mrb[205].mxu0  ;;  %vm6193_vm2 = vmand %vm2270_vm7, %vm2386_vm4  ;;  %vm2274_vm4 = vcmp.ge.f32.partialorder %v2150_v47, %v5200_v5  ;;  %3034 = vmatpush1.bf16.msra.mxu0 %v4485_v23 }
 0x52a   :  { %v2004_v34 = vpop.f32.mrb[206].mxu0  ;;  %vm6197_vm13 = vmand %vm2267_vm9, %vm2383_vm14  ;;  %vm2390_vm9 = vcmp.lt.f32.partialorder %v2150_v47, %v5211_v9  ;;  %vm2271_vm14 = vcmp.ge.f32.partialorder %v2149_v42, %v5204_v7  ;;  %4285 = vmatprep.subr.bf16.mxu0 %v4521_v1 }
 0x52b   :  { %v3835_v35 = vpack.c.bf16 %v2004_v34, %v2000_v29  ;;  %v2006_v36 = vpop.f32.mrb[207].mxu0  ;;  %vm3837_vm3 = vmpackc.low %vm6193_vm2, %vm6187_vm12  ;;  %vm2387_vm12 = vcmp.lt.f32.partialorder %v2149_v42, %v5214_v14  ;;  %vm2389_vm2 = vcmp.lt.f32.partialorder %v2150_v47, %v5214_v14 }
 0x52c   :  { %v3832_v38 = vpack.c.bf16 %v2006_v36, %v2002_v32 }
 0x52e   :  { %3833 = vmatprep.subr.msk.bf16.mxu1 %vm3831_vm8, %v3832_v38  ;;  %vm6201_vm8 = vmand %vm2269_vm5, %vm2385_vm1  ;;  %vm2273_vm1 = vcmp.ge.f32.partialorder %v2150_v47, %v5204_v7 }
 0x52f   :  { %3836 = vmatpush1.bf16.msk.msra.mxu1 %vm3834_vm15, %v3835_v35  ;;  %vm2388_vm15 = vcmp.lt.f32.partialorder %v2149_v42, %v5211_v9  ;;  %vm3840_vm7 = vmpackc.low %vm6201_vm8, %vm6197_vm13 }
 0x530   :  { %v2010_v44 = vpop.f32.mrb[208].mxu0  ;;  %vm6220_vm5 = vmand %vm2272_vm10, %vm2388_vm15  ;;  %vm2275_vm10 = vcmp.ge.f32.partialorder %v2151_v56, %v5204_v7  ;;  %vm2391_vm15 = vcmp.lt.f32.partialorder %v2151_v56, %v5214_v14 }
 0x531   :  { %v2012_v48 = vpop.f32.mrb[209].mxu0  ;;  %vm6226_vm13 = vmand %vm2274_vm4, %vm2390_vm9  ;;  %vm2276_vm4 = vcmp.ge.f32.partialorder %v2151_v56, %v5200_v5  ;;  %vm2392_vm9 = vcmp.lt.f32.partialorder %v2151_v56, %v5211_v9  ;;  %v4466_v5 = vld [vmem:[%s6373_s5 + $0x8] ss:$16 sps:$4 sm:$0xff]   ;;  %v4469_v9 = vld [vmem:[%s6373_s5 + $0x2c] ss:$16 sps:$4 sm:$0xff]  }
 0x532   :  { %v2014_v50 = vpop.f32.mrb[210].mxu0  ;;  %vm6230_vm8 = vmand %vm2271_vm14, %vm2387_vm12 }
 0x533   :  { %v3841_v51 = vpack.c.bf16 %v2014_v50, %v2010_v44  ;;  %v2016_v52 = vpop.f32.mrb[211].mxu0  ;;  %vm2505_vm12 = vmand %vm2275_vm10, %vm2391_vm15 }
 0x534   :  { %v3838_v55 = vpack.c.bf16 %v2016_v52, %v2012_v48 }
 0x536   :  { %3839 = vmatprep.subr.msk.bf16.mxu1 %vm3837_vm3, %v3838_v55  ;;  %vm2503_vm3 = vmand %vm2273_vm1, %vm2389_vm2 }
 0x537   :  { %3842 = vmatpush1.bf16.msk.msra.mxu1 %vm3840_vm7, %v3841_v51  ;;  %vm3843_vm7 = vmpackc.low %vm6226_vm13, %vm6220_vm5 }
 0x538   :  { %v2020_v58 = vpop.f32.mrb[212].mxu0  ;;  %vm3846_vm14 = vmpackc.low %vm2503_vm3, %vm6230_vm8 }
 0x539   :  { %v2022_v60 = vpop.f32.mrb[213].mxu0  ;;  %vm2506_vm1 = vmand %vm2276_vm4, %vm2392_vm9 }
 0x53a   :  { %v2024_v61 = vpop.f32.mrb[214].mxu0 }
 0x53b   :  { %v3847_v63 = vpack.c.bf16 %v2024_v61, %v2020_v58  ;;  %v2026_v0 = vpop.f32.mrb[215].mxu0 }
 0x53c   :  { %v3844_v2 = vpack.c.bf16 %v2026_v0, %v2022_v60 }
 0x53e   :  { %3845 = vmatprep.subr.msk.bf16.mxu1 %vm3843_vm7, %v3844_v2 }
 0x53f   :  { %3848 = vmatpush1.bf16.msk.msra.mxu1 %vm3846_vm14, %v3847_v63  ;;  %vm3100_vm14 = vcmask 408576  }
 0x540   :  { %v2030_v7 = vpop.f32.mrb[216].mxu0 }
 0x541   :  { %v2619_v3 = vsel %vm2505_vm12, %v2030_v7, 0.0  ;;  %v2032_v14 = vpop.f32.mrb[217].mxu0 }
 0x542   :  { %v2677_v4 = vpack.c.bf16 %v2619_v3, %v2619_v3  ;;  %v2620_v6 = vsel %vm2506_vm1, %v2032_v14, 0.0  ;;  %v2034_v10 = vpop.f32.mrb[218].mxu0 }
 0x543   :  { %v2678_v11 = vpack.c.bf16 %v2620_v6, %v2620_v6  ;;  %v2035_v12 = vpop.f32.mrb[219].mxu0 }
 0x544   :  { %v2777_v15 = vsel %vm1320_vm6, %v2677_v4, 0  ;;  %v3099_v4 = vld [vmem:[%s6375_s7] sm:$0xf] }
 0x545   :  { %3849 = vmatprep.subr.msk.bf16.mxu1 %vm1320_vm6, %v2678_v11 }
 0x546   :  { %2878 = vmatpush1.bf16.msra.mxu1 %v2777_v15 }
 0x547   :  { %4267 = vmatprep.subr.bf16.mxu1 %v4521_v1 }
 0x549   :  { %2886 = vmatmul.mubr.bf16.vlgmr.msra.gmra.mrb[168].mxu1 %v4466_v5  ;;  %v4487_v5 = vld [vmem:[%s6378_s10] sm:$0xff]  }
 0x54a   :  { %3851 = vmatprep.mubr.msk.bf16.mxu1 %vm2763_vm11, %v4469_v9  ;;  %v4488_v9 = vld [vmem:[%s6378_s10 + $0x8] sm:$0xff]  }
 0x551   :  { %2896 = vmatmul.mubr.bf16.gmra.mrb[172].mxu1 %v4471_v16  ;;  %v4489_v16 = vld [vmem:[%s6378_s10 + $0x10] sm:$0xff]  }
 0x552   :  { %3852 = vmatprep.mubr.msk.bf16.mxu1 %vm2763_vm11, %v4472_v17  ;;  %v4490_v17 = vld [vmem:[%s6378_s10 + $0x18] sm:$0xff]  }
 0x559   :  { %2906 = vmatmul.mubr.bf16.gmra.mrb[176].mxu1 %v4474_v19  ;;  %v4492_v19 = vld [vmem:[%s6378_s10 + $0x28] sm:$0xff]  }
 0x55a   :  { %3853 = vmatprep.mubr.msk.bf16.mxu1 %vm2763_vm11, %v3680_v20  ;;  %vm3004_vm11 = vcmask 130048   ;;  %v4493_v20 = vld [vmem:[%s6378_s10 + $0x30] sm:$0xff]  }
 0x561   :  { %2916 = vmatmul.mubr.bf16.gmra.mrb[180].mxu1 %v3679_v21  ;;  %v3199_v21 = vmul.f32 0.03125, %v2155_v54  ;;  %v4494_v54 = vld [vmem:[%s6378_s10 + $0x38] sm:$0xff]   ;;  %s4525_s10 = smov [#allocation2]  }
 0x562   :  { %4275 = vmatprep.mubr.msk.bf16.mxu1 %vm4522_vm0, %v4521_v1  ;;  %s3431_s24 = sshll.u32 %s4525_s10, 4  ;;  %s3432_s24 = int_to_ptr.vmem [resolvable:$true] %s3431_s24 }
 0x563   :  { %v3200_v22 = vfloor.f32 %v3199_v21  ;;  %p4502_p1 = scmp.lt.s32.totalorder %s3432_s24, %s3432_s24 }
 0x565   :  { %v3201_v23 = vmul.f32 2.0, %v3200_v22 }
 0x61c   :  { %v2887_v24 = vpop.f32.mrb[168].mxu1 }
 0x61d   :  { %v2889_v25 = vpop.f32.mrb[169].mxu1 }
 0x61e   :  { %v2891_v26 = vpop.f32.mrb[170].mxu1 }
 0x61f   :  { %v2924_v27 = vpack.c.bf16 %v2891_v26, %v2887_v24  ;;  %v2893_v28 = vpop.f32.mrb[171].mxu1  ;;  %v3203_v24 = vadd.f32 2.0, %v3201_v23 }
 0x620   :  { %v2925_v29 = vpack.c.bf16 %v2893_v28, %v2889_v25 }
 0x621   :  { %vm3204_vm12 = vcmp.lt.f32.partialorder %v5208_v8, %v3203_v24 }
 0x622   :  { %3863 = vmatprep.mubr.msk.bf16.mxu0 %vm3004_vm11, %v2925_v29 }
 0x623   :  { %3050 = vmatmul.mubr.bf16.vlgmr.msra.gmra.mrb[220].mxu0 %v2924_v27 }
 0x624   :  { %v2897_v30 = vpop.f32.mrb[172].mxu1 }
 0x625   :  { %v2899_v31 = vpop.f32.mrb[173].mxu1 }
 0x626   :  { %v2901_v45 = vpop.f32.mrb[174].mxu1 }
 0x627   :  { %v2926_v32 = vpack.c.bf16 %v2901_v45, %v2897_v30  ;;  %v2903_v33 = vpop.f32.mrb[175].mxu1 }
 0x628   :  { %v2927_v34 = vpack.c.bf16 %v2903_v33, %v2899_v31 }
 0x62a   :  { %3864 = vmatprep.mubr.msk.bf16.mxu0 %vm3004_vm11, %v2927_v34 }
 0x62b   :  { %3058 = vmatmul.mubr.bf16.gmra.mrb[224].mxu0 %v2926_v32 }
 0x62c   :  { %v2907_v35 = vpop.f32.mrb[176].mxu1 }
 0x62d   :  { %v2909_v36 = vpop.f32.mrb[177].mxu1 }
 0x62e   :  { %v2911_v37 = vpop.f32.mrb[178].mxu1 }
 0x62f   :  { %v2928_v38 = vpack.c.bf16 %v2911_v37, %v2907_v35  ;;  %v2913_v39 = vpop.f32.mrb[179].mxu1 }
 0x630   :  { %v2929_v40 = vpack.c.bf16 %v2913_v39, %v2909_v36  ;;  %v4496_v36 = vld [vmem:[%s6379_s11 + $0x8] sm:$0xff]  }
 0x632   :  { %3865 = vmatprep.mubr.msk.bf16.mxu0 %vm3004_vm11, %v2929_v40 }
 0x633   :  { %3066 = vmatmul.mubr.bf16.gmra.mrb[228].mxu0 %v2928_v38 }
 0x634   :  { %v2917_v41 = vpop.f32.mrb[180].mxu1 }
 0x635   :  { %v2919_v42 = vpop.f32.mrb[181].mxu1  ;;  %v2930_v48 = vpack.c.bf16 %v2917_v41, %v2917_v41 }
 0x636   :  { %v2931_v44 = vpack.c.bf16 %v2919_v42, %v2919_v42  ;;  %v2921_v46 = vpop.f32.mrb[182].mxu1 }
 0x637   :  { %v2922_v47 = vpop.f32.mrb[183].mxu1 }
 0x638   :  { %3866 = vmatprep.mubr.msk.bf16.mxu0 %vm3004_vm11, %v2931_v44 }
 0x63b   :  { %3074 = vmatmul.mubr.bf16.gmra.mrb[232].mxu0 %v2930_v48 }
 0x63c   :  { %4287 = vmatprep.mubr.msk.bf16.mxu0 %vm4522_vm0, %v4521_v1 }
 0x6f6   :  { %v3051_v49 = vpop.f32.mrb[220].mxu0 }
 0x6f7   :  { %v3053_v50 = vpop.f32.mrb[221].mxu0  ;;  %vm3081_vm5 = vcmp.ge.f32.partialorder %v3051_v49, 0.5 }
 0x6f8   :  { %v3054_v51 = vpop.f32.mrb[222].mxu0 }
 0x6f9   :  { %vm3082_vm2 = vcmp.ge.f32.partialorder %v3054_v51, 0.5  ;;  %v3056_v52 = vpop.f32.mrb[223].mxu0 }
 0x6fa   :  { %vm3867_vm13 = vmpackc.low %vm3082_vm2, %vm3081_vm5  ;;  %vm6622_vm5 = vcmask 64512   ;;  %vm3379_vm2 = vcmask 261120  }
 0x6fb   :  { %4268 = vmatpush3.bf16.msk.msra.mxu1 %vm3867_vm13, %v4523_v13  ;;  %vm3423_vm13 = vcmask 74752  }
 0x6fc   :  { %4269 = vmatprep.subr.bf16.mxu1 %v4521_v1 }
 0x6fe   :  { %v3059_v53 = vpop.f32.mrb[224].mxu0 }
 0x6ff   :  { %v3061_v55 = vpop.f32.mrb[225].mxu0  ;;  %vm3083_vm8 = vcmp.ge.f32.partialorder %v3059_v53, 0.5 }
 0x700   :  { %v3062_v62 = vpop.f32.mrb[226].mxu0 }
 0x701   :  { %vm3084_vm3 = vcmp.ge.f32.partialorder %v3062_v62, 0.5  ;;  %v3064_v56 = vpop.f32.mrb[227].mxu0 }
 0x702   :  { %vm3869_vm10 = vmpackc.low %vm3084_vm3, %vm3083_vm8 }
 0x703   :  { %4270 = vmatpush3.bf16.msk.msra.mxu1 %vm3869_vm10, %v4523_v13 }
 0x704   :  { %4271 = vmatprep.subr.bf16.mxu1 %v4521_v1 }
 0x706   :  { %v3067_v57 = vpop.f32.mrb[228].mxu0 }
 0x707   :  { %v3069_v58 = vpop.f32.mrb[229].mxu0  ;;  %vm3085_vm15 = vcmp.ge.f32.partialorder %v3067_v57, 0.5 }
 0x708   :  { %v3070_v59 = vpop.f32.mrb[230].mxu0 }
 0x709   :  { %vm3086_vm7 = vcmp.ge.f32.partialorder %v3070_v59, 0.5  ;;  %v3072_v60 = vpop.f32.mrb[231].mxu0 }
 0x70a   :  { %vm3871_vm4 = vmpackc.low %vm3086_vm7, %vm3085_vm15 }
 0x70b   :  { %4272 = vmatpush3.bf16.msk.msra.mxu1 %vm3871_vm4, %v4523_v13  ;;  %v4486_v13 = vld [vmem:[%s6376_s8] sm:$0xff]  }
 0x70c   :  { %4273 = vmatprep.subr.bf16.mxu1 %v4521_v1 }
 0x70e   :  { %v3075_v61 = vpop.f32.mrb[232].mxu0 }
 0x70f   :  { %vm3087_vm9 = vcmp.ge.f32.partialorder %v3075_v61, 0.5  ;;  %v3077_v63 = vpop.f32.mrb[233].mxu0 }
 0x710   :  { %v3094_v0 = vsel %vm3087_vm9, 1.0, %v4521_v1  ;;  %v3078_v2 = vpop.f32.mrb[234].mxu0 }
 0x711   :  { %v3098_v7 = vpack.c.bf16 %v3094_v0, %v3094_v0  ;;  %v3079_v3 = vpop.f32.mrb[235].mxu0 }
 0x713   :  { %v3105_v14 = vsel %vm1320_vm6, %v3098_v7, 0  ;;  %vm3202_vm6 = vcmp.ge.f32.partialorder %v5208_v8, %v3201_v23  ;;  %v4495_v8 = vld [vmem:[%s6379_s11] sm:$0xff]   ;;  %s4497_s11 = scalar_lea.vmem %s3432_s24, 32 }
 0x714   :  { %4274 = vmatpush3.bf16.msra.mxu1 %v3105_v14  ;;  %vm3205_vm1 = vmand %vm3202_vm6, %vm3204_vm12  ;;  %p4498_p0 = scmp.ne.s32.totalorder %s3432_s24, %s4497_s11  ;;  %p4503_p2 = scmp.lt.s32.totalorder %s4497_s11, %s4497_s11 }
 0x715   :  { %4279 = vmatprep.subr.bf16.mxu1 %v4521_v1 }
 0x716   :  { %p4504_p3 = por %p4503_p2, %p4502_p1 }
 0x717   :  { %4276 = vmatmul.mubr.msk.bf16.vlgmr.msra.gmra.mrb[184].mxu1 %vm3100_vm14, %v3099_v4 }
 0x718   :  { %4281 = vmatprep.mubr.msk.bf16.mxu1 %vm4522_vm0, %v4521_v1  ;;  %4280 = vmatpush3.bf16.msra.mxu1 %v4486_v13  ;;  %p4505_p4 = pnand %p4504_p3, %p4498_p0 }
 0x719   :  { %4291 = vmatprep.subr.bf16.mxu1 %v4521_v1 }
 0x7ea   :  { %v3141_v6 = vpop.f32.mrb[184].mxu1 }
 0x7eb   :  { %v3147_v10 = vpack.c.bf16 %v3141_v6, %v3141_v6  ;;  %v4277_v11 = vpop.f32.mrb[185].mxu1 }
 0x7ec   :  { %v3144_v12 = vpop.f32.mrb[186].mxu1 }
 0x7ed   :  { %v4278_v15 = vpop.f32.mrb[187].mxu1  ;;  %4282 = vmatmul.mubr.msk.bf16.vlgmr.msra.gmra.mrb[188].mxu1 %vm3004_vm11, %v3147_v10  ;;  %vm6621_vm11 = vcmask 1043456  }
 0x7ee   :  { %4307 = vmatprep.mubr.msk.bf16.mxu1 %vm4522_vm0, %v4521_v1  ;;  %4292 = vmatpush3.bf16.msra.mxu1 %v4487_v5 }
 0x7ef   :  { %4293 = vmatprep.subr.bf16.mxu1 %v4521_v1 }
 0x7f2   :  { %4294 = vmatpush3.bf16.msra.mxu1 %v4488_v9 }
 0x7f3   :  { %4295 = vmatprep.subr.bf16.mxu1 %v4521_v1 }
 0x7f6   :  { %4296 = vmatpush3.bf16.msra.mxu1 %v4489_v16 }
 0x7f7   :  { %4297 = vmatprep.subr.bf16.mxu1 %v4521_v1 }
 0x7fa   :  { %4298 = vmatpush3.bf16.msra.mxu1 %v4490_v17 }
 0x7fb   :  { %4299 = vmatprep.subr.bf16.mxu1 %v4521_v1 }
 0x7fe   :  { %4300 = vmatpush3.bf16.msra.mxu1 %v4491_v18 }
 0x7ff   :  { %4301 = vmatprep.subr.bf16.mxu1 %v4521_v1 }
 0x802   :  { %4302 = vmatpush3.bf16.msra.mxu1 %v4492_v19 }
 0x803   :  { %4303 = vmatprep.subr.bf16.mxu1 %v4521_v1 }
 0x806   :  { %4304 = vmatpush3.bf16.msra.mxu1 %v4493_v20 }
 0x807   :  { %4305 = vmatprep.subr.bf16.mxu1 %v4521_v1 }
 0x80a   :  { %4306 = vmatpush3.bf16.msra.mxu1 %v4494_v54 }
 0x8c0   :  { %v3193_v25 = vpop.f32.mrb[188].mxu1 }
 0x8c1   :  { %v3206_v26 = vsel %vm3205_vm1, %v3193_v25, 0.0  ;;  %v4283_v27 = vpop.f32.mrb[189].mxu1 }
 0x8c2   :  { %v3207_v28 = vpack.c.bf16 %v3206_v26, %v3206_v26  ;;  %v3196_v29 = vpop.f32.mrb[190].mxu1 }
 0x8c3   :  { %v4284_v30 = vpop.f32.mrb[191].mxu1 }
 0x8c4   :  { %v3213_v31 = vsel %vm6621_vm11, %v3207_v28, 0 }
 0x8c5   :  { %4286 = vmatpush3.bf16.msra.mxu0 %v3213_v31 }
 0x8c6   :  { %4311 = vmatprep.subr.bf16.mxu0 %v4521_v1 }
 0x8c8   :  { %4288 = vmatmul.mubr.msk.bf16.vlgmr.msra.gmra.mrb[236].mxu0 %vm6622_vm5, %v3208_v43 }
 0x8c9   :  { %4315 = vmatprep.mubr.msk.bf16.mxu0 %vm4522_vm0, %v4521_v1  ;;  %4312 = vmatpush3.bf16.msra.mxu0 %v4495_v8 }
 0x8ca   :  { %4313 = vmatprep.subr.bf16.mxu0 %v4521_v1 }
 0x8cd   :  { %4314 = vmatpush3.bf16.msra.mxu0 %v4496_v36 }
 0x99b   :  { %v3249_v45 = vpop.f32.mrb[236].mxu0 }
 0x99c   :  { %v3255_v32 = vpack.c.bf16 %v3249_v45, %v3249_v45  ;;  %v4289_v33 = vpop.f32.mrb[237].mxu0 }
 0x99d   :  { %v3252_v34 = vpop.f32.mrb[238].mxu0 }
 0x99e   :  { %v4290_v35 = vpop.f32.mrb[239].mxu0  ;;  %4308 = vmatmul.mubr.bf16.vlgmr.msra.gmra.mrb[192].mxu1 %v3255_v32 }
 0xa71   :  { %v3354_v37 = vpop.f32.mrb[192].mxu1 }
 0xa72   :  { %vm3360_vm0 = vcmp.ge.f32.partialorder %v3354_v37, 0.5  ;;  %v4309_v38 = vpop.f32.mrb[193].mxu1 }
 0xa73   :  { %v3361_v39 = vsel %vm3360_vm0, 1.0, %v4521_v1  ;;  %v3357_v40 = vpop.f32.mrb[194].mxu1 }
 0xa74   :  { %v3362_v41 = vpack.c.bf16 %v3361_v39, %v3361_v39  ;;  %v4310_v42 = vpop.f32.mrb[195].mxu1 }
 0xa76   :  { %4316 = vmatmul.mubr.msk.bf16.vlgmr.msra.gmra.mrb[240].mxu0 %vm3379_vm2, %v3362_v41 }
 0xb49   :  { %v3417_v44 = vpop.f32.mrb[240].mxu0 }
 0xb4a   :  { %3424 = vst.msk [vmem:[#allocation2] sm:$0x3] %vm3423_vm13, %v3417_v44  ;;  %v4317_v46 = vpop.f32.mrb[241].mxu0 }
 0xb4b   :  { %v3420_v47 = vpop.f32.mrb[242].mxu0 }
 0xb4c   :  { %4508 = shalt.err (!%p4505_p4)
}
 0xb4d   :  { %s4509_s6 = scalar_lea.hbm %s6380_s12, 32 }
 0xb4e   :  { %p4510_p5 = scmp.ne.s32.totalorder %s6380_s12, %s4509_s6  ;;  %p4513_p6 = scmp.lt.u32.totalorder %s4509_s6, %s6380_s12 }
 0xb50   :  { %p4515_p7 = pnand %p4513_p6, %p4510_p5 }
 0xb52   :  { %4518 = shalt.err (!%p4515_p7)
}
 0xb53   :  { %3434 = dma.vmem_to_hbm [thread:$0]  %s3432_s24, 32, %s6380_s12, [#allocation3]   ;;  %v4318_v1 = vpop.f32.mrb[243].mxu0 }
 0xb54   :  { %4519 = dma.done.wait [#allocation3], 32  }
 0xb55   :  { %4520 = vsyncadd [#allocation3], 4294967264 }
 0xb56   :  { %3438 = vsyncpa [#allocation3], 1 }

</bundles_post_ra>
